<compile_context>
chip_gen: v7x
topology: tpu7x:2x2x1
jax: 0.10.0
libtpu: 0.0.40
codegen_flags: <defaults>
</compile_context>

<pallas_src>
import jax
import jax.numpy as jnp
from jax import lax
from jax.experimental import pallas as pl
from jax.experimental.pallas import tpu as pltpu

LANE = 128  # TPU lane width; channel dims are zero-padded to a multiple of this


def _bn_train(h, gamma, beta, eps=1e-5):
    """nn.BatchNorm2d forward (training mode, biased batch stats) as one FMA.

    Single stats pass (mean and E[h^2]); gamma/rsqrt/mean folded into a
    per-channel scale+shift so h is swept only once more.
    """
    m = jnp.mean(h, axis=0, keepdims=True)
    m2 = jnp.mean(h * h, axis=0, keepdims=True)
    var = jnp.maximum(m2 - m * m, 0.0)          # guard tiny negative cancellation
    scale = gamma * lax.rsqrt(var + eps)        # rsqrt -> EUP
    shift = beta - m * scale
    return h * scale + shift


def se_bottleneck_kernel(x_ref, w1_ref, g1_ref, b1_ref,
                         w2_ref, g2_ref, b2_ref,
                         w3_ref, g3_ref, b3_ref,
                         sw1_ref, sw2_ref,
                         o_ref, pad_ref):
    N, Hp2, Wp2, C1p = pad_ref.shape
    H, W = Hp2 - 2, Wp2 - 2
    P, C3p = o_ref.shape
    bf16 = jnp.bfloat16

    x = x_ref[...]                                                   # (P, Cp) f32

    # --- conv1 (1x1) + bn1 + relu : bf16 MXU operands, f32 accumulation --------
    h1 = jnp.dot(x.astype(bf16), w1_ref[...],
                 preferred_element_type=jnp.float32)                 # (P, C1p)
    h1 = jnp.maximum(_bn_train(h1, g1_ref[...], b1_ref[...]), 0.0)

    # --- conv2 (3x3, stride=1, padding=1) + bn2 + relu ---------------------------
    # Zero the whole bf16 halo scratch with one full-block (unmasked vst) store,
    # then write the interior once (single bf16 cast of h1).
    pad_ref[...] = jnp.zeros(pad_ref.shape, pad_ref.dtype)
    pad_ref[:, 1:H + 1, 1:W + 1, :] = h1.astype(bf16).reshape(N, H, W, C1p)

    # Per-tap accumulation: 9 (P,C1p)x(C1p,C1p) bf16 matmuls accumulated in f32.
    # No im2col concat -> no (P, 9*C1p) temporary, no vreg spill pass.
    h2 = jnp.zeros((P, C1p), jnp.float32)
    for t in range(9):                                               # static unroll
        ky, kx = t // 3, t % 3
        win = pad_ref[:, ky:ky + H, kx:kx + W, :].reshape(P, C1p)    # bf16
        h2 = h2 + jnp.dot(win, w2_ref[t], preferred_element_type=jnp.float32)
    h2 = jnp.maximum(_bn_train(h2, g2_ref[...], b2_ref[...]), 0.0)

    # --- conv3 (1x1) + bn3 --------------------------------------------------------
    h3 = jnp.dot(h2.astype(bf16), w3_ref[...],
                 preferred_element_type=jnp.float32)                 # (P, C3p)
    h3 = _bn_train(h3, g3_ref[...], b3_ref[...])

    # --- SE: global avg pool -> FC -> relu -> FC -> sigmoid -> channel scale -----
    # Two small f32 matmuls (lane-dense: hidden dim zero-padded to 128; the
    # padded columns/rows are exact zeros so the result is unchanged).
    h3_3d = h3.reshape(N, H * W, C3p)
    pooled = jnp.mean(h3_3d, axis=1)                                 # (N, C3p)
    z = jnp.maximum(jnp.dot(pooled, sw1_ref[...],
                            preferred_element_type=jnp.float32), 0.0)   # (N, Crp)
    v = jnp.dot(z, sw2_ref[...], preferred_element_type=jnp.float32)    # (N, C3p)
    y = pl.reciprocal(1.0 + jnp.exp(-v), approx=True)                # sigmoid (EUP)
    scaled = (h3_3d * y[:, None, :]).reshape(P, C3p)

    # --- identity residual add + relu (lane-dense 128-wide store) ----------------
    o_ref[...] = jnp.maximum(scaled + x, 0.0)


def _pad_to(a, shape):
    """Zero-pad array `a` up to `shape` (same rank)."""
    out = jnp.zeros(shape, a.dtype)
    return out.at[tuple(slice(0, s) for s in a.shape)].set(a)


def _round_up(v, m):
    return (v + m - 1) // m * m


@jax.jit
def se_bottleneck(x_nchw, params):
    N, Cin, H, W = x_nchw.shape
    C1 = params["w1"].shape[1]
    C3 = params["w3"].shape[1]
    Cr = params["sw2"].shape[0]
    P = N * H * W

    Cinp = _round_up(max(Cin, LANE), LANE)
    C1p = _round_up(max(C1, LANE), LANE)
    C3p = _round_up(max(C3, LANE), LANE)
    Crp = _round_up(max(Cr, LANE), LANE)
    assert Cinp == C3p, "identity residual path requires inplanes == planes*4"

    # TODO(synk): in a full network keep activations NHWC/(P, C) end-to-end so
    # this per-call relayout (transpose + pad copy) is paid only at the edges.
    x2d = _pad_to(jnp.transpose(x_nchw, (0, 2, 3, 1)).reshape(P, Cin), (P, Cinp))

    bf16 = jnp.bfloat16
    w1 = _pad_to(params["w1"], (Cinp, C1p)).astype(bf16)
    w2 = _pad_to(params["w2"], (9, C1p, C1p)).astype(bf16)      # per-tap (C1p,C1p)
    w3 = _pad_to(params["w3"], (C1p, C3p)).astype(bf16)
    g1 = _pad_to(params["g1"], (1, C1p)); b1 = _pad_to(params["b1"], (1, C1p))
    g2 = _pad_to(params["g2"], (1, C1p)); b2 = _pad_to(params["b2"], (1, C1p))
    g3 = _pad_to(params["g3"], (1, C3p)); b3 = _pad_to(params["b3"], (1, C3p))
    sw1 = _pad_to(params["sw1"], (C3p, Crp))     # (C3p, Crp): FC1, f32
    sw2 = _pad_to(params["sw2"], (Crp, C3p))     # (Crp, C3p): FC2, f32

    vmem = pl.BlockSpec(memory_space=pltpu.MemorySpace.VMEM)
    out2d = pl.pallas_call(
        se_bottleneck_kernel,
        out_shape=jax.ShapeDtypeStruct((P, C3p), jnp.float32),
        in_specs=[vmem] * 12,
        out_specs=vmem,
        scratch_shapes=[pltpu.VMEM((N, H + 2, W + 2, C1p), jnp.bfloat16)],
        # x and the output are both (P, 128) f32 -> share one HBM buffer; safe
        # here because the whole input tile is read before any output is written.
        input_output_aliases={0: 0},
    )(x2d, w1, g1, b1, w2, g2, b2, w3, g3, b3, sw1, sw2)

    out = out2d[:, :C3].reshape(N, H, W, C3)
    return jnp.transpose(out, (0, 3, 1, 2))


def ref_forward(x_nchw, params):
    """Pure-JAX f32 reference with identical module semantics (training-mode BN)."""
    hp = lax.Precision.HIGHEST
    x = jnp.transpose(x_nchw, (0, 2, 3, 1))

    def bn(h, g, b, eps=1e-5):
        mean = jnp.mean(h, axis=(0, 1, 2), keepdims=True)
        var = jnp.mean((h - mean) ** 2, axis=(0, 1, 2), keepdims=True)
        return (h - mean) * lax.rsqrt(var + eps) * g + b

    h = jnp.einsum("nhwc,cd->nhwd", x, params["w1"], precision=hp)
    h = jnp.maximum(bn(h, params["g1"], params["b1"]), 0.0)
    C1 = params["w1"].shape[1]
    w2 = params["w2"].reshape(3, 3, C1, C1)                      # HWIO
    h = lax.conv_general_dilated(h, w2, (1, 1), "SAME",
                                 dimension_numbers=("NHWC", "HWIO", "NHWC"),
                                 precision=hp)
    h = jnp.maximum(bn(h, params["g2"], params["b2"]), 0.0)
    h = jnp.einsum("nhwc,cd->nhwd", h, params["w3"], precision=hp)
    h = bn(h, params["g3"], params["b3"])
    pooled = jnp.mean(h, axis=(1, 2))
    z = jnp.maximum(jnp.dot(pooled, params["sw1"], precision=hp), 0.0)
    y = 1.0 / (1.0 + jnp.exp(-jnp.dot(z, params["sw2"], precision=hp)))
    h = h * y[:, None, None, :]
    out = jnp.maximum(h + x, 0.0)
    return jnp.transpose(out, (0, 3, 1, 2))


if __name__ == "__main__":
    key = jax.random.PRNGKey(0)
    N, H, W = 2, 8, 8
    planes = 32                      # C3 = 128 = lane width -> no padding waste on
    inplanes = planes * 4            # the residual / conv3 output path
    reduction = 16
    C1, C3 = planes, planes * 4
    Cr = max(C3 // reduction, 1)     # SE hidden width = 8

    def bf16_round(a):               # kernel uses bf16 MXU weights; keep the
        return a.astype(jnp.bfloat16).astype(jnp.float32)   # values bf16-exact

    keys = jax.random.split(key, 12)
    params = {
        # conv weights stored matmul-style: (Cin, Cout) / (tap, Cin, Cout)
        "w1": bf16_round(0.2 * jax.random.normal(keys[0], (inplanes, C1), jnp.float32)),
        "g1": 1.0 + 0.1 * jax.random.normal(keys[1], (1, C1), jnp.float32),
        "b1": 0.1 * jax.random.normal(keys[2], (1, C1), jnp.float32),
        "w2": bf16_round(0.2 * jax.random.normal(keys[3], (9, C1, C1), jnp.float32)),
        "g2": 1.0 + 0.1 * jax.random.normal(keys[4], (1, C1), jnp.float32),
        "b2": 0.1 * jax.random.normal(keys[5], (1, C1), jnp.float32),
        "w3": bf16_round(0.2 * jax.random.normal(keys[6], (C1, C3), jnp.float32)),
        "g3": 1.0 + 0.1 * jax.random.normal(keys[7], (1, C3), jnp.float32),
        "b3": 0.1 * jax.random.normal(keys[8], (1, C3), jnp.float32),
        # SE FC weights (bias=False): fc1 stored as (C3, Cr), fc2 as (Cr, C3)
        "sw1": 0.2 * jax.random.normal(keys[9], (C3, Cr), jnp.float32),
        "sw2": 0.2 * jax.random.normal(keys[10], (Cr, C3), jnp.float32),
    }
    x = jax.random.normal(keys[11], (N, inplanes, H, W), jnp.float32)

    out = jax.block_until_ready(se_bottleneck(x, params))
    ref = ref_forward(x, params)
    assert out.shape == (N, C3, H, W)
    # bf16 MXU operands + approx-reciprocal sigmoid vs an f32 HIGHEST reference:
    # observed error is low-1e-2; 5e-2 keeps margin while still catching
    # structural bugs (which show up as O(1) errors).
    err = float(jnp.max(jnp.abs(out - ref)))
    assert jnp.allclose(out, ref, atol=5e-2, rtol=5e-2), err
    print("KERNEL_OK")
</pallas_src>

<mosaic_0001>
module attributes {stable_mosaic.version = 11 : i64} {
  func.func @se_bottleneck_kernel(%arg0: memref<128x128xf32, #tpu.memory_space<vmem>>, %arg1: memref<128x128xbf16, #tpu.memory_space<vmem>>, %arg2: memref<1x128xf32, #tpu.memory_space<vmem>>, %arg3: memref<1x128xf32, #tpu.memory_space<vmem>>, %arg4: memref<9x128x128xbf16, #tpu.memory_space<vmem>>, %arg5: memref<1x128xf32, #tpu.memory_space<vmem>>, %arg6: memref<1x128xf32, #tpu.memory_space<vmem>>, %arg7: memref<128x128xbf16, #tpu.memory_space<vmem>>, %arg8: memref<1x128xf32, #tpu.memory_space<vmem>>, %arg9: memref<1x128xf32, #tpu.memory_space<vmem>>, %arg10: memref<128x128xf32, #tpu.memory_space<vmem>>, %arg11: memref<128x128xf32, #tpu.memory_space<vmem>>, %arg12: memref<128x128xf32, #tpu.memory_space<vmem>>, %arg13: memref<2x10x10x128xbf16, #tpu.memory_space<vmem>>) attributes {dimension_semantics = [], scalar_prefetch = 0 : i64, scratch_operands = 1 : i64, tpu.core_type = #tpu.core_type<tc>} {
    %c0 = arith.constant 0 : index
    %c0_0 = arith.constant 0 : index
    %0 = vector.load %arg0[%c0, %c0_0] : memref<128x128xf32, #tpu.memory_space<vmem>>, vector<128x128xf32>
    %1 = arith.truncf %0 : vector<128x128xf32> to vector<128x128xbf16>
    %c0_1 = arith.constant 0 : index
    %c0_2 = arith.constant 0 : index
    %2 = vector.load %arg1[%c0_1, %c0_2] : memref<128x128xbf16, #tpu.memory_space<vmem>>, vector<128x128xbf16>
    %cst = arith.constant dense<0.000000e+00> : vector<128x128xf32>
    %3 = tpu.matmul %1, %2, %cst {dimension_numbers = #tpu.dot_dimension_numbers<[1], [0], [0], [1], [0, 0, 1, 1], [], []>} : vector<128x128xbf16>, vector<128x128xbf16>, vector<128x128xf32> -> vector<128x128xf32>
    %c0_3 = arith.constant 0 : index
    %c0_4 = arith.constant 0 : index
    %4 = vector.load %arg2[%c0_3, %c0_4] : memref<1x128xf32, #tpu.memory_space<vmem>>, vector<1x128xf32>
    %c0_5 = arith.constant 0 : index
    %c0_6 = arith.constant 0 : index
    %5 = vector.load %arg3[%c0_5, %c0_6] : memref<1x128xf32, #tpu.memory_space<vmem>>, vector<1x128xf32>
    %cst_7 = arith.constant dense<0.000000e+00> : vector<128xf32>
    %6 = vector.multi_reduction <add>, %3, %cst_7 [0] : vector<128x128xf32> to vector<128xf32>
    %7 = vector.shape_cast %6 : vector<128xf32> to vector<1x128xf32>
    %cst_8 = arith.constant 1.280000e+02 : f32
    %8 = vector.broadcast %cst_8 : f32 to vector<1x128xf32>
    %9 = arith.divf %7, %8 : vector<1x128xf32>
    %10 = arith.mulf %3, %3 : vector<128x128xf32>
    %cst_9 = arith.constant dense<0.000000e+00> : vector<128xf32>
    %11 = vector.multi_reduction <add>, %10, %cst_9 [0] : vector<128x128xf32> to vector<128xf32>
    %12 = vector.shape_cast %11 : vector<128xf32> to vector<1x128xf32>
    %cst_10 = arith.constant 1.280000e+02 : f32
    %13 = vector.broadcast %cst_10 : f32 to vector<1x128xf32>
    %14 = arith.divf %12, %13 : vector<1x128xf32>
    %15 = arith.mulf %9, %9 : vector<1x128xf32>
    %16 = arith.subf %14, %15 : vector<1x128xf32>
    %cst_11 = arith.constant 0.000000e+00 : f32
    %17 = vector.broadcast %cst_11 : f32 to vector<1x128xf32>
    %18 = arith.maximumf %16, %17 : vector<1x128xf32>
    %cst_12 = arith.constant 9.99999974E-6 : f32
    %19 = vector.broadcast %cst_12 : f32 to vector<1x128xf32>
    %20 = arith.addf %18, %19 : vector<1x128xf32>
    %21 = math.rsqrt %20 : vector<1x128xf32>
    %22 = arith.mulf %4, %21 : vector<1x128xf32>
    %23 = arith.mulf %9, %22 : vector<1x128xf32>
    %24 = arith.subf %5, %23 : vector<1x128xf32>
    %25 = vector.broadcast %22 : vector<1x128xf32> to vector<128x128xf32>
    %26 = arith.mulf %3, %25 : vector<128x128xf32>
    %27 = vector.broadcast %24 : vector<1x128xf32> to vector<128x128xf32>
    %28 = arith.addf %26, %27 : vector<128x128xf32>
    %cst_13 = arith.constant 0.000000e+00 : f32
    %29 = vector.broadcast %cst_13 : f32 to vector<128x128xf32>
    %30 = arith.maximumf %28, %29 : vector<128x128xf32>
    %cst_14 = arith.constant 0.000000e+00 : bf16
    %31 = vector.broadcast %cst_14 : bf16 to vector<2x10x10x128xbf16>
    %c0_15 = arith.constant 0 : index
    %c0_16 = arith.constant 0 : index
    %c0_17 = arith.constant 0 : index
    %c0_18 = arith.constant 0 : index
    %32 = vector.load %arg13[%c0_15, %c0_16, %c0_17, %c0_18] : memref<2x10x10x128xbf16, #tpu.memory_space<vmem>>, vector<2x10x10x128xbf16>
    tpu.vector_store %arg13[%c0_15, %c0_16, %c0_17, %c0_18], %31 {strides = array<i32>} : memref<2x10x10x128xbf16, #tpu.memory_space<vmem>>, vector<2x10x10x128xbf16>,
    %33 = arith.truncf %30 : vector<128x128xf32> to vector<128x128xbf16>
    %34 = vector.shape_cast %33 : vector<128x128xbf16> to vector<2x8x8x128xbf16>
    %c0_19 = arith.constant 0 : index
    %c1 = arith.constant 1 : index
    %c1_20 = arith.constant 1 : index
    %c0_21 = arith.constant 0 : index
    %35 = vector.load %arg13[%c0_19, %c1, %c1_20, %c0_21] : memref<2x10x10x128xbf16, #tpu.memory_space<vmem>>, vector<2x8x8x128xbf16>
    tpu.vector_store %arg13[%c0_19, %c1, %c1_20, %c0_21], %34 {strides = array<i32>} : memref<2x10x10x128xbf16, #tpu.memory_space<vmem>>, vector<2x8x8x128xbf16>,
    %cst_22 = arith.constant 0.000000e+00 : f32
    %36 = vector.broadcast %cst_22 : f32 to vector<128x128xf32>
    %c0_23 = arith.constant 0 : index
    %c0_24 = arith.constant 0 : index
    %c0_25 = arith.constant 0 : index
    %c0_26 = arith.constant 0 : index
    %37 = vector.load %arg13[%c0_23, %c0_24, %c0_25, %c0_26] : memref<2x10x10x128xbf16, #tpu.memory_space<vmem>>, vector<2x8x8x128xbf16>
    %38 = vector.shape_cast %37 : vector<2x8x8x128xbf16> to vector<128x128xbf16>
    %c0_27 = arith.constant 0 : index
    %c0_28 = arith.constant 0 : index
    %c0_29 = arith.constant 0 : index
    %39 = vector.load %arg4[%c0_27, %c0_28, %c0_29] : memref<9x128x128xbf16, #tpu.memory_space<vmem>>, vector<1x128x128xbf16>
    %40 = vector.shape_cast %39 : vector<1x128x128xbf16> to vector<128x128xbf16>
    %cst_30 = arith.constant dense<0.000000e+00> : vector<128x128xf32>
    %41 = tpu.matmul %38, %40, %cst_30 {dimension_numbers = #tpu.dot_dimension_numbers<[1], [0], [0], [1], [0, 0, 1, 1], [], []>} : vector<128x128xbf16>, vector<128x128xbf16>, vector<128x128xf32> -> vector<128x128xf32>
    %42 = arith.addf %36, %41 : vector<128x128xf32>
    %c0_31 = arith.constant 0 : index
    %c0_32 = arith.constant 0 : index
    %c1_33 = arith.constant 1 : index
    %c0_34 = arith.constant 0 : index
    %43 = vector.load %arg13[%c0_31, %c0_32, %c1_33, %c0_34] : memref<2x10x10x128xbf16, #tpu.memory_space<vmem>>, vector<2x8x8x128xbf16>
    %44 = vector.shape_cast %43 : vector<2x8x8x128xbf16> to vector<128x128xbf16>
    %c1_35 = arith.constant 1 : index
    %c0_36 = arith.constant 0 : index
    %c0_37 = arith.constant 0 : index
    %45 = vector.load %arg4[%c1_35, %c0_36, %c0_37] : memref<9x128x128xbf16, #tpu.memory_space<vmem>>, vector<1x128x128xbf16>
    %46 = vector.shape_cast %45 : vector<1x128x128xbf16> to vector<128x128xbf16>
    %cst_38 = arith.constant dense<0.000000e+00> : vector<128x128xf32>
    %47 = tpu.matmul %44, %46, %cst_38 {dimension_numbers = #tpu.dot_dimension_numbers<[1], [0], [0], [1], [0, 0, 1, 1], [], []>} : vector<128x128xbf16>, vector<128x128xbf16>, vector<128x128xf32> -> vector<128x128xf32>
    %48 = arith.addf %42, %47 : vector<128x128xf32>
    %c0_39 = arith.constant 0 : index
    %c0_40 = arith.constant 0 : index
    %c2 = arith.constant 2 : index
    %c0_41 = arith.constant 0 : index
    %49 = vector.load %arg13[%c0_39, %c0_40, %c2, %c0_41] : memref<2x10x10x128xbf16, #tpu.memory_space<vmem>>, vector<2x8x8x128xbf16>
    %50 = vector.shape_cast %49 : vector<2x8x8x128xbf16> to vector<128x128xbf16>
    %c2_42 = arith.constant 2 : index
    %c0_43 = arith.constant 0 : index
    %c0_44 = arith.constant 0 : index
    %51 = vector.load %arg4[%c2_42, %c0_43, %c0_44] : memref<9x128x128xbf16, #tpu.memory_space<vmem>>, vector<1x128x128xbf16>
    %52 = vector.shape_cast %51 : vector<1x128x128xbf16> to vector<128x128xbf16>
    %cst_45 = arith.constant dense<0.000000e+00> : vector<128x128xf32>
    %53 = tpu.matmul %50, %52, %cst_45 {dimension_numbers = #tpu.dot_dimension_numbers<[1], [0], [0], [1], [0, 0, 1, 1], [], []>} : vector<128x128xbf16>, vector<128x128xbf16>, vector<128x128xf32> -> vector<128x128xf32>
    %54 = arith.addf %48, %53 : vector<128x128xf32>
    %c0_46 = arith.constant 0 : index
    %c1_47 = arith.constant 1 : index
    %c0_48 = arith.constant 0 : index
    %c0_49 = arith.constant 0 : index
    %55 = vector.load %arg13[%c0_46, %c1_47, %c0_48, %c0_49] : memref<2x10x10x128xbf16, #tpu.memory_space<vmem>>, vector<2x8x8x128xbf16>
    %56 = vector.shape_cast %55 : vector<2x8x8x128xbf16> to vector<128x128xbf16>
    %c3 = arith.constant 3 : index
    %c0_50 = arith.constant 0 : index
    %c0_51 = arith.constant 0 : index
    %57 = vector.load %arg4[%c3, %c0_50, %c0_51] : memref<9x128x128xbf16, #tpu.memory_space<vmem>>, vector<1x128x128xbf16>
    %58 = vector.shape_cast %57 : vector<1x128x128xbf16> to vector<128x128xbf16>
    %cst_52 = arith.constant dense<0.000000e+00> : vector<128x128xf32>
    %59 = tpu.matmul %56, %58, %cst_52 {dimension_numbers = #tpu.dot_dimension_numbers<[1], [0], [0], [1], [0, 0, 1, 1], [], []>} : vector<128x128xbf16>, vector<128x128xbf16>, vector<128x128xf32> -> vector<128x128xf32>
    %60 = arith.addf %54, %59 : vector<128x128xf32>
    %c0_53 = arith.constant 0 : index
    %c1_54 = arith.constant 1 : index
    %c1_55 = arith.constant 1 : index
    %c0_56 = arith.constant 0 : index
    %61 = vector.load %arg13[%c0_53, %c1_54, %c1_55, %c0_56] : memref<2x10x10x128xbf16, #tpu.memory_space<vmem>>, vector<2x8x8x128xbf16>
    %62 = vector.shape_cast %61 : vector<2x8x8x128xbf16> to vector<128x128xbf16>
    %c4 = arith.constant 4 : index
    %c0_57 = arith.constant 0 : index
    %c0_58 = arith.constant 0 : index
    %63 = vector.load %arg4[%c4, %c0_57, %c0_58] : memref<9x128x128xbf16, #tpu.memory_space<vmem>>, vector<1x128x128xbf16>
    %64 = vector.shape_cast %63 : vector<1x128x128xbf16> to vector<128x128xbf16>
    %cst_59 = arith.constant dense<0.000000e+00> : vector<128x128xf32>
    %65 = tpu.matmul %62, %64, %cst_59 {dimension_numbers = #tpu.dot_dimension_numbers<[1], [0], [0], [1], [0, 0, 1, 1], [], []>} : vector<128x128xbf16>, vector<128x128xbf16>, vector<128x128xf32> -> vector<128x128xf32>
    %66 = arith.addf %60, %65 : vector<128x128xf32>
    %c0_60 = arith.constant 0 : index
    %c1_61 = arith.constant 1 : index
    %c2_62 = arith.constant 2 : index
    %c0_63 = arith.constant 0 : index
    %67 = vector.load %arg13[%c0_60, %c1_61, %c2_62, %c0_63] : memref<2x10x10x128xbf16, #tpu.memory_space<vmem>>, vector<2x8x8x128xbf16>
    %68 = vector.shape_cast %67 : vector<2x8x8x128xbf16> to vector<128x128xbf16>
    %c5 = arith.constant 5 : index
    %c0_64 = arith.constant 0 : index
    %c0_65 = arith.constant 0 : index
    %69 = vector.load %arg4[%c5, %c0_64, %c0_65] : memref<9x128x128xbf16, #tpu.memory_space<vmem>>, vector<1x128x128xbf16>
    %70 = vector.shape_cast %69 : vector<1x128x128xbf16> to vector<128x128xbf16>
    %cst_66 = arith.constant dense<0.000000e+00> : vector<128x128xf32>
    %71 = tpu.matmul %68, %70, %cst_66 {dimension_numbers = #tpu.dot_dimension_numbers<[1], [0], [0], [1], [0, 0, 1, 1], [], []>} : vector<128x128xbf16>, vector<128x128xbf16>, vector<128x128xf32> -> vector<128x128xf32>
    %72 = arith.addf %66, %71 : vector<128x128xf32>
    %c0_67 = arith.constant 0 : index
    %c2_68 = arith.constant 2 : index
    %c0_69 = arith.constant 0 : index
    %c0_70 = arith.constant 0 : index
    %73 = vector.load %arg13[%c0_67, %c2_68, %c0_69, %c0_70] : memref<2x10x10x128xbf16, #tpu.memory_space<vmem>>, vector<2x8x8x128xbf16>
    %74 = vector.shape_cast %73 : vector<2x8x8x128xbf16> to vector<128x128xbf16>
    %c6 = arith.constant 6 : index
    %c0_71 = arith.constant 0 : index
    %c0_72 = arith.constant 0 : index
    %75 = vector.load %arg4[%c6, %c0_71, %c0_72] : memref<9x128x128xbf16, #tpu.memory_space<vmem>>, vector<1x128x128xbf16>
    %76 = vector.shape_cast %75 : vector<1x128x128xbf16> to vector<128x128xbf16>
    %cst_73 = arith.constant dense<0.000000e+00> : vector<128x128xf32>
    %77 = tpu.matmul %74, %76, %cst_73 {dimension_numbers = #tpu.dot_dimension_numbers<[1], [0], [0], [1], [0, 0, 1, 1], [], []>} : vector<128x128xbf16>, vector<128x128xbf16>, vector<128x128xf32> -> vector<128x128xf32>
    %78 = arith.addf %72, %77 : vector<128x128xf32>
    %c0_74 = arith.constant 0 : index
    %c2_75 = arith.constant 2 : index
    %c1_76 = arith.constant 1 : index
    %c0_77 = arith.constant 0 : index
    %79 = vector.load %arg13[%c0_74, %c2_75, %c1_76, %c0_77] : memref<2x10x10x128xbf16, #tpu.memory_space<vmem>>, vector<2x8x8x128xbf16>
    %80 = vector.shape_cast %79 : vector<2x8x8x128xbf16> to vector<128x128xbf16>
    %c7 = arith.constant 7 : index
    %c0_78 = arith.constant 0 : index
    %c0_79 = arith.constant 0 : index
    %81 = vector.load %arg4[%c7, %c0_78, %c0_79] : memref<9x128x128xbf16, #tpu.memory_space<vmem>>, vector<1x128x128xbf16>
    %82 = vector.shape_cast %81 : vector<1x128x128xbf16> to vector<128x128xbf16>
    %cst_80 = arith.constant dense<0.000000e+00> : vector<128x128xf32>
    %83 = tpu.matmul %80, %82, %cst_80 {dimension_numbers = #tpu.dot_dimension_numbers<[1], [0], [0], [1], [0, 0, 1, 1], [], []>} : vector<128x128xbf16>, vector<128x128xbf16>, vector<128x128xf32> -> vector<128x128xf32>
    %84 = arith.addf %78, %83 : vector<128x128xf32>
    %c0_81 = arith.constant 0 : index
    %c2_82 = arith.constant 2 : index
    %c2_83 = arith.constant 2 : index
    %c0_84 = arith.constant 0 : index
    %85 = vector.load %arg13[%c0_81, %c2_82, %c2_83, %c0_84] : memref<2x10x10x128xbf16, #tpu.memory_space<vmem>>, vector<2x8x8x128xbf16>
    %86 = vector.shape_cast %85 : vector<2x8x8x128xbf16> to vector<128x128xbf16>
    %c8 = arith.constant 8 : index
    %c0_85 = arith.constant 0 : index
    %c0_86 = arith.constant 0 : index
    %87 = vector.load %arg4[%c8, %c0_85, %c0_86] : memref<9x128x128xbf16, #tpu.memory_space<vmem>>, vector<1x128x128xbf16>
    %88 = vector.shape_cast %87 : vector<1x128x128xbf16> to vector<128x128xbf16>
    %cst_87 = arith.constant dense<0.000000e+00> : vector<128x128xf32>
    %89 = tpu.matmul %86, %88, %cst_87 {dimension_numbers = #tpu.dot_dimension_numbers<[1], [0], [0], [1], [0, 0, 1, 1], [], []>} : vector<128x128xbf16>, vector<128x128xbf16>, vector<128x128xf32> -> vector<128x128xf32>
    %90 = arith.addf %84, %89 : vector<128x128xf32>
    %c0_88 = arith.constant 0 : index
    %c0_89 = arith.constant 0 : index
    %91 = vector.load %arg5[%c0_88, %c0_89] : memref<1x128xf32, #tpu.memory_space<vmem>>, vector<1x128xf32>
    %c0_90 = arith.constant 0 : index
    %c0_91 = arith.constant 0 : index
    %92 = vector.load %arg6[%c0_90, %c0_91] : memref<1x128xf32, #tpu.memory_space<vmem>>, vector<1x128xf32>
    %cst_92 = arith.constant dense<0.000000e+00> : vector<128xf32>
    %93 = vector.multi_reduction <add>, %90, %cst_92 [0] : vector<128x128xf32> to vector<128xf32>
    %94 = vector.shape_cast %93 : vector<128xf32> to vector<1x128xf32>
    %cst_93 = arith.constant 1.280000e+02 : f32
    %95 = vector.broadcast %cst_93 : f32 to vector<1x128xf32>
    %96 = arith.divf %94, %95 : vector<1x128xf32>
    %97 = arith.mulf %90, %90 : vector<128x128xf32>
    %cst_94 = arith.constant dense<0.000000e+00> : vector<128xf32>
    %98 = vector.multi_reduction <add>, %97, %cst_94 [0] : vector<128x128xf32> to vector<128xf32>
    %99 = vector.shape_cast %98 : vector<128xf32> to vector<1x128xf32>
    %cst_95 = arith.constant 1.280000e+02 : f32
    %100 = vector.broadcast %cst_95 : f32 to vector<1x128xf32>
    %101 = arith.divf %99, %100 : vector<1x128xf32>
    %102 = arith.mulf %96, %96 : vector<1x128xf32>
    %103 = arith.subf %101, %102 : vector<1x128xf32>
    %cst_96 = arith.constant 0.000000e+00 : f32
    %104 = vector.broadcast %cst_96 : f32 to vector<1x128xf32>
    %105 = arith.maximumf %103, %104 : vector<1x128xf32>
    %cst_97 = arith.constant 9.99999974E-6 : f32
    %106 = vector.broadcast %cst_97 : f32 to vector<1x128xf32>
    %107 = arith.addf %105, %106 : vector<1x128xf32>
    %108 = math.rsqrt %107 : vector<1x128xf32>
    %109 = arith.mulf %91, %108 : vector<1x128xf32>
    %110 = arith.mulf %96, %109 : vector<1x128xf32>
    %111 = arith.subf %92, %110 : vector<1x128xf32>
    %112 = vector.broadcast %109 : vector<1x128xf32> to vector<128x128xf32>
    %113 = arith.mulf %90, %112 : vector<128x128xf32>
    %114 = vector.broadcast %111 : vector<1x128xf32> to vector<128x128xf32>
    %115 = arith.addf %113, %114 : vector<128x128xf32>
    %cst_98 = arith.constant 0.000000e+00 : f32
    %116 = vector.broadcast %cst_98 : f32 to vector<128x128xf32>
    %117 = arith.maximumf %115, %116 : vector<128x128xf32>
    %118 = arith.truncf %117 : vector<128x128xf32> to vector<128x128xbf16>
    %c0_99 = arith.constant 0 : index
    %c0_100 = arith.constant 0 : index
    %119 = vector.load %arg7[%c0_99, %c0_100] : memref<128x128xbf16, #tpu.memory_space<vmem>>, vector<128x128xbf16>
    %cst_101 = arith.constant dense<0.000000e+00> : vector<128x128xf32>
    %120 = tpu.matmul %118, %119, %cst_101 {dimension_numbers = #tpu.dot_dimension_numbers<[1], [0], [0], [1], [0, 0, 1, 1], [], []>} : vector<128x128xbf16>, vector<128x128xbf16>, vector<128x128xf32> -> vector<128x128xf32>
    %c0_102 = arith.constant 0 : index
    %c0_103 = arith.constant 0 : index
    %121 = vector.load %arg8[%c0_102, %c0_103] : memref<1x128xf32, #tpu.memory_space<vmem>>, vector<1x128xf32>
    %c0_104 = arith.constant 0 : index
    %c0_105 = arith.constant 0 : index
    %122 = vector.load %arg9[%c0_104, %c0_105] : memref<1x128xf32, #tpu.memory_space<vmem>>, vector<1x128xf32>
    %cst_106 = arith.constant dense<0.000000e+00> : vector<128xf32>
    %123 = vector.multi_reduction <add>, %120, %cst_106 [0] : vector<128x128xf32> to vector<128xf32>
    %124 = vector.shape_cast %123 : vector<128xf32> to vector<1x128xf32>
    %cst_107 = arith.constant 1.280000e+02 : f32
    %125 = vector.broadcast %cst_107 : f32 to vector<1x128xf32>
    %126 = arith.divf %124, %125 : vector<1x128xf32>
    %127 = arith.mulf %120, %120 : vector<128x128xf32>
    %cst_108 = arith.constant dense<0.000000e+00> : vector<128xf32>
    %128 = vector.multi_reduction <add>, %127, %cst_108 [0] : vector<128x128xf32> to vector<128xf32>
    %129 = vector.shape_cast %128 : vector<128xf32> to vector<1x128xf32>
    %cst_109 = arith.constant 1.280000e+02 : f32
    %130 = vector.broadcast %cst_109 : f32 to vector<1x128xf32>
    %131 = arith.divf %129, %130 : vector<1x128xf32>
    %132 = arith.mulf %126, %126 : vector<1x128xf32>
    %133 = arith.subf %131, %132 : vector<1x128xf32>
    %cst_110 = arith.constant 0.000000e+00 : f32
    %134 = vector.broadcast %cst_110 : f32 to vector<1x128xf32>
    %135 = arith.maximumf %133, %134 : vector<1x128xf32>
    %cst_111 = arith.constant 9.99999974E-6 : f32
    %136 = vector.broadcast %cst_111 : f32 to vector<1x128xf32>
    %137 = arith.addf %135, %136 : vector<1x128xf32>
    %138 = math.rsqrt %137 : vector<1x128xf32>
    %139 = arith.mulf %121, %138 : vector<1x128xf32>
    %140 = arith.mulf %126, %139 : vector<1x128xf32>
    %141 = arith.subf %122, %140 : vector<1x128xf32>
    %142 = vector.broadcast %139 : vector<1x128xf32> to vector<128x128xf32>
    %143 = arith.mulf %120, %142 : vector<128x128xf32>
    %144 = vector.broadcast %141 : vector<1x128xf32> to vector<128x128xf32>
    %145 = arith.addf %143, %144 : vector<128x128xf32>
    %146 = vector.shape_cast %145 : vector<128x128xf32> to vector<2x64x128xf32>
    %cst_112 = arith.constant dense<0.000000e+00> : vector<2x128xf32>
    %147 = vector.multi_reduction <add>, %146, %cst_112 [1] : vector<2x64x128xf32> to vector<2x128xf32>
    %cst_113 = arith.constant 6.400000e+01 : f32
    %148 = vector.broadcast %cst_113 : f32 to vector<2x128xf32>
    %149 = arith.divf %147, %148 : vector<2x128xf32>
    %c0_114 = arith.constant 0 : index
    %c0_115 = arith.constant 0 : index
    %150 = vector.load %arg10[%c0_114, %c0_115] : memref<128x128xf32, #tpu.memory_space<vmem>>, vector<128x128xf32>
    %cst_116 = arith.constant dense<0.000000e+00> : vector<2x128xf32>
    %151 = tpu.matmul %149, %150, %cst_116 {dimension_numbers = #tpu.dot_dimension_numbers<[1], [0], [0], [1], [0, 0, 1, 1], [], []>} : vector<2x128xf32>, vector<128x128xf32>, vector<2x128xf32> -> vector<2x128xf32>
    %cst_117 = arith.constant 0.000000e+00 : f32
    %152 = vector.broadcast %cst_117 : f32 to vector<2x128xf32>
    %153 = arith.maximumf %151, %152 : vector<2x128xf32>
    %c0_118 = arith.constant 0 : index
    %c0_119 = arith.constant 0 : index
    %154 = vector.load %arg11[%c0_118, %c0_119] : memref<128x128xf32, #tpu.memory_space<vmem>>, vector<128x128xf32>
    %cst_120 = arith.constant dense<0.000000e+00> : vector<2x128xf32>
    %155 = tpu.matmul %153, %154, %cst_120 {dimension_numbers = #tpu.dot_dimension_numbers<[1], [0], [0], [1], [0, 0, 1, 1], [], []>} : vector<2x128xf32>, vector<128x128xf32>, vector<2x128xf32> -> vector<2x128xf32>
    %cst_121 = arith.constant 0.000000e+00 : f32
    %156 = vector.broadcast %cst_121 : f32 to vector<2x128xf32>
    %157 = arith.subf %156, %155 : vector<2x128xf32>
    %158 = math.exp %157 : vector<2x128xf32>
    %cst_122 = arith.constant 1.000000e+00 : f32
    %159 = vector.broadcast %cst_122 : f32 to vector<2x128xf32>
    %160 = arith.addf %159, %158 : vector<2x128xf32>
    %161 = tpu.reciprocal %160 {approx = true} : vector<2x128xf32> -> vector<2x128xf32>
    %162 = vector.shape_cast %161 : vector<2x128xf32> to vector<2x1x128xf32>
    %163 = vector.broadcast %162 : vector<2x1x128xf32> to vector<2x64x128xf32>
    %164 = arith.mulf %146, %163 : vector<2x64x128xf32>
    %165 = vector.shape_cast %164 : vector<2x64x128xf32> to vector<128x128xf32>
    %166 = arith.addf %165, %0 : vector<128x128xf32>
    %cst_123 = arith.constant 0.000000e+00 : f32
    %167 = vector.broadcast %cst_123 : f32 to vector<128x128xf32>
    %168 = arith.maximumf %166, %167 : vector<128x128xf32>
    %c0_124 = arith.constant 0 : index
    %c0_125 = arith.constant 0 : index
    %169 = vector.load %arg12[%c0_124, %c0_125] : memref<128x128xf32, #tpu.memory_space<vmem>>, vector<128x128xf32>
    tpu.vector_store %arg12[%c0_124, %c0_125], %168 {strides = array<i32>} : memref<128x128xf32, #tpu.memory_space<vmem>>, vector<128x128xf32>,
    return
  }
}

</mosaic_0001>

<bundles_post_ra>
// kernel: se_bottleneck.1
= control target key start
LH: loop header
LB: loop body
LE: loop exit
PB: predicated region body
PF: predicated region fallthrough
CT: control target
= control target key end

     0   :  { %v5813_v37 = vmov 0   ;;  %vm757_vm0 = vsmask.f32 3328  ;;  %vm758_vm1 = vsmask.f32 7440  ;;  %vm607_vm3 = vcmask 1043456   ;;  %s7450_s1 = inlined_call_operand.vmem [shape: bf16[128,128], index: 1, kind: input, shape index: {}]   ;;  %s7451_s0 = inlined_call_operand.vmem [shape: f32[128,128], index: 0, kind: input, shape index: {}, may-alias: {0,12}]   ;;  %s7452_s4 = inlined_call_operand.vmem [shape: bf16[9,128,128], index: 4, kind: input, shape index: {}]   ;;  %s7453_s2 = inlined_call_operand.vmem [shape: f32[1,128], index: 2, kind: input, shape index: {}]   ;;  %s7454_s3 = inlined_call_operand.vmem [shape: f32[1,128], index: 3, kind: input, shape index: {}]   ;;  %s7455_s7 = inlined_call_operand.vmem [shape: bf16[128,128], index: 7, kind: input, shape index: {}]   ;;  %s7456_s5 = inlined_call_operand.vmem [shape: f32[1,128], index: 5, kind: input, shape index: {}]   ;;  %s7457_s6 = inlined_call_operand.vmem [shape: f32[1,128], index: 6, kind: input, shape index: {}]   ;;  %s7458_s10 = inlined_call_operand.vmem [shape: f32[128,128], index: 10, kind: input, shape index: {}]   ;;  %s7459_s8 = inlined_call_operand.vmem [shape: f32[1,128], index: 8, kind: input, shape index: {}]   ;;  %s7460_s9 = inlined_call_operand.vmem [shape: f32[1,128], index: 9, kind: input, shape index: {}]   ;;  %s7461_s11 = inlined_call_operand.vmem [shape: f32[128,128], index: 11, kind: input, shape index: {}]   ;;  %s7462_s12 = inlined_call_operand.vmem [shape: f32[128,128], index: 12, kind: output, shape index: {}, may-alias: {0,12}]  }
   0x1   :  { %v5664_v0 = vld [vmem:[%s7450_s1] sm:$0xff]   ;;  %v5665_v1 = vld [vmem:[%s7450_s1 + $0x8] sm:$0xff]   ;;  %v5666_v2 = vld [vmem:[%s7450_s1 + $0x10] sm:$0xff]   ;;  %390 = vst [vmem:[#allocation2 + $0x80] sm:$0xf] %v5813_v37  ;;  %vm613_vm5 = vcmask 1040384  }
   0x2   :  { %5061 = vmatprep.subr.bf16.mxu0 %v5664_v0  ;;  %v5667_v3 = vld [vmem:[%s7450_s1 + $0x18] sm:$0xff]   ;;  %v42_v4 = vld [vmem:[%s7451_s0] sm:$0xff]  ;;  %v43_v5 = vld [vmem:[%s7451_s0 + $0x8] sm:$0xff]  ;;  %391 = vst [vmem:[#allocation2 + $0x84] sm:$0x1] %v5813_v37  ;;  %vm1419_vm9 = vcmask 1042432  }
   0x3   :  { %5062 = vmatpush3.bf16.msra.mxu0 %v5664_v0  ;;  %v58_v6 = vpack.c.bf16 %v43_v5, %v42_v4  ;;  %v5668_v7 = vld [vmem:[%s7450_s1 + $0x20] sm:$0xff]   ;;  %v5669_v8 = vld [vmem:[%s7450_s1 + $0x28] sm:$0xff]   ;;  %v5670_v9 = vld [vmem:[%s7450_s1 + $0x30] sm:$0xff]   ;;  %358 = vst [vmem:[#allocation2] sm:$0xf] %v5813_v37  ;;  %vm1420_vm10 = vcmask 1046532  }
   0x4   :  { %5063 = vmatprep.subr.bf16.mxu0 %v5665_v1  ;;  %v5671_v10 = vld [vmem:[%s7450_s1 + $0x38] sm:$0xff]   ;;  %v44_v11 = vld [vmem:[%s7451_s0 + $0x10] sm:$0xff]  ;;  %v46_v13 = vld [vmem:[%s7451_s0 + $0x20] sm:$0xff]  ;;  %359 = vst [vmem:[#allocation2 + $0x4] sm:$0x1] %v5813_v37  ;;  %vm5815_vm12 = vmmov 0  }
   0x5   :  { %5077 = vmatprep.mubr.bf16.mxu0 %v58_v6  ;;  %v45_v12 = vld [vmem:[%s7451_s0 + $0x18] sm:$0xff]  ;;  %v47_v14 = vld [vmem:[%s7451_s0 + $0x28] sm:$0xff]  ;;  %v48_v17 = vld [vmem:[%s7451_s0 + $0x30] sm:$0xff]  ;;  %360 = vst [vmem:[#allocation2 + $0x8] sm:$0xf] %v5813_v37  ;;  %vm4217_vm13 = vcmask 1041409  }
   0x6   :  { %v59_v15 = vpack.c.bf16 %v45_v12, %v44_v11  ;;  %v60_v16 = vpack.c.bf16 %v47_v14, %v46_v13  ;;  %v49_v18 = vld [vmem:[%s7451_s0 + $0x38] sm:$0xff]  ;;  %v50_v19 = vld [vmem:[%s7451_s0 + $0x40] sm:$0xff]  ;;  %v51_v20 = vld [vmem:[%s7451_s0 + $0x48] sm:$0xff]  ;;  %361 = vst [vmem:[#allocation2 + $0xc] sm:$0x1] %v5813_v37 }
   0x7   :  { %5064 = vmatpush3.bf16.msra.mxu0 %v5665_v1  ;;  %v61_v21 = vpack.c.bf16 %v49_v18, %v48_v17  ;;  %v62_v22 = vpack.c.bf16 %v51_v20, %v50_v19  ;;  %v52_v23 = vld [vmem:[%s7451_s0 + $0x50] sm:$0xff]  ;;  %v53_v24 = vld [vmem:[%s7451_s0 + $0x58] sm:$0xff]  ;;  %v54_v25 = vld [vmem:[%s7451_s0 + $0x60] sm:$0xff]  ;;  %362 = vst [vmem:[#allocation2 + $0x10] sm:$0xf] %v5813_v37 }
   0x8   :  { %5065 = vmatprep.subr.bf16.mxu0 %v5666_v2  ;;  %v55_v26 = vld [vmem:[%s7451_s0 + $0x68] sm:$0xff]  ;;  %v63_v27 = vpack.c.bf16 %v53_v24, %v52_v23  ;;  %v56_v29 = vld [vmem:[%s7451_s0 + $0x70] sm:$0xff]  ;;  %v57_v30 = vld [vmem:[%s7451_s0 + $0x78] sm:$0xff]  ;;  %363 = vst [vmem:[#allocation2 + $0x14] sm:$0x1] %v5813_v37 }
   0x9   :  { %v64_v28 = vpack.c.bf16 %v55_v26, %v54_v25  ;;  %v65_v31 = vpack.c.bf16 %v57_v30, %v56_v29  ;;  %v5672_v32 = vld [vmem:[%s7452_s4 + $0xc0] sm:$0xff]   ;;  %v5673_v33 = vld [vmem:[%s7452_s4 + $0xc8] sm:$0xff]   ;;  %v5674_v34 = vld [vmem:[%s7452_s4 + $0xd0] sm:$0xff]   ;;  %364 = vst [vmem:[#allocation2 + $0x18] sm:$0xf] %v5813_v37 }
   0xa   :  { %5189 = vmatprep.subr.bf16.mxu1 %v5672_v32  ;;  %v5675_v35 = vld [vmem:[%s7452_s4 + $0x40] sm:$0xff]   ;;  %v5676_v36 = vld [vmem:[%s7452_s4 + $0xd8] sm:$0xff]   ;;  %365 = vst [vmem:[#allocation2 + $0x1c] sm:$0x1] %v5813_v37  ;;  %366 = vst [vmem:[#allocation2 + $0x20] sm:$0xf] %v5813_v37 }
   0xb   :  { %5066 = vmatpush3.bf16.msra.mxu0 %v5666_v2  ;;  %5190 = vmatpush3.bf16.msra.mxu1 %v5672_v32  ;;  %367 = vst [vmem:[#allocation2 + $0x24] sm:$0x1] %v5813_v37  ;;  %368 = vst [vmem:[#allocation2 + $0x28] sm:$0xf] %v5813_v37  ;;  %v5677_v38 = vld [vmem:[%s7452_s4 + $0x48] sm:$0xff]   ;;  %v5678_v39 = vld [vmem:[%s7452_s4 + $0xe0] sm:$0xff]  }
   0xc   :  { %5067 = vmatprep.subr.bf16.mxu0 %v5667_v3  ;;  %5191 = vmatprep.subr.bf16.mxu1 %v5673_v33  ;;  %369 = vst [vmem:[#allocation2 + $0x2c] sm:$0x1] %v5813_v37  ;;  %370 = vst [vmem:[#allocation2 + $0x30] sm:$0xf] %v5813_v37  ;;  %v5679_v40 = vld [vmem:[%s7452_s4 + $0x50] sm:$0xff]   ;;  %v5680_v41 = vld [vmem:[%s7452_s4 + $0xe8] sm:$0xff]  }
   0xd   :  { %371 = vst [vmem:[#allocation2 + $0x34] sm:$0x1] %v5813_v37  ;;  %372 = vst [vmem:[#allocation2 + $0x38] sm:$0xf] %v5813_v37  ;;  %v5681_v42 = vld [vmem:[%s7452_s4 + $0x58] sm:$0xff]   ;;  %v5682_v43 = vld [vmem:[%s7452_s4 + $0xf0] sm:$0xff]  }
   0xe   :  { %373 = vst [vmem:[#allocation2 + $0x3c] sm:$0x1] %v5813_v37  ;;  %374 = vst [vmem:[#allocation2 + $0x40] sm:$0xf] %v5813_v37  ;;  %v5683_v44 = vld [vmem:[%s7452_s4 + $0x60] sm:$0xff]   ;;  %v5684_v45 = vld [vmem:[%s7452_s4 + $0xf8] sm:$0xff]  }
   0xf   :  { %5068 = vmatpush3.bf16.msra.mxu0 %v5667_v3  ;;  %5192 = vmatpush3.bf16.msra.mxu1 %v5673_v33  ;;  %375 = vst [vmem:[#allocation2 + $0x44] sm:$0x1] %v5813_v37  ;;  %376 = vst [vmem:[#allocation2 + $0x48] sm:$0xf] %v5813_v37  ;;  %v5685_v46 = vld [vmem:[%s7452_s4 + $0x68] sm:$0xff]   ;;  %v6000_v47 = vld [vmem:[%s7452_s4 + $0x100] sm:$0xff]  }
  0x10   :  { %5069 = vmatprep.subr.bf16.mxu0 %v5668_v7  ;;  %5193 = vmatprep.subr.bf16.mxu1 %v5674_v34  ;;  %377 = vst [vmem:[#allocation2 + $0x4c] sm:$0x1] %v5813_v37  ;;  %378 = vst [vmem:[#allocation2 + $0x50] sm:$0xf] %v5813_v37  ;;  %v5689_v48 = vld [vmem:[%s7452_s4 + $0x70] sm:$0xff]   ;;  %v5692_v49 = vld [vmem:[%s7452_s4 + $0x78] sm:$0xff]  }
  0x11   :  { %379 = vst [vmem:[#allocation2 + $0x54] sm:$0x1] %v5813_v37  ;;  %380 = vst [vmem:[#allocation2 + $0x58] sm:$0xf] %v5813_v37  ;;  %v6012_v50 = vld [vmem:[%s7452_s4] sm:$0xff]  }
  0x12   :  { %381 = vst [vmem:[#allocation2 + $0x5c] sm:$0x1] %v5813_v37  ;;  %382 = vst [vmem:[#allocation2 + $0x60] sm:$0xf] %v5813_v37  ;;  %vm608_vm4 = vsmask.f32 7938 }
  0x13   :  { %5070 = vmatpush3.bf16.msra.mxu0 %v5668_v7  ;;  %5194 = vmatpush3.bf16.msra.mxu1 %v5674_v34  ;;  %383 = vst [vmem:[#allocation2 + $0x64] sm:$0x1] %v5813_v37  ;;  %384 = vst [vmem:[#allocation2 + $0x68] sm:$0xf] %v5813_v37  ;;  %vm614_vm6 = vsmask.f32 256 }
  0x14   :  { %5071 = vmatprep.subr.bf16.mxu0 %v5669_v8  ;;  %385 = vst [vmem:[#allocation2 + $0x6c] sm:$0x1] %v5813_v37  ;;  %386 = vst [vmem:[#allocation2 + $0x70] sm:$0xf] %v5813_v37  ;;  %5195 = vmatprep.subr.bf16.mxu1 %v5676_v36 }
  0x15   :  { %387 = vst [vmem:[#allocation2 + $0x74] sm:$0x1] %v5813_v37  ;;  %388 = vst [vmem:[#allocation2 + $0x78] sm:$0xf] %v5813_v37 }
  0x16   :  { %389 = vst [vmem:[#allocation2 + $0x7c] sm:$0x1] %v5813_v37  ;;  %392 = vst [vmem:[#allocation2 + $0x88] sm:$0xf] %v5813_v37 }
  0x17   :  { %5072 = vmatpush3.bf16.msra.mxu0 %v5669_v8  ;;  %393 = vst [vmem:[#allocation2 + $0x8c] sm:$0x1] %v5813_v37  ;;  %394 = vst [vmem:[#allocation2 + $0x90] sm:$0xf] %v5813_v37  ;;  %5196 = vmatpush3.bf16.msra.mxu1 %v5676_v36 }
  0x18   :  { %5073 = vmatprep.subr.bf16.mxu0 %v5670_v9  ;;  %395 = vst [vmem:[#allocation2 + $0x94] sm:$0x1] %v5813_v37  ;;  %396 = vst [vmem:[#allocation2 + $0x98] sm:$0xf] %v5813_v37  ;;  %5197 = vmatprep.subr.bf16.mxu1 %v5678_v39 }
  0x19   :  { %397 = vst [vmem:[#allocation2 + $0x9c] sm:$0x1] %v5813_v37  ;;  %vm6111_vm2 = vmor %vm757_vm0, %vm758_vm1 }
  0x1a   :  { %vm6190_vm7 = vmand %vm607_vm3, %vm608_vm4 }
  0x1b   :  { %5074 = vmatpush3.bf16.msra.mxu0 %v5670_v9  ;;  %5198 = vmatpush3.bf16.msra.mxu1 %v5678_v39  ;;  %vm6196_vm8 = vmand %vm613_vm5, %vm614_vm6 }
  0x1c   :  { %5075 = vmatprep.subr.bf16.mxu0 %v5671_v10  ;;  %5199 = vmatprep.subr.bf16.mxu1 %v5680_v41  ;;  %vm6654_vm11 = vmor %vm1419_vm9, %vm1420_vm10 }
  0x1f   :  { %5076 = vmatpush3.bf16.msra.mxu0 %v5671_v10  ;;  %5200 = vmatpush3.bf16.msra.mxu1 %v5680_v41 }
  0x20   :  { %5093 = vmatprep.subr.bf16.mxu0 %v5675_v35  ;;  %5201 = vmatprep.subr.bf16.mxu1 %v5682_v43 }
  0x22   :  { %5078 = vmatmul.mubr.bf16.vlgmr.msra.gmra.mrb[0].mxu0 %v59_v15 }
  0x23   :  { %5081 = vmatprep.mubr.bf16.mxu0 %v60_v16  ;;  %5094 = vmatpush3.bf16.msra.mxu0 %v5675_v35 }
  0x24   :  { %5095 = vmatprep.subr.bf16.mxu0 %v5677_v38  ;;  %5202 = vmatpush3.bf16.msra.mxu1 %v5682_v43 }
  0x25   :  { %5203 = vmatprep.subr.bf16.mxu1 %v5684_v45 }
  0x27   :  { %5096 = vmatpush3.bf16.msra.mxu0 %v5677_v38 }
  0x28   :  { %5097 = vmatprep.subr.bf16.mxu0 %v5679_v40  ;;  %5204 = vmatpush3.bf16.msra.mxu1 %v5684_v45 }
  0x29   :  { %5221 = vmatprep.subr.bf16.mxu1 %v6000_v47 }
  0x2a   :  { %5082 = vmatmul.mubr.bf16.gmra.mrb[4].mxu0 %v61_v21 }
  0x2b   :  { %5085 = vmatprep.mubr.bf16.mxu0 %v62_v22  ;;  %5098 = vmatpush3.bf16.msra.mxu0 %v5679_v40 }
  0x2c   :  { %5099 = vmatprep.subr.bf16.mxu0 %v5681_v42 }
  0x2f   :  { %5100 = vmatpush3.bf16.msra.mxu0 %v5681_v42 }
  0x30   :  { %5101 = vmatprep.subr.bf16.mxu0 %v5683_v44 }
  0x32   :  { %5086 = vmatmul.mubr.bf16.gmra.mrb[8].mxu0 %v63_v27 }
  0x33   :  { %5089 = vmatprep.mubr.bf16.mxu0 %v64_v28  ;;  %5102 = vmatpush3.bf16.msra.mxu0 %v5683_v44 }
  0x34   :  { %5103 = vmatprep.subr.bf16.mxu0 %v5685_v46 }
  0x37   :  { %5104 = vmatpush3.bf16.msra.mxu0 %v5685_v46 }
  0x38   :  { %5105 = vmatprep.subr.bf16.mxu0 %v5689_v48 }
  0x3a   :  { %5090 = vmatmul.mubr.bf16.gmra.mrb[12].mxu0 %v65_v31 }
  0x3b   :  { %5106 = vmatpush3.bf16.msra.mxu0 %v5689_v48 }
  0x3c   :  { %5107 = vmatprep.subr.bf16.mxu0 %v5692_v49 }
  0x3f   :  { %5108 = vmatpush3.bf16.msra.mxu0 %v5692_v49 }
  0x40   :  { %5125 = vmatprep.subr.bf16.mxu0 %v6012_v50 }
  0xf5   :  { %v6015_v51 = vpop.f32.mrb[0].mxu0 }
  0xf6   :  { %v6017_v52 = vpop.f32.mrb[1].mxu0  ;;  %v254_v58 = vmul.f32 %v6015_v51, %v6015_v51 }
  0xf7   :  { %v6019_v53 = vpop.f32.mrb[2].mxu0  ;;  %v252_v55 = vmul.f32 %v6017_v52, %v6017_v52 }
  0xf8   :  { %v6021_v54 = vpop.f32.mrb[3].mxu0  ;;  %v255_v61 = vmul.f32 %v6019_v53, %v6019_v53 }
  0xf9   :  { %v229_v56 = vadd.f32 %v6021_v54, %v6017_v52  ;;  %v253_v57 = vmul.f32 %v6021_v54, %v6021_v54 }
  0xfb   :  { %v230_v59 = vadd.f32 %v6015_v51, %v229_v56  ;;  %v268_v60 = vadd.f32 %v253_v57, %v252_v55 }
  0xfd   :  { %v269_v62 = vadd.f32 %v268_v60, %v254_v58  ;;  %v6034_v63 = vpop.f32.mrb[4].mxu0  ;;  %v231_v0 = vadd.f32 %v6019_v53, %v230_v59 }
  0xfe   :  { %v6037_v1 = vpop.f32.mrb[5].mxu0  ;;  %v258_v10 = vmul.f32 %v6034_v63, %v6034_v63 }
  0xff   :  { %v232_v2 = vadd.f32 %v231_v0, %v6037_v1  ;;  %v256_v3 = vmul.f32 %v6037_v1, %v6037_v1  ;;  %v270_v4 = vadd.f32 %v269_v62, %v255_v61  ;;  %v6042_v5 = vpop.f32.mrb[6].mxu0 }
 0x100   :  { %v6044_v6 = vpop.f32.mrb[7].mxu0  ;;  %v259_v13 = vmul.f32 %v6042_v5, %v6042_v5 }
 0x101   :  { %v271_v7 = vadd.f32 %v270_v4, %v256_v3  ;;  %v233_v8 = vadd.f32 %v232_v2, %v6044_v6  ;;  %v257_v9 = vmul.f32 %v6044_v6, %v6044_v6 }
 0x103   :  { %v234_v11 = vadd.f32 %v6034_v63, %v233_v8  ;;  %v272_v12 = vadd.f32 %v271_v7, %v257_v9 }
 0x105   :  { %v273_v14 = vadd.f32 %v272_v12, %v258_v10  ;;  %v6054_v15 = vpop.f32.mrb[8].mxu0  ;;  %v235_v16 = vadd.f32 %v6042_v5, %v234_v11  ;;  %v6095_v11 = vld [vmem:[#allocation2] sm:$0xf] }
 0x106   :  { %v6057_v17 = vpop.f32.mrb[9].mxu0  ;;  %v262_v26 = vmul.f32 %v6054_v15, %v6054_v15 }
 0x107   :  { %v236_v18 = vadd.f32 %v235_v16, %v6057_v17  ;;  %v260_v19 = vmul.f32 %v6057_v17, %v6057_v17  ;;  %v274_v20 = vadd.f32 %v273_v14, %v259_v13  ;;  %v6062_v21 = vpop.f32.mrb[10].mxu0  ;;  %v761_v14 = vshrl.u32 %v6095_v11, 16 }
 0x108   :  { %v6064_v22 = vpop.f32.mrb[11].mxu0  ;;  %v263_v29 = vmul.f32 %v6062_v21, %v6062_v21  ;;  %v764_v16 = vshll.u32 %v6095_v11, 16 }
 0x109   :  { %v275_v23 = vadd.f32 %v274_v20, %v260_v19  ;;  %v237_v24 = vadd.f32 %v236_v18, %v6064_v22  ;;  %v261_v25 = vmul.f32 %v6064_v22, %v6064_v22  ;;  %v717_v18 = vld [vmem:[#allocation2 + $0x50] sm:$0xf]  ;;  %v299_v19 = vlaneseq }
 0x10a   :  { %v763_v20 = vrot.slane %v761_v14, 4 }
 0x10b   :  { %v238_v27 = vadd.f32 %v6054_v15, %v237_v24  ;;  %v276_v28 = vadd.f32 %v275_v23, %v261_v25  ;;  %v766_v23 = vrot.slane %v764_v16, 5  ;;  %v873_v24 = vshrl.u32 %v717_v18, 16 }
 0x10c   :  { %v876_v25 = vshll.u32 %v717_v18, 16 }
 0x10d   :  { %v277_v30 = vadd.f32 %v276_v28, %v262_v26  ;;  %v6074_v31 = vpop.f32.mrb[12].mxu0  ;;  %v239_v32 = vadd.f32 %v6062_v21, %v238_v27  ;;  %v6099_v26 = vshrl.u32 %v299_v19, 7  ;;  %v741_v27 = vld [vmem:[#allocation2 + $0x4] sm:$0x1]  ;;  %v767_v28 = vor.u32 %v766_v23, %v763_v20 }
 0x10e   :  { %v6077_v33 = vpop.f32.mrb[13].mxu0  ;;  %v266_v42 = vmul.f32 %v6074_v31, %v6074_v31 }
 0x10f   :  { %v240_v34 = vadd.f32 %v239_v32, %v6077_v33  ;;  %v264_v35 = vmul.f32 %v6077_v33, %v6077_v33  ;;  %v278_v36 = vadd.f32 %v277_v30, %v263_v29  ;;  %v6082_v37 = vpop.f32.mrb[14].mxu0  ;;  %7464 = vst [vmem:[#allocation3_spill] sm:$0xff] %v6099_v26  ;;  %v770_v29 = vshll.u32 %v741_v27, 16 }
 0x110   :  { %v6084_v38 = vpop.f32.mrb[15].mxu0  ;;  %v267_v45 = vmul.f32 %v6082_v37, %v6082_v37  ;;  %v875_v30 = vrot.slane %v873_v24, 4  ;;  %v878_v32 = vrot.slane %v876_v25, 5 }
 0x111   :  { %v279_v39 = vadd.f32 %v278_v36, %v264_v35  ;;  %v241_v40 = vadd.f32 %v240_v34, %v6084_v38  ;;  %v265_v41 = vmul.f32 %v6084_v38, %v6084_v38  ;;  %v227_v34 = vld [vmem:[%s7453_s2] sm:$0x1]  ;;  %v6105_v35 = vsub.s32 0, %v6099_v26  ;;  %v749_v36 = vld [vmem:[#allocation2 + $0x54] sm:$0x1] }
 0x113   :  { %v242_v43 = vadd.f32 %v6074_v31, %v241_v40  ;;  %v280_v44 = vadd.f32 %v279_v39, %v265_v41  ;;  %v6107_v40 = vrot.slane %v767_v28, 4  ;;  %v6109_v41 = vrot.slane %v770_v29, 5 }
 0x115   :  { %v243_v46 = vadd.f32 %v6082_v37, %v242_v43  ;;  %v281_v48 = vadd.f32 %v280_v44, %v266_v42  ;;  %v879_v42 = vor.u32 %v878_v32, %v875_v30  ;;  %v882_v43 = vshll.u32 %v749_v36, 16 }
 0x117   :  { %v244_v49 = vrot.slane %v243_v46, 4  ;;  %v282_v55 = vadd.f32 %v281_v48, %v267_v45 }
 0x119   :  { %v245_v56 = vadd.f32 %v244_v49, %v243_v46  ;;  %v283_v57 = vrot.slane %v282_v55, 4  ;;  %v228_v46 = vld [vmem:[%s7454_s3] sm:$0x1] }
 0x11b   :  { %v246_v58 = vrot.slane %v245_v56, 2  ;;  %v284_v59 = vadd.f32 %v283_v57, %v282_v55  ;;  %v773_v55 = vsel %vm6111_vm2, %v6107_v40, %v6109_v41  ;;  %v6127_v57 = vrot.slane %v882_v43, 5 }
 0x11d   :  { %v247_v60 = vadd.f32 %v246_v58, %v245_v56  ;;  %v285_v61 = vrot.slane %v284_v59, 2  ;;  %v6125_v56 = vrot.slane %v879_v42, 4  ;;  %v694_v42 = vld [vmem:[#allocation2 + $0x84] sm:$0x1] }
 0x11f   :  { %v248_v62 = vrot.slane %v247_v60, 1  ;;  %v286_v0 = vadd.f32 %v285_v61, %v284_v59 }
 0x121   :  { %v249_v2 = vadd.f32 %v248_v62, %v247_v60  ;;  %v287_v3 = vrot.slane %v286_v0, 1 }
 0x123   :  { %v251_v4 = vmul.f32 0.0078125, %v249_v2  ;;  %v288_v7 = vadd.f32 %v287_v3, %v286_v0 }
 0x125   :  { %v289_v8 = vmul.f32 0.0078125, %v288_v7  ;;  %v290_v9 = vmul.f32 %v251_v4, %v251_v4 }
 0x127   :  { %v291_v10 = vsub.f32 %v289_v8, %v290_v9 }
 0x129   :  { %v292_v12 = vmax.f32 %v291_v10, 0.0 }
 0x12b   :  { %v293_v13 = vadd.f32 1e-05, %v292_v12 }
 0x12d   :  { %5776 = vrsqrt.f32 %v293_v13 }
 0x137   :  { %v5777_v39 = vpop.eup %5776 }
 0x138   :  { %v295_v44 = vmul.f32 %v5777_v39, %v227_v34  ;;  %v691_v39 = vld [vmem:[#allocation2 + $0x80] sm:$0xf] }
 0x13a   :  { %v296_v48 = vmul.f32 %v295_v44, %v251_v4  ;;  %v6119_v49 = vrot.slane %v295_v44, %v6105_v35 }
 0x13c   :  { %v297_v58 = vsub.f32 %v228_v46, %v296_v48  ;;  %v317_v59 = vmul.f32 %v6119_v49, %v6084_v38  ;;  %v304_v60 = vmul.f32 %v6119_v49, %v6017_v52  ;;  %v305_v61 = vmul.f32 %v6119_v49, %v6021_v54  ;;  %v610_v46 = vld [vmem:[#allocation2 + $0x8] sm:$0xf] }
 0x13d   :  { %v306_v62 = vmul.f32 %v6015_v51, %v6119_v49  ;;  %v307_v0 = vmul.f32 %v6019_v53, %v6119_v49  ;;  %v308_v2 = vmul.f32 %v6119_v49, %v6037_v1  ;;  %v309_v38 = vmul.f32 %v6119_v49, %v6044_v6 }
 0x13e   :  { %v6144_v3 = vrot.slane %v297_v58, %v6105_v35  ;;  %v310_v52 = vmul.f32 %v6034_v63, %v6119_v49  ;;  %v311_v51 = vmul.f32 %v6042_v5, %v6119_v49  ;;  %v6152_v53 = vmul.f32 %v6119_v49, %v6057_v17 }
 0x13f   :  { %v6156_v54 = vmul.f32 %v6119_v49, %v6064_v22  ;;  %v6160_v1 = vmul.f32 %v6054_v15, %v6119_v49  ;;  %v6164_v6 = vmul.f32 %v6062_v21, %v6119_v49  ;;  %v6168_v63 = vmul.f32 %v6119_v49, %v6077_v33 }
 0x140   :  { %v339_v5 = vadd.f32 %v6144_v3, %v317_v59  ;;  %v326_v17 = vadd.f32 %v6144_v3, %v304_v60  ;;  %v327_v4 = vadd.f32 %v6144_v3, %v305_v61  ;;  %v328_v22 = vadd.f32 %v6144_v3, %v306_v62  ;;  %v619_v62 = vld [vmem:[#allocation2 + $0x10] sm:$0xf]  ;;  %v5714_v60 = vld [vmem:[%s7452_s4 + $0x38] sm:$0xff]  }
 0x141   :  { %v329_v7 = vadd.f32 %v6144_v3, %v307_v0  ;;  %v330_v15 = vadd.f32 %v6144_v3, %v308_v2  ;;  %v331_v8 = vadd.f32 %v6144_v3, %v309_v38  ;;  %v6178_v21 = vadd.f32 %v6144_v3, %v310_v52 }
 0x142   :  { %v355_v9 = vmax.f32 %v339_v5, 0.0  ;;  %v342_v33 = vmax.f32 %v326_v17, 0.0  ;;  %v343_v10 = vmax.f32 %v327_v4, 0.0  ;;  %v344_v12 = vmax.f32 %v328_v22, 0.0 }
 0x143   :  { %v345_v13 = vmax.f32 %v329_v7, 0.0  ;;  %v346_v14 = vmax.f32 %v330_v15, 0.0  ;;  %v347_v16 = vmax.f32 %v331_v8, 0.0  ;;  %v6181_v18 = vadd.f32 %v6144_v3, %v311_v51  ;;  %v622_v51 = vld [vmem:[#allocation2 + $0x14] sm:$0x1] }
 0x144   :  { %v4848_v19 = vpack.c.bf16 %v355_v9, %v355_v9  ;;  %v4835_v20 = vpack.c.bf16 %v342_v33, %v342_v33  ;;  %v4836_v23 = vpack.c.bf16 %v343_v10, %v343_v10  ;;  %v4837_v24 = vpack.c.bf16 %v344_v12, %v344_v12  ;;  %v628_v9 = vld [vmem:[#allocation2 + $0x1c] sm:$0x1] }
 0x145   :  { %v4838_v25 = vpack.c.bf16 %v345_v13, %v345_v13  ;;  %v6183_v27 = vpack.c.bf16 %v346_v14, %v346_v14  ;;  %v6185_v28 = vpack.c.bf16 %v347_v16, %v347_v16  ;;  %v348_v29 = vmax.f32 %v6178_v21, 0.0  ;;  %v625_v21 = vld [vmem:[#allocation2 + $0x18] sm:$0xf] }
 0x146   :  { %v551_v30 = vshrl.u32 %v4848_v19, 16  ;;  %v554_v32 = vshll.u32 %v4848_v19, 16  ;;  %v447_v34 = vshrl.u32 %v4835_v20, 16  ;;  %v450_v36 = vshll.u32 %v4835_v20, 16 }
 0x147   :  { %v455_v43 = vshrl.u32 %v4836_v23, 16  ;;  %v458_v44 = vshll.u32 %v4836_v23, 16  ;;  %v463_v48 = vshrl.u32 %v4837_v24, 16  ;;  %v466_v58 = vshll.u32 %v4837_v24, 16  ;;  %v616_v23 = vld [vmem:[#allocation2 + $0xc] sm:$0x1] }
 0x148   :  { %v553_v59 = vrot.slane %v551_v30, 7  ;;  %v449_v61 = vrot.slane %v447_v34, 7  ;;  %v471_v0 = vshrl.u32 %v4838_v25, 16  ;;  %v474_v2 = vshll.u32 %v4838_v25, 16 }
 0x149   :  { %v457_v52 = vrot.slane %v455_v43, 7  ;;  %v465_v5 = vrot.slane %v463_v48, 7  ;;  %v479_v17 = vshrl.u32 %v6183_v27, 16  ;;  %v482_v4 = vshll.u32 %v6183_v27, 16 }
 0x14a   :  { %v556_v22 = vor.u32 %v554_v32, %v553_v59  ;;  %v557_v7 = vrot.slane %v553_v59, 4  ;;  %v452_v15 = vor.u32 %v450_v36, %v449_v61  ;;  %v453_v8 = vrot.slane %v449_v61, 4  ;;  %v631_v32 = vld [vmem:[#allocation2 + $0x20] sm:$0xf] }
 0x14b   :  { %v460_v33 = vor.u32 %v458_v44, %v457_v52  ;;  %v461_v10 = vrot.slane %v457_v52, 4  ;;  %v468_v12 = vor.u32 %v466_v58, %v465_v5  ;;  %v469_v13 = vrot.slane %v465_v5, 4  ;;  %v637_v44 = vld [vmem:[#allocation2 + $0x28] sm:$0xf] }
 0x14c   :  { %v692_v14 = vsel %vm6190_vm7, %v556_v22, %v691_v39  ;;  %v695_v16 = vsel %vm6196_vm8, %v557_v7, %v694_v42  ;;  %v611_v19 = vsel %vm6190_vm7, %v452_v15, %v610_v46  ;;  %v473_v20 = vrot.slane %v471_v0, 7  ;;  %v640_v22 = vld [vmem:[#allocation2 + $0x2c] sm:$0x1]  ;;  %v649_v15 = vld [vmem:[#allocation2 + $0x38] sm:$0xf] }
 0x14d   :  { %693 = vst [vmem:[#allocation2 + $0x80] sm:$0xf] %v692_v14  ;;  %696 = vst [vmem:[#allocation2 + $0x84] sm:$0x1] %v695_v16  ;;  %v620_v24 = vsel %vm6190_vm7, %v460_v33, %v619_v62  ;;  %v623_v25 = vsel %vm6196_vm8, %v461_v10, %v622_v51  ;;  %v626_v27 = vsel %vm6190_vm7, %v468_v12, %v625_v21  ;;  %v481_v39 = vrot.slane %v479_v17, 7 }
 0x14e   :  { %612 = vst [vmem:[#allocation2 + $0x8] sm:$0xf] %v611_v19  ;;  %v629_v30 = vsel %vm6196_vm8, %v469_v13, %v628_v9  ;;  %621 = vst [vmem:[#allocation2 + $0x10] sm:$0xf] %v620_v24  ;;  %v476_v34 = vor.u32 %v474_v2, %v473_v20  ;;  %v477_v36 = vrot.slane %v473_v20, 4  ;;  %v487_v42 = vshrl.u32 %v6185_v28, 16 }
 0x14f   :  { %624 = vst [vmem:[#allocation2 + $0x14] sm:$0x1] %v623_v25  ;;  %627 = vst [vmem:[#allocation2 + $0x18] sm:$0xf] %v626_v27  ;;  %v490_v43 = vshll.u32 %v6185_v28, 16  ;;  %v617_v46 = vsel %vm6196_vm8, %v453_v8, %v616_v23  ;;  %v349_v48 = vmax.f32 %v6181_v18, 0.0  ;;  %v4841_v58 = vpack.c.bf16 %v348_v29, %v348_v29 }
 0x150   :  { %630 = vst [vmem:[#allocation2 + $0x1c] sm:$0x1] %v629_v30  ;;  %v632_v59 = vsel %vm6190_vm7, %v476_v34, %v631_v32  ;;  %v484_v61 = vor.u32 %v482_v4, %v481_v39  ;;  %v485_v62 = vrot.slane %v481_v39, 4  ;;  %v489_v0 = vrot.slane %v487_v42, 7  ;;  %v643_v2 = vld [vmem:[#allocation2 + $0x30] sm:$0xf] }
 0x151   :  { %618 = vst [vmem:[#allocation2 + $0xc] sm:$0x1] %v617_v46  ;;  %633 = vst [vmem:[#allocation2 + $0x20] sm:$0xf] %v632_v59  ;;  %v4842_v52 = vpack.c.bf16 %v349_v48, %v349_v48  ;;  %v495_v51 = vshrl.u32 %v4841_v58, 16  ;;  %v498_v5 = vshll.u32 %v4841_v58, 16  ;;  %v334_v28 = vadd.f32 %v6144_v3, %v6152_v53 }
 0x152   :  { %v634_v17 = vld [vmem:[#allocation2 + $0x24] sm:$0x1]  ;;  %v492_v7 = vor.u32 %v490_v43, %v489_v0  ;;  %v493_v18 = vrot.slane %v489_v0, 4  ;;  %v638_v29 = vsel %vm6190_vm7, %v484_v61, %v637_v44  ;;  %v335_v4 = vadd.f32 %v6144_v3, %v6156_v54  ;;  %v646_v8 = vld [vmem:[#allocation2 + $0x34] sm:$0x1]  ;;  %v5691_v30 = vld [vmem:[%s7452_s4 + $0x108] sm:$0xff]  }
 0x153   :  { %639 = vst [vmem:[#allocation2 + $0x28] sm:$0xf] %v638_v29  ;;  %v497_v21 = vrot.slane %v495_v51, 7  ;;  %v503_v9 = vshrl.u32 %v4842_v52, 16  ;;  %v506_v33 = vshll.u32 %v4842_v52, 16  ;;  %v350_v10 = vmax.f32 %v334_v28, 0.0 }
 0x154   :  { %v652_v12 = vld [vmem:[#allocation2 + $0x3c] sm:$0x1]  ;;  %v644_v53 = vsel %vm6190_vm7, %v492_v7, %v643_v2  ;;  %v351_v14 = vmax.f32 %v335_v4, 0.0  ;;  %v635_v16 = vsel %vm6196_vm8, %v477_v36, %v634_v17  ;;  %v641_v19 = vsel %vm6196_vm8, %v485_v62, %v640_v22  ;;  %v655_v23 = vld [vmem:[#allocation2 + $0x40] sm:$0xf]  ;;  %v5693_v29 = vld [vmem:[%s7452_s4 + $0x110] sm:$0xff]  }
 0x155   :  { %v6231_v13 = vld [vmem:[#allocation2 + $0x8] sm:$0xf]  ;;  %645 = vst [vmem:[#allocation2 + $0x30] sm:$0xf] %v644_v53  ;;  %v500_v20 = vor.u32 %v498_v5, %v497_v21  ;;  %636 = vst [vmem:[#allocation2 + $0x24] sm:$0x1] %v635_v16  ;;  %v6239_v24 = vadd.f32 %v6144_v3, %v6160_v1  ;;  %v6243_v25 = vadd.f32 %v6144_v3, %v6164_v6 }
 0x156   :  { %v5686_v54 = vld [vmem:[#allocation2 + $0x8] ss:$8 sps:$4 sm:$0xff]   ;;  %642 = vst [vmem:[#allocation2 + $0x2c] sm:$0x1] %v641_v19  ;;  %v885_v27 = vsel %vm6111_vm2, %v6125_v56, %v6127_v57  ;;  %v775_v32 = vshrl.u32 %v6231_v13, 16  ;;  %v778_v34 = vshll.u32 %v6231_v13, 16  ;;  %v6262_v46 = vpack.c.bf16 %v350_v10, %v350_v10 }
 0x157   :  { %v501_v36 = vrot.slane %v497_v21, 4  ;;  %v6254_v1 = vrot.slane %v503_v9, 7  ;;  %v6256_v39 = vld [vmem:[#allocation2 + $0x10] sm:$0xf]  ;;  %5205 = vmatprep.mubr.bf16.mxu1 %v5686_v54  ;;  %v650_v42 = vsel %vm6190_vm7, %v500_v20, %v649_v15  ;;  %v6260_v43 = vld [vmem:[#allocation2 + $0x18] sm:$0xf]  ;;  %v647_v48 = vsel %vm6196_vm8, %v493_v18, %v646_v8 }
 0x158   :  { %v742_v6 = vld [vmem:[#allocation2 + $0xc] sm:$0x1]  ;;  %v743_v44 = vld [vmem:[#allocation2 + $0x14] sm:$0x1]  ;;  %v6268_v58 = vadd.f32 %v6144_v3, %v6168_v63  ;;  %v5688_v59 = vld [vmem:[#allocation2 + $0x18] ss:$8 sps:$4 sm:$0xff]   ;;  %v4844_v28 = vpack.c.bf16 %v351_v14, %v351_v14 }
 0x159   :  { %v777_v61 = vrot.slane %v775_v32, 4  ;;  %v780_v62 = vrot.slane %v778_v34, 5  ;;  %v508_v0 = vor.u32 %v506_v33, %v6254_v1  ;;  %651 = vst [vmem:[#allocation2 + $0x38] sm:$0xf] %v650_v42  ;;  %648 = vst [vmem:[#allocation2 + $0x34] sm:$0x1] %v647_v48  ;;  %v653_v2 = vsel %vm6196_vm8, %v501_v36, %v652_v12  ;;  %5206 = vmatmul.mubr.bf16.vlgmr.msra.gmra.mrb[0].mxu1 %v5688_v59 }
 0x15a   :  { %v784_v52 = vshll.u32 %v742_v6, 16  ;;  %v789_v51 = vshrl.u32 %v6256_v39, 16  ;;  %v792_v5 = vshll.u32 %v6256_v39, 16  ;;  %654 = vst [vmem:[#allocation2 + $0x3c] sm:$0x1] %v653_v2  ;;  %v798_v7 = vshll.u32 %v743_v44, 16  ;;  %5222 = vmatpush3.bf16.msra.mxu1 %v6000_v47 }
 0x15b   :  { %v781_v63 = vor.u32 %v780_v62, %v777_v61  ;;  %v656_v17 = vsel %vm6190_vm7, %v508_v0, %v655_v23  ;;  %v744_v22 = vld [vmem:[#allocation2 + $0x1c] sm:$0x1]  ;;  %v803_v18 = vshrl.u32 %v6260_v43, 16  ;;  %v509_v15 = vrot.slane %v6254_v1, 4  ;;  %5223 = vmatprep.subr.bf16.mxu1 %v5691_v30  ;;  %v6292_v54 = vld [vmem:[#allocation2 + $0x20] sm:$0xf] }
 0x15c   :  { %657 = vst [vmem:[#allocation2 + $0x40] sm:$0xf] %v656_v17  ;;  %v791_v4 = vrot.slane %v789_v51, 4  ;;  %v794_v8 = vrot.slane %v792_v5, 5  ;;  %v806_v21 = vshll.u32 %v6260_v43, 16  ;;  %v786_v10 = vrot.slane %v784_v52, 5 }
 0x15d   :  { %v5690_v9 = vld [vmem:[#allocation2 + $0x28] ss:$8 sps:$4 sm:$0xff]   ;;  %v782_v33 = vrot.slane %v781_v63, 4  ;;  %v6286_v12 = vmul.f32 %v6074_v31, %v6119_v49  ;;  %v6290_v47 = vmul.f32 %v6082_v37, %v6119_v49  ;;  %v805_v14 = vrot.slane %v803_v18, 4  ;;  %v5697_v31 = vld [vmem:[%s7452_s4 + $0x118] sm:$0xff]  }
 0x15e   :  { %v795_v53 = vor.u32 %v794_v8, %v791_v4  ;;  %v808_v16 = vrot.slane %v806_v21, 5  ;;  %v812_v19 = vshll.u32 %v744_v22, 16  ;;  %5209 = vmatprep.mubr.bf16.mxu1 %v5690_v9  ;;  %v800_v23 = vrot.slane %v798_v7, 5  ;;  %5224 = vmatpush3.bf16.msra.mxu1 %v5691_v30  ;;  %v661_v42 = vld [vmem:[#allocation2 + $0x58] sm:$0xf] }
 0x15f   :  { %v787_v20 = vsel %vm6111_vm2, %v782_v33, %v786_v10  ;;  %v511_v32 = vshrl.u32 %v6262_v46, 16  ;;  %v519_v34 = vshrl.u32 %v4844_v28, 16  ;;  %v514_v6 = vshll.u32 %v6262_v46, 16  ;;  %v667_v44 = vld [vmem:[#allocation2 + $0x60] sm:$0xf]  ;;  %5225 = vmatprep.subr.bf16.mxu1 %v5693_v29 }
 0x160   :  { %v4523_v37 = vcombine.low %v773_v55, %v787_v20  ;;  %v796_v49 = vrot.slane %v795_v53, 4  ;;  %v809_v36 = vor.u32 %v808_v16, %v805_v14  ;;  %v745_v48 = vld [vmem:[#allocation2 + $0x24] sm:$0x1]  ;;  %v522_v62 = vshll.u32 %v4844_v28, 16  ;;  %v6310_v30 = vld [vmem:[#allocation2 + $0x28] sm:$0xf] }
 0x161   :  { %v6306_v59 = vrot.slane %v511_v32, 7  ;;  %v6308_v61 = vrot.slane %v519_v34, 7  ;;  %v817_v0 = vshrl.u32 %v6292_v54, 16  ;;  %v814_v55 = vrot.slane %v812_v19, 5  ;;  %v746_v46 = vld [vmem:[#allocation2 + $0x2c] sm:$0x1] }
 0x162   :  { %5109 = vmatprep.mubr.bf16.mxu0 %v4523_v37  ;;  %v801_v40 = vsel %vm6111_vm2, %v796_v49, %v800_v23  ;;  %v810_v41 = vrot.slane %v809_v36, 4  ;;  %v820_v2 = vshll.u32 %v6292_v54, 16  ;;  %v826_v63 = vshll.u32 %v745_v48, 16  ;;  %5226 = vmatpush3.bf16.msra.mxu1 %v5693_v29  ;;  %v6322_v4 = vld [vmem:[#allocation2 + $0x30] sm:$0xf]  ;;  %v5698_v29 = vld [vmem:[%s7452_s4 + $0x8] sm:$0xff]  }
 0x163   :  { %v5694_v52 = vld [vmem:[#allocation2 + $0x38] ss:$8 sps:$4 sm:$0xff]   ;;  %v516_v51 = vor.u32 %v514_v6, %v6306_v59  ;;  %v517_v5 = vrot.slane %v6306_v59, 4  ;;  %v524_v28 = vor.u32 %v522_v62, %v6308_v61  ;;  %v525_v22 = vrot.slane %v6308_v61, 4  ;;  %5227 = vmatprep.subr.bf16.mxu1 %v5697_v31  ;;  %v747_v32 = vld [vmem:[#allocation2 + $0x34] sm:$0x1] }
 0x164   :  { %v815_v17 = vsel %vm6111_vm2, %v810_v41, %v814_v55  ;;  %v819_v7 = vrot.slane %v817_v0, 4  ;;  %v822_v18 = vrot.slane %v820_v2, 5  ;;  %5210 = vmatmul.mubr.bf16.gmra.mrb[4].mxu1 %v5694_v52  ;;  %v831_v33 = vshrl.u32 %v6310_v30, 16  ;;  %v5699_v10 = vld [vmem:[%s7452_s4 + $0x120] sm:$0xff]   ;;  %v6344_v48 = vld [vmem:[#allocation2 + $0x38] sm:$0xf] }
 0x165   :  { %v4524_v8 = vcombine.low %v801_v40, %v815_v17  ;;  %v662_v21 = vsel %vm6190_vm7, %v516_v51, %v661_v42  ;;  %v668_v9 = vsel %vm6190_vm7, %v524_v28, %v667_v44  ;;  %v834_v14 = vshll.u32 %v6310_v30, 16  ;;  %v5703_v40 = vld [vmem:[%s7452_s4 + $0x128] sm:$0xff]   ;;  %v5704_v17 = vld [vmem:[%s7452_s4 + $0x18] sm:$0xff]   ;;  %v5705_v59 = vld [vmem:[%s7452_s4 + $0x130] sm:$0xff]  }
 0x166   :  { %663 = vst [vmem:[#allocation2 + $0x58] sm:$0xf] %v662_v21  ;;  %669 = vst [vmem:[#allocation2 + $0x60] sm:$0xf] %v668_v9  ;;  %v823_v53 = vor.u32 %v822_v18, %v819_v7  ;;  %v840_v16 = vshll.u32 %v746_v46, 16  ;;  %v352_v19 = vmax.f32 %v6239_v24, 0.0  ;;  %5228 = vmatpush3.bf16.msra.mxu1 %v5697_v31 }
 0x167   :  { %5110 = vmatmul.mubr.bf16.vlgmr.msra.gmra.mrb[16].mxu0 %v4524_v8  ;;  %v833_v20 = vrot.slane %v831_v33, 4  ;;  %v353_v23 = vmax.f32 %v6243_v25, 0.0  ;;  %v845_v34 = vshrl.u32 %v6322_v4, 16  ;;  %v848_v37 = vshll.u32 %v6322_v4, 16  ;;  %v5701_v24 = vld [vmem:[%s7452_s4 + $0x10] sm:$0xff]   ;;  %5229 = vmatprep.subr.bf16.mxu1 %v5699_v10 }
 0x168   :  { %v824_v49 = vrot.slane %v823_v53, 4  ;;  %v828_v36 = vrot.slane %v826_v63, 5  ;;  %v836_v6 = vrot.slane %v834_v14, 5  ;;  %5126 = vmatpush3.bf16.msra.mxu0 %v6012_v50  ;;  %v4845_v42 = vpack.c.bf16 %v352_v19, %v352_v19  ;;  %v664_v46 = vld [vmem:[#allocation2 + $0x5c] sm:$0x1] }
 0x169   :  { %v842_v44 = vrot.slane %v840_v16, 5  ;;  %5127 = vmatprep.subr.bf16.mxu0 %v5698_v29  ;;  %v4846_v25 = vpack.c.bf16 %v353_v23, %v353_v23  ;;  %v847_v62 = vrot.slane %v845_v34, 4  ;;  %v850_v0 = vrot.slane %v848_v37, 5  ;;  %v673_v28 = vld [vmem:[#allocation2 + $0x68] sm:$0xf] }
 0x16a   :  { %v829_v50 = vsel %vm6111_vm2, %v824_v49, %v828_v36  ;;  %v837_v31 = vor.u32 %v836_v6, %v833_v20  ;;  %v527_v41 = vshrl.u32 %v4845_v42, 16  ;;  %v854_v55 = vshll.u32 %v747_v32, 16  ;;  %5230 = vmatpush3.bf16.msra.mxu1 %v5699_v10  ;;  %v748_v8 = vld [vmem:[#allocation2 + $0x3c] sm:$0x1]  ;;  %v670_v6 = vld [vmem:[#allocation2 + $0x64] sm:$0x1] }
 0x16b   :  { %v530_v2 = vshll.u32 %v4845_v42, 16  ;;  %v535_v52 = vshrl.u32 %v4846_v25, 16  ;;  %v538_v51 = vshll.u32 %v4846_v25, 16  ;;  %v851_v63 = vor.u32 %v850_v0, %v847_v62  ;;  %5231 = vmatprep.subr.bf16.mxu1 %v5703_v40  ;;  %v676_v0 = vld [vmem:[#allocation2 + $0x6c] sm:$0x1] }
 0x16c   :  { %v838_v7 = vrot.slane %v837_v31, 4  ;;  %5128 = vmatpush3.bf16.msra.mxu0 %v5698_v29  ;;  %v529_v18 = vrot.slane %v527_v41, 7  ;;  %v859_v21 = vshrl.u32 %v6344_v48, 16  ;;  %v862_v9 = vshll.u32 %v6344_v48, 16 }
 0x16d   :  { %v5696_v33 = vld [vmem:[#allocation2 + $0x58] ss:$8 sps:$4 sm:$0xff]   ;;  %5129 = vmatprep.subr.bf16.mxu0 %v5701_v24  ;;  %v665_v53 = vsel %vm6196_vm8, %v517_v5, %v664_v46  ;;  %v340_v14 = vadd.f32 %v6144_v3, %v6286_v12  ;;  %v341_v29 = vadd.f32 %v6144_v3, %v6290_v47  ;;  %v6366_v19 = vrot.slane %v535_v52, 7  ;;  %v679_v12 = vld [vmem:[#allocation2 + $0x70] sm:$0xf] }
 0x16e   :  { %v843_v10 = vsel %vm6111_vm2, %v838_v7, %v842_v44  ;;  %v532_v16 = vor.u32 %v530_v2, %v529_v18  ;;  %v856_v20 = vrot.slane %v854_v55, 5  ;;  %666 = vst [vmem:[#allocation2 + $0x5c] sm:$0x1] %v665_v53  ;;  %v6368_v23 = vld [vmem:[#allocation2 + $0x58] sm:$0xf]  ;;  %5213 = vmatprep.mubr.bf16.mxu1 %v5696_v33  ;;  %v852_v32 = vrot.slane %v851_v63, 4  ;;  %5232 = vmatpush3.bf16.msra.mxu1 %v5703_v40 }
 0x16f   :  { %v4525_v5 = vcombine.low %v829_v50, %v843_v10  ;;  %v861_v34 = vrot.slane %v859_v21, 4  ;;  %v864_v3 = vrot.slane %v862_v9, 5  ;;  %v533_v47 = vrot.slane %v529_v18, 4  ;;  %v5707_v50 = vld [vmem:[%s7452_s4 + $0x20] sm:$0xff]   ;;  %5233 = vmatprep.subr.bf16.mxu1 %v5705_v59  ;;  %v685_v53 = vld [vmem:[#allocation2 + $0x78] sm:$0xf] }
 0x170   :  { %v540_v37 = vor.u32 %v538_v51, %v6366_v19  ;;  %v674_v49 = vsel %vm6190_vm7, %v532_v16, %v673_v28  ;;  %v868_v36 = vshll.u32 %v748_v8, 16  ;;  %5130 = vmatpush3.bf16.msra.mxu0 %v5701_v24  ;;  %v857_v42 = vsel %vm6111_vm2, %v852_v32, %v856_v20  ;;  %v5708_v24 = vld [vmem:[%s7452_s4 + $0x138] sm:$0xff]   ;;  %v6398_v18 = vld [vmem:[%s7452_s4 + $0x140] sm:$0xff]   ;;  %v5709_v16 = vld [vmem:[%s7452_s4 + $0x28] sm:$0xff]  }
 0x171   :  { %5113 = vmatprep.mubr.bf16.mxu0 %v4525_v5  ;;  %675 = vst [vmem:[#allocation2 + $0x68] sm:$0xf] %v674_v49  ;;  %v865_v44 = vor.u32 %v864_v3, %v861_v34  ;;  %v354_v25 = vmax.f32 %v6268_v58, 0.0  ;;  %v887_v62 = vshrl.u32 %v6368_v23, 16  ;;  %5131 = vmatprep.subr.bf16.mxu0 %v5704_v17  ;;  %v890_v41 = vshll.u32 %v6368_v23, 16 }
 0x172   :  { %v680_v40 = vsel %vm6190_vm7, %v540_v37, %v679_v12  ;;  %v870_v31 = vrot.slane %v868_v36, 5  ;;  %v356_v58 = vmax.f32 %v340_v14, 0.0  ;;  %v357_v52 = vmax.f32 %v341_v29, 0.0  ;;  %5234 = vmatpush3.bf16.msra.mxu1 %v5705_v59  ;;  %v6403_v61 = vld [vmem:[#allocation2 + $0x60] sm:$0xf] }
 0x173   :  { %681 = vst [vmem:[#allocation2 + $0x70] sm:$0xf] %v680_v40  ;;  %v866_v55 = vrot.slane %v865_v44, 4  ;;  %v4847_v46 = vpack.c.bf16 %v354_v25, %v354_v25  ;;  %v889_v2 = vrot.slane %v887_v62, 4  ;;  %v892_v51 = vrot.slane %v890_v41, 5  ;;  %5235 = vmatprep.subr.bf16.mxu1 %v5708_v24  ;;  %v5711_v62 = vld [vmem:[%s7452_s4 + $0x30] sm:$0xff]  }
 0x174   :  { %5132 = vmatpush3.bf16.msra.mxu0 %v5704_v17  ;;  %v4849_v28 = vpack.c.bf16 %v356_v58, %v356_v58  ;;  %v671_v63 = vsel %vm6196_vm8, %v525_v22, %v670_v6  ;;  %v677_v7 = vsel %vm6196_vm8, %v533_v47, %v676_v0  ;;  %v541_v8 = vrot.slane %v6366_v19, 4  ;;  %v697_v12 = vld [vmem:[#allocation2 + $0x88] sm:$0xf]  ;;  %v682_v32 = vld [vmem:[#allocation2 + $0x74] sm:$0x1] }
 0x175   :  { %v871_v17 = vsel %vm6111_vm2, %v866_v55, %v870_v31  ;;  %v543_v21 = vshrl.u32 %v4847_v46, 16  ;;  %v750_v9 = vld [vmem:[#allocation2 + $0x5c] sm:$0x1]  ;;  %v4850_v33 = vpack.c.bf16 %v357_v52, %v357_v52  ;;  %672 = vst [vmem:[#allocation2 + $0x64] sm:$0x1] %v671_v63  ;;  %5133 = vmatprep.subr.bf16.mxu0 %v5707_v50  ;;  %v893_v14 = vor.u32 %v892_v51, %v889_v2 }
 0x176   :  { %678 = vst [vmem:[#allocation2 + $0x6c] sm:$0x1] %v677_v7  ;;  %v4526_v22 = vcombine.low %v857_v42, %v871_v17  ;;  %v896_v29 = vshll.u32 %v750_v9, 16  ;;  %v559_v10 = vshrl.u32 %v4849_v28, 16  ;;  %v546_v20 = vshll.u32 %v4847_v46, 16  ;;  %5236 = vmatpush3.bf16.msra.mxu1 %v5708_v24 }
 0x177   :  { %v6408_v19 = vrot.slane %v543_v21, 7  ;;  %v562_v59 = vshll.u32 %v4849_v28, 16  ;;  %v567_v5 = vshrl.u32 %v4850_v33, 16  ;;  %v894_v34 = vrot.slane %v893_v14, 4  ;;  %v703_v37 = vld [vmem:[#allocation2 + $0x90] sm:$0xf]  ;;  %5253 = vmatprep.subr.bf16.mxu1 %v6398_v18 }
 0x178   :  { %5114 = vmatmul.mubr.bf16.gmra.mrb[20].mxu0 %v4526_v22  ;;  %v898_v3 = vrot.slane %v896_v29, 5  ;;  %v6410_v47 = vrot.slane %v559_v10, 7  ;;  %v901_v49 = vshrl.u32 %v6403_v61, 16  ;;  %v570_v42 = vshll.u32 %v4850_v33, 16  ;;  %v6416_v44 = vld [vmem:[#allocation2 + $0x68] sm:$0xf] }
 0x179   :  { %v548_v36 = vor.u32 %v546_v20, %v6408_v19  ;;  %v6414_v6 = vrot.slane %v567_v5, 7  ;;  %v904_v25 = vshll.u32 %v6403_v61, 16  ;;  %5134 = vmatpush3.bf16.msra.mxu0 %v5707_v50  ;;  %v549_v40 = vrot.slane %v6408_v19, 4  ;;  %v1938_v2 = vld [vmem:[#allocation2 + $0x8] sm:$0xf] }
 0x17a   :  { %v5700_v0 = vld [vmem:[#allocation2 + $0x68] ss:$8 sps:$4 sm:$0xff]   ;;  %v899_v24 = vsel %vm6111_vm2, %v894_v34, %v898_v3  ;;  %v564_v31 = vor.u32 %v562_v59, %v6410_v47  ;;  %v903_v41 = vrot.slane %v901_v49, 4  ;;  %5135 = vmatprep.subr.bf16.mxu0 %v5709_v16  ;;  %v565_v55 = vrot.slane %v6410_v47, 4  ;;  %v6436_v52 = vld [vmem:[#allocation2 + $0xc] sm:$0x1] }
 0x17b   :  { %v686_v58 = vsel %vm6190_vm7, %v548_v36, %v685_v53  ;;  %v4527_v50 = vcombine.low %v885_v27, %v899_v24  ;;  %v572_v46 = vor.u32 %v570_v42, %v6414_v6  ;;  %5214 = vmatmul.mubr.bf16.gmra.mrb[8].mxu1 %v5700_v0  ;;  %v906_v7 = vrot.slane %v904_v25, 5  ;;  %v1940_v33 = vld [vmem:[#allocation2 + $0x10] sm:$0xf]  ;;  %v6452_v14 = vld [vmem:[#allocation2 + $0x14] sm:$0x1] }
 0x17c   :  { %687 = vst [vmem:[#allocation2 + $0x78] sm:$0xf] %v686_v58  ;;  %v698_v51 = vsel %vm6190_vm7, %v564_v31, %v697_v12  ;;  %v6440_v28 = vld [vmem:[#allocation2 + $0x64] sm:$0x1]  ;;  %v915_v56 = vshrl.u32 %v6416_v44, 16  ;;  %v683_v57 = vsel %vm6196_vm8, %v541_v8, %v682_v32  ;;  %v918_v21 = vshll.u32 %v6416_v44, 16 }
 0x17d   :  { %v6442_v63 = vld [vmem:[#allocation2 + $0x6c] sm:$0x1]  ;;  %5117 = vmatprep.mubr.bf16.mxu0 %v4527_v50  ;;  %699 = vst [vmem:[#allocation2 + $0x88] sm:$0xf] %v698_v51  ;;  %v704_v27 = vsel %vm6190_vm7, %v572_v46, %v703_v37  ;;  %v910_v17 = vshll.u32 %v6440_v28, 16  ;;  %5136 = vmatpush3.bf16.msra.mxu0 %v5709_v16  ;;  %v907_v22 = vor.u32 %v906_v7, %v903_v41  ;;  %v1971_v8 = vshrl.u32 %v1938_v2, 16 }
 0x17e   :  { %v924_v9 = vshll.u32 %v6442_v63, 16  ;;  %684 = vst [vmem:[#allocation2 + $0x74] sm:$0x1] %v683_v57  ;;  %705 = vst [vmem:[#allocation2 + $0x90] sm:$0xf] %v704_v27  ;;  %v917_v53 = vrot.slane %v915_v56, 4  ;;  %5137 = vmatprep.subr.bf16.mxu0 %v5711_v62 }
 0x17f   :  { %v1974_v29 = vshll.u32 %v1938_v2, 16  ;;  %v912_v19 = vrot.slane %v910_v17, 5  ;;  %v920_v20 = vrot.slane %v918_v21, 5  ;;  %v1980_v59 = vshll.u32 %v6436_v52, 16  ;;  %v688_v5 = vld [vmem:[#allocation2 + $0x7c] sm:$0x1] }
 0x180   :  { %v908_v16 = vrot.slane %v907_v22, 4  ;;  %v1973_v12 = vrot.slane %v1971_v8, 4  ;;  %v1985_v34 = vshrl.u32 %v1940_v33, 16  ;;  %v700_v3 = vld [vmem:[#allocation2 + $0x8c] sm:$0x1]  ;;  %v926_v37 = vrot.slane %v924_v9, 5 }
 0x181   :  { %v1976_v32 = vrot.slane %v1974_v29, 5  ;;  %v921_v47 = vor.u32 %v920_v20, %v917_v53  ;;  %v1988_v49 = vshll.u32 %v1940_v33, 16  ;;  %v1994_v36 = vshll.u32 %v6452_v14, 16  ;;  %5138 = vmatpush3.bf16.msra.mxu0 %v5711_v62  ;;  %v658_v42 = vld [vmem:[#allocation2 + $0x44] sm:$0x1] }
 0x182   :  { %v1982_v0 = vrot.slane %v1980_v59, 5  ;;  %v1987_v24 = vrot.slane %v1985_v34, 4  ;;  %v689_v31 = vsel %vm6196_vm8, %v549_v40, %v688_v5  ;;  %v6462_v41 = vld [vmem:[#allocation2 + $0x70] sm:$0xf]  ;;  %5139 = vmatprep.subr.bf16.mxu0 %v5714_v60  ;;  %v6467_v58 = vld [vmem:[%s7452_s4 + $0x80] sm:$0xff]   ;;  %v913_v46 = vsel %vm6111_vm2, %v908_v16, %v912_v19 }
 0x183   :  { %v1977_v25 = vor.u32 %v1976_v32, %v1973_v12  ;;  %v5702_v50 = vld [vmem:[#allocation2 + $0x78] ss:$8 sps:$4 sm:$0xff]   ;;  %v922_v62 = vrot.slane %v921_v47, 4  ;;  %v1990_v2 = vrot.slane %v1988_v49, 5  ;;  %690 = vst [vmem:[#allocation2 + $0x7c] sm:$0x1] %v689_v31  ;;  %v701_v7 = vsel %vm6196_vm8, %v565_v55, %v700_v3 }
 0x184   :  { %v1942_v51 = vld [vmem:[#allocation2 + $0x18] sm:$0xf]  ;;  %v1996_v56 = vrot.slane %v1994_v36, 5  ;;  %702 = vst [vmem:[#allocation2 + $0x8c] sm:$0x1] %v701_v7  ;;  %v659_v27 = vsel %vm6196_vm8, %v509_v15, %v658_v42  ;;  %5217 = vmatprep.mubr.bf16.mxu1 %v5702_v50  ;;  %v929_v53 = vshrl.u32 %v6462_v41, 16 }
 0x185   :  { %v1978_v40 = vrot.slane %v1977_v25, 4  ;;  %v6473_v57 = vld [vmem:[#allocation2 + $0x78] sm:$0xf]  ;;  %v5706_v21 = vld [vmem:[#allocation2 + $0x88] ss:$8 sps:$4 sm:$0xff]   ;;  %v927_v9 = vsel %vm6111_vm2, %v922_v62, %v926_v37  ;;  %v1991_v33 = vor.u32 %v1990_v2, %v1987_v24  ;;  %5140 = vmatpush3.bf16.msra.mxu0 %v5714_v60  ;;  %v932_v8 = vshll.u32 %v6462_v41, 16 }
 0x186   :  { %v6483_v55 = vld [vmem:[#allocation2 + $0x74] sm:$0x1]  ;;  %660 = vst [vmem:[#allocation2 + $0x44] sm:$0x1] %v659_v27  ;;  %v4528_v1 = vcombine.low %v913_v46, %v927_v9  ;;  %5157 = vmatprep.subr.bf16.mxu0 %v6467_v58  ;;  %5218 = vmatmul.mubr.bf16.gmra.mrb[12].mxu1 %v5706_v21  ;;  %v943_v20 = vshrl.u32 %v6473_v57, 16  ;;  %v946_v59 = vshll.u32 %v6473_v57, 16 }
 0x187   :  { %v1983_v15 = vsel %vm6111_vm2, %v1978_v40, %v1982_v0  ;;  %v1992_v29 = vrot.slane %v1991_v33, 4  ;;  %v938_v19 = vshll.u32 %v6483_v55, 16  ;;  %v6495_v60 = vld [vmem:[#allocation2 + $0x1c] sm:$0x1]  ;;  %v931_v5 = vrot.slane %v929_v53, 4 }
 0x188   :  { %5118 = vmatmul.mubr.bf16.gmra.mrb[24].mxu0 %v4528_v1  ;;  %v934_v16 = vrot.slane %v932_v8, 5  ;;  %v1944_v12 = vld [vmem:[#allocation2 + $0x20] sm:$0xf]  ;;  %v1999_v32 = vshrl.u32 %v1942_v51, 16  ;;  %v2002_v34 = vshll.u32 %v1942_v51, 16  ;;  %v945_v37 = vrot.slane %v943_v20, 4 }
 0x189   :  { %v1997_v3 = vsel %vm6111_vm2, %v1992_v29, %v1996_v56  ;;  %v940_v47 = vrot.slane %v938_v19, 5  ;;  %v948_v49 = vrot.slane %v946_v59, 5  ;;  %v6499_v36 = vld [vmem:[#allocation2 + $0x24] sm:$0x1]  ;;  %v2008_v62 = vshll.u32 %v6495_v60, 16 }
 0x18a   :  { %v4651_v42 = vcombine.low %v1983_v15, %v1997_v3  ;;  %v6501_v25 = vld [vmem:[#allocation2 + $0x7c] sm:$0x1]  ;;  %v935_v0 = vor.u32 %v934_v16, %v931_v5  ;;  %v2001_v24 = vrot.slane %v1999_v32, 4  ;;  %v2004_v31 = vrot.slane %v2002_v34, 5  ;;  %v6505_v51 = vld [vmem:[#allocation2 + $0x80] sm:$0xf] }
 0x18b   :  { %v949_v50 = vor.u32 %v948_v49, %v945_v37  ;;  %v952_v46 = vshll.u32 %v6501_v25, 16  ;;  %v2013_v2 = vshrl.u32 %v1944_v12, 16  ;;  %v2016_v56 = vshll.u32 %v1944_v12, 16  ;;  %v6508_v21 = vld [vmem:[#allocation2 + $0x84] sm:$0x1] }
 0x18c   :  { %5237 = vmatprep.mubr.bf16.mxu1 %v4651_v42  ;;  %v936_v7 = vrot.slane %v935_v0, 4  ;;  %v2005_v40 = vor.u32 %v2004_v31, %v2001_v24  ;;  %v2022_v27 = vshll.u32 %v6499_v36, 16  ;;  %v6510_v15 = vld [vmem:[#allocation2 + $0x88] sm:$0xf]  ;;  %v2010_v19 = vrot.slane %v2008_v62, 5 }
 0x18d   :  { %v950_v9 = vrot.slane %v949_v50, 4  ;;  %v954_v33 = vrot.slane %v952_v46, 5  ;;  %v2015_v1 = vrot.slane %v2013_v2, 4  ;;  %v2018_v20 = vrot.slane %v2016_v56, 5  ;;  %v1946_v59 = vld [vmem:[#allocation2 + $0x28] sm:$0xf] }
 0x18e   :  { %v941_v8 = vsel %vm6111_vm2, %v936_v7, %v940_v47  ;;  %v2006_v29 = vrot.slane %v2005_v40, 4  ;;  %v6518_v16 = vld [vmem:[#allocation2 + $0x8c] sm:$0x1]  ;;  %v957_v12 = vshrl.u32 %v6505_v51, 16  ;;  %v960_v32 = vshll.u32 %v6505_v51, 16 }
 0x18f   :  { %v955_v5 = vsel %vm6111_vm2, %v950_v9, %v954_v33  ;;  %v966_v34 = vshll.u32 %v6508_v21, 16  ;;  %v2019_v37 = vor.u32 %v2018_v20, %v2015_v1  ;;  %v2024_v49 = vrot.slane %v2022_v27, 5  ;;  %v6524_v42 = vld [vmem:[#allocation2 + $0x2c] sm:$0x1]  ;;  %v1948_v46 = vld [vmem:[#allocation2 + $0x30] sm:$0xf] }
 0x190   :  { %v4529_v3 = vcombine.low %v941_v8, %v955_v5  ;;  %v971_v47 = vshrl.u32 %v6510_v15, 16  ;;  %v2011_v0 = vsel %vm6111_vm2, %v2006_v29, %v2010_v19  ;;  %v959_v24 = vrot.slane %v957_v12, 4  ;;  %v6530_v33 = vld [vmem:[#allocation2 + $0x34] sm:$0x1]  ;;  %v1950_v5 = vld [vmem:[#allocation2 + $0x38] sm:$0xf] }
 0x191   :  { %v962_v31 = vrot.slane %v960_v32, 5  ;;  %v974_v50 = vshll.u32 %v6510_v15, 16  ;;  %v2020_v62 = vrot.slane %v2019_v37, 4  ;;  %v980_v7 = vshll.u32 %v6518_v16, 16 }
 0x192   :  { %5121 = vmatprep.mubr.bf16.mxu0 %v4529_v3  ;;  %v973_v2 = vrot.slane %v971_v47, 4  ;;  %v2027_v40 = vshrl.u32 %v1946_v59, 16  ;;  %v968_v27 = vrot.slane %v966_v34, 5  ;;  %v2030_v1 = vshll.u32 %v1946_v59, 16  ;;  %v5713_v34 = vld [vmem:[%s7452_s4 + $0x148] sm:$0xff]  }
 0x193   :  { %v963_v56 = vor.u32 %v962_v31, %v959_v24  ;;  %v976_v9 = vrot.slane %v974_v50, 5  ;;  %v2025_v8 = vsel %vm6111_vm2, %v2020_v62, %v2024_v49  ;;  %v2036_v19 = vshll.u32 %v6524_v42, 16  ;;  %v6538_v47 = vld [vmem:[#allocation2 + $0x3c] sm:$0x1]  ;;  %v1952_v50 = vld [vmem:[#allocation2 + $0x40] sm:$0xf] }
 0x194   :  { %v2029_v29 = vrot.slane %v2027_v40, 4  ;;  %v2041_v20 = vshrl.u32 %v1948_v46, 16  ;;  %v4652_v12 = vcombine.low %v2011_v0, %v2025_v8  ;;  %v2032_v37 = vrot.slane %v2030_v1, 5  ;;  %v6544_v1 = vld [vmem:[#allocation2 + $0x44] sm:$0x1] }
 0x195   :  { %v964_v32 = vrot.slane %v963_v56, 4  ;;  %v977_v3 = vor.u32 %v976_v9, %v973_v2  ;;  %v982_v24 = vrot.slane %v980_v7, 5  ;;  %v2044_v31 = vshll.u32 %v1948_v46, 16 }
 0x196   :  { %v2043_v59 = vrot.slane %v2041_v20, 4  ;;  %v2050_v49 = vshll.u32 %v6530_v33, 16  ;;  %5238 = vmatmul.mubr.bf16.vlgmr.msra.gmra.mrb[0].mxu1 %v4652_v12  ;;  %v2033_v40 = vor.u32 %v2032_v37, %v2029_v29  ;;  %v2055_v2 = vshrl.u32 %v1950_v5, 16 }
 0x197   :  { %v969_v62 = vsel %vm6111_vm2, %v964_v32, %v968_v27  ;;  %v978_v0 = vrot.slane %v977_v3, 4  ;;  %5254 = vmatpush3.bf16.msra.mxu1 %v6398_v18  ;;  %v2038_v56 = vrot.slane %v2036_v19, 5  ;;  %v2046_v9 = vrot.slane %v2044_v31, 5  ;;  %v5715_v27 = vld [vmem:[%s7452_s4 + $0x150] sm:$0xff]   ;;  %v1954_v32 = vld [vmem:[#allocation2 + $0x58] sm:$0xf] }
 0x198   :  { %v2058_v8 = vshll.u32 %v1950_v5, 16  ;;  %v2064_v7 = vshll.u32 %v6538_v47, 16  ;;  %v2034_v20 = vrot.slane %v2033_v40, 4  ;;  %5255 = vmatprep.subr.bf16.mxu1 %v5713_v34  ;;  %v2057_v29 = vrot.slane %v2055_v2, 4  ;;  %v6552_v31 = vld [vmem:[#allocation2 + $0x5c] sm:$0x1] }
 0x199   :  { %v983_v46 = vsel %vm6111_vm2, %v978_v0, %v982_v24  ;;  %v2069_v12 = vshrl.u32 %v1952_v50, 16  ;;  %v2047_v19 = vor.u32 %v2046_v9, %v2043_v59  ;;  %v2052_v3 = vrot.slane %v2050_v49, 5  ;;  %v1956_v5 = vld [vmem:[#allocation2 + $0x60] sm:$0xf]  ;;  %v5719_v59 = vld [vmem:[%s7452_s4 + $0x158] sm:$0xff]  }
 0x19a   :  { %v4530_v18 = vcombine.low %v969_v62, %v983_v46  ;;  %v2060_v37 = vrot.slane %v2058_v8, 5  ;;  %v2039_v10 = vsel %vm6111_vm2, %v2034_v20, %v2038_v56  ;;  %v2072_v0 = vshll.u32 %v1952_v50, 16  ;;  %v1958_v49 = vld [vmem:[#allocation2 + $0x68] sm:$0xf]  ;;  %v6563_v9 = vld [vmem:[#allocation2 + $0x64] sm:$0x1] }
 0x19b   :  { %v2071_v24 = vrot.slane %v2069_v12, 4  ;;  %v2078_v40 = vshll.u32 %v6544_v1, 16  ;;  %v2048_v53 = vrot.slane %v2047_v19, 4  ;;  %5256 = vmatpush3.bf16.msra.mxu1 %v5713_v34  ;;  %v2083_v17 = vshrl.u32 %v1954_v32, 16 }
 0x19c   :  { %5122 = vmatmul.mubr.bf16.gmra.mrb[28].mxu0 %v4530_v18  ;;  %v2061_v2 = vor.u32 %v2060_v37, %v2057_v29  ;;  %v2086_v22 = vshll.u32 %v1954_v32, 16  ;;  %v7471_v62 = vcombine.low %v6095_v11, %v6231_v13  ;;  %5257 = vmatprep.subr.bf16.mxu1 %v5715_v27  ;;  %v2066_v56 = vrot.slane %v2064_v7, 5  ;;  %v6568_v32 = vld [vmem:[#allocation2 + $0x6c] sm:$0x1]  ;;  %v1960_v37 = vld [vmem:[#allocation2 + $0x70] sm:$0xf] }
 0x19d   :  { %v2074_v50 = vrot.slane %v2072_v0, 5  ;;  %v2092_v8 = vshll.u32 %v6552_v31, 16  ;;  %v2097_v34 = vshrl.u32 %v1956_v5, 16  ;;  %v2053_v46 = vsel %vm6111_vm2, %v2048_v53, %v2052_v3 }
 0x19e   :  { %5141 = vmatprep.mubr.bf16.mxu0 %v7471_v62  ;;  %v2062_v20 = vrot.slane %v2061_v2, 4  ;;  %v2085_v29 = vrot.slane %v2083_v17, 4  ;;  %v2088_v12 = vrot.slane %v2086_v22, 5  ;;  %v4653_v18 = vcombine.low %v2039_v10, %v2053_v46  ;;  %v5720_v17 = vld [vmem:[%s7452_s4 + $0x88] sm:$0xff]   ;;  %v6576_v10 = vld [vmem:[#allocation2 + $0x74] sm:$0x1] }
 0x19f   :  { %v2075_v19 = vor.u32 %v2074_v50, %v2071_v24  ;;  %v2080_v11 = vrot.slane %v2078_v40, 5  ;;  %v2099_v13 = vrot.slane %v2097_v34, 4  ;;  %5258 = vmatpush3.bf16.msra.mxu1 %v5715_v27  ;;  %v2100_v62 = vshll.u32 %v1956_v5, 16  ;;  %v1962_v5 = vld [vmem:[#allocation2 + $0x78] sm:$0xf] }
 0x1a0   :  { %v2067_v7 = vsel %vm6111_vm2, %v2062_v20, %v2066_v56  ;;  %v2089_v0 = vor.u32 %v2088_v12, %v2085_v29  ;;  %v2106_v26 = vshll.u32 %v6563_v9, 16  ;;  %5241 = vmatprep.mubr.bf16.mxu1 %v4653_v18  ;;  %5259 = vmatprep.subr.bf16.mxu1 %v5719_v59  ;;  %v2111_v53 = vshrl.u32 %v1958_v49, 16  ;;  %v6579_v50 = vld [vmem:[#allocation2 + $0x80] sm:$0xf] }
 0x1a1   :  { %v2076_v22 = vrot.slane %v2075_v19, 4  ;;  %v2114_v3 = vshll.u32 %v1958_v49, 16  ;;  %v2120_v24 = vshll.u32 %v6568_v32, 16  ;;  %v2094_v2 = vrot.slane %v2092_v8, 5  ;;  %v5721_v20 = vld [vmem:[%s7452_s4 + $0x160] sm:$0xff]  }
 0x1a2   :  { %v2090_v40 = vrot.slane %v2089_v0, 4  ;;  %v2102_v27 = vrot.slane %v2100_v62, 5  ;;  %v2125_v56 = vshrl.u32 %v1960_v37, 16  ;;  %v2108_v46 = vrot.slane %v2106_v26, 5 }
 0x1a3   :  { %v2081_v34 = vsel %vm6111_vm2, %v2076_v22, %v2080_v11  ;;  %v2113_v29 = vrot.slane %v2111_v53, 4  ;;  %v2116_v12 = vrot.slane %v2114_v3, 5  ;;  %v7472_v18 = vcombine.low %v6256_v39, %v6260_v43  ;;  %5260 = vmatpush3.bf16.msra.mxu1 %v5719_v59  ;;  %v6593_v11 = vld [vmem:[#allocation2 + $0x7c] sm:$0x1]  ;;  %v6600_v43 = vld [vmem:[#allocation2 + $0x84] sm:$0x1] }
 0x1a4   :  { %v4654_v49 = vcombine.low %v2067_v7, %v2081_v34  ;;  %v2095_v8 = vsel %vm6111_vm2, %v2090_v40, %v2094_v2  ;;  %v2103_v19 = vor.u32 %v2102_v27, %v2099_v13  ;;  %v6591_v0 = vrot.slane %v2120_v24, 5  ;;  %v5725_v59 = vld [vmem:[%s7452_s4 + $0x168] sm:$0xff]   ;;  %v706_v53 = vld [vmem:[#allocation2 + $0x94] sm:$0x1]  ;;  %5261 = vmatprep.subr.bf16.mxu1 %v5721_v20 }
 0x1a5   :  { %5142 = vmatmul.mubr.bf16.vlgmr.msra.gmra.mrb[16].mxu0 %v7472_v18  ;;  %v7473_v26 = vcombine.low %v6292_v54, %v6310_v30  ;;  %v2117_v7 = vor.u32 %v2116_v12, %v2113_v29  ;;  %v2127_v62 = vrot.slane %v2125_v56, 4  ;;  %v2128_v22 = vshll.u32 %v1960_v37, 16  ;;  %v5723_v30 = vld [vmem:[%s7452_s4 + $0x90] sm:$0xff]   ;;  %v1966_v34 = vld [vmem:[#allocation2 + $0x88] sm:$0xf] }
 0x1a6   :  { %5158 = vmatpush3.bf16.msra.mxu0 %v6467_v58  ;;  %v2134_v39 = vshll.u32 %v6576_v10, 16  ;;  %5242 = vmatmul.mubr.bf16.gmra.mrb[4].mxu1 %v4654_v49  ;;  %v2104_v13 = vrot.slane %v2103_v19, 4  ;;  %v4542_v54 = vcombine.low %v6322_v4, %v6344_v48  ;;  %v2139_v58 = vshrl.u32 %v1962_v5, 16 }
 0x1a7   :  { %5145 = vmatprep.mubr.bf16.mxu0 %v7473_v26  ;;  %5159 = vmatprep.subr.bf16.mxu0 %v5720_v17  ;;  %v2142_v37 = vshll.u32 %v1962_v5, 16  ;;  %v2118_v3 = vrot.slane %v2117_v7, 4  ;;  %v2130_v24 = vrot.slane %v2128_v22, 5  ;;  %v2148_v40 = vshll.u32 %v6593_v11, 16  ;;  %v5726_v5 = vld [vmem:[%s7452_s4 + $0x98] sm:$0xff]  }
 0x1a8   :  { %v2153_v2 = vshrl.u32 %v6579_v50, 16  ;;  %v2109_v27 = vsel %vm6111_vm2, %v2104_v13, %v2108_v46  ;;  %v2136_v4 = vrot.slane %v2134_v39, 5  ;;  %5262 = vmatpush3.bf16.msra.mxu1 %v5721_v20  ;;  %v2141_v48 = vrot.slane %v2139_v58, 4  ;;  %v5727_v46 = vld [vmem:[%s7452_s4 + $0x170] sm:$0xff]   ;;  %v6630_v58 = vld [vmem:[#allocation2 + $0x8] sm:$0xe] }
 0x1a9   :  { %v2144_v56 = vrot.slane %v2142_v37, 5  ;;  %v4655_v29 = vcombine.low %v2095_v8, %v2109_v27  ;;  %v2123_v12 = vsel %vm6111_vm2, %v2118_v3, %v6591_v0  ;;  %v2131_v49 = vor.u32 %v2130_v24, %v2127_v62  ;;  %5263 = vmatprep.subr.bf16.mxu1 %v5725_v59  ;;  %v1968_v20 = vld [vmem:[#allocation2 + $0x90] sm:$0xf] }
 0x1aa   :  { %5160 = vmatpush3.bf16.msra.mxu0 %v5720_v17  ;;  %v2155_v18 = vrot.slane %v2153_v2, 4  ;;  %v2156_v26 = vshll.u32 %v6579_v50, 16  ;;  %v2162_v7 = vshll.u32 %v6600_v43, 16  ;;  %v5786_v8 = vld [vmem:[#allocation2 + $0x50] sm:$0xf]  ;;  %v7474_v0 = vrot.slane %v6414_v6, 4 }
 0x1ab   :  { %5161 = vmatprep.subr.bf16.mxu0 %v5723_v30  ;;  %v2145_v19 = vor.u32 %v2144_v56, %v2141_v48  ;;  %v4543_v17 = vcombine.low %v5786_v8, %v6368_v23  ;;  %5245 = vmatprep.mubr.bf16.mxu1 %v4655_v29  ;;  %v2132_v22 = vrot.slane %v2131_v49, 4  ;;  %v2167_v39 = vshrl.u32 %v1966_v34, 16  ;;  %v6632_v50 = vld [vmem:[#allocation2 + $0x8c] sm:$0x1]  ;;  %v5731_v48 = vld [vmem:[%s7452_s4 + $0x178] sm:$0xff]  }
 0x1ac   :  { %v707_v62 = vsel %vm6196_vm8, %v7474_v0, %v706_v53  ;;  %v2170_v13 = vshll.u32 %v1966_v34, 16  ;;  %v2158_v3 = vrot.slane %v2156_v26, 5  ;;  %5264 = vmatpush3.bf16.msra.mxu1 %v5725_v59  ;;  %v2181_v38 = vshrl.u32 %v1968_v20, 16  ;;  %v5729_v53 = vld [vmem:[%s7452_s4 + $0xa0] sm:$0xff]   ;;  %v2405_v59 = vld [vmem:[#allocation2 + $0x10] sm:$0xe] }
 0x1ad   :  { %5146 = vmatmul.mubr.bf16.gmra.mrb[20].mxu0 %v4542_v54  ;;  %v2146_v37 = vrot.slane %v2145_v19, 4  ;;  %708 = vst [vmem:[#allocation2 + $0x94] sm:$0x1] %v707_v62  ;;  %v2137_v23 = vsel %vm6111_vm2, %v2132_v22, %v2136_v4  ;;  %v2169_v6 = vrot.slane %v2167_v39, 4  ;;  %v2150_v54 = vrot.slane %v2148_v40, 5  ;;  %5265 = vmatprep.subr.bf16.mxu1 %v5727_v46 }
 0x1ae   :  { %5149 = vmatprep.mubr.bf16.mxu0 %v4543_v17  ;;  %5162 = vmatpush3.bf16.msra.mxu0 %v5723_v30  ;;  %v2172_v24 = vrot.slane %v2170_v13, 5  ;;  %v4656_v2 = vcombine.low %v2123_v12, %v2137_v23  ;;  %v2159_v27 = vor.u32 %v2158_v3, %v2155_v18  ;;  %v1371_v4 = vld [vmem:[#allocation2] sm:$0xe]  ;;  %v2164_v56 = vrot.slane %v2162_v7, 5  ;;  %v2406_v17 = vld [vmem:[#allocation2 + $0x18] sm:$0xe] }
 0x1af   :  { %5163 = vmatprep.subr.bf16.mxu0 %v5726_v5  ;;  %v2183_v34 = vrot.slane %v2181_v38, 4  ;;  %v2184_v29 = vshll.u32 %v1968_v20, 16  ;;  %v2151_v49 = vsel %vm6111_vm2, %v2146_v37, %v2150_v54  ;;  %v2176_v40 = vshll.u32 %v6632_v50, 16  ;;  %v1372_v38 = vld [vmem:[#allocation2 + $0x8] sm:$0xe] }
 0x1b0   :  { %v2173_v30 = vor.u32 %v2172_v24, %v2169_v6  ;;  %5246 = vmatmul.mubr.bf16.gmra.mrb[8].mxu1 %v4656_v2  ;;  %v2160_v19 = vrot.slane %v2159_v27, 4  ;;  %v4667_v12 = vrot.slane %v6630_v58, 9  ;;  %v2454_v26 = vrot.slane %v6436_v52, 5  ;;  %v5732_v52 = vld [vmem:[%s7452_s4 + $0xa8] sm:$0xff]   ;;  %v2407_v58 = vld [vmem:[#allocation2 + $0x20] sm:$0xe] }
 0x1b1   :  { %v2186_v18 = vrot.slane %v2184_v29, 5  ;;  %5266 = vmatpush3.bf16.msra.mxu1 %v5727_v46  ;;  %v4668_v8 = vrot.slane %v2405_v59, 9  ;;  %v2458_v7 = vrot.slane %v6452_v14, 5  ;;  %v4544_v0 = vcombine.low %v6403_v61, %v6416_v44  ;;  %v5787_v14 = vld [vmem:[#allocation2 + $0x4] sm:$0x1] }
 0x1b2   :  { %5164 = vmatpush3.bf16.msra.mxu0 %v5726_v5  ;;  %v2165_v20 = vsel %vm6111_vm2, %v2160_v19, %v2164_v56  ;;  %v2174_v22 = vrot.slane %v2173_v30, 4  ;;  %5267 = vmatprep.subr.bf16.mxu1 %v5731_v48  ;;  %v1424_v46 = vrot.slane %v5787_v14, 5  ;;  %v4545_v61 = vcombine.low %v6462_v41, %v6473_v57  ;;  %v6668_v44 = vld [vmem:[%s7452_s4 + $0x180] sm:$0xff]   ;;  %v5735_v56 = vld [vmem:[%s7452_s4 + $0xb0] sm:$0xff]  }
 0x1b3   :  { %5165 = vmatprep.subr.bf16.mxu0 %v5729_v53  ;;  %v4657_v62 = vcombine.low %v2151_v49, %v2165_v20  ;;  %v2187_v13 = vor.u32 %v2186_v18, %v2183_v34  ;;  %v4555_v37 = vrot.slane %v1371_v4, 9  ;;  %v2178_v3 = vrot.slane %v2176_v40, 5  ;;  %v2409_v30 = vld [vmem:[#allocation2 + $0x30] sm:$0xe]  ;;  %v5788_v49 = vld [vmem:[#allocation2 + $0xc] sm:$0x1] }
 0x1b4   :  { %v6661_v39 = vld [vmem:[#allocation2 + $0x94] sm:$0x1]  ;;  %v4669_v6 = vrot.slane %v2406_v17, 9  ;;  %v2462_v24 = vrot.slane %v6495_v60, 5  ;;  %v2455_v41 = vsel %vm6654_vm11, %v4667_v12, %v2454_v26  ;;  %v2459_v57 = vsel %vm6654_vm11, %v4668_v8, %v2458_v7  ;;  %v2408_v60 = vld [vmem:[#allocation2 + $0x28] sm:$0xe] }
 0x1b5   :  { %v2190_v23 = vshll.u32 %v6661_v39, 16  ;;  %5150 = vmatmul.mubr.bf16.gmra.mrb[24].mxu0 %v4544_v0  ;;  %5249 = vmatprep.mubr.bf16.mxu1 %v4657_v62  ;;  %v2188_v2 = vrot.slane %v2187_v13, 4  ;;  %v2179_v54 = vsel %vm6111_vm2, %v2174_v22, %v2178_v3  ;;  %v4670_v59 = vrot.slane %v2407_v58, 9  ;;  %v1373_v12 = vld [vmem:[#allocation2 + $0x10] sm:$0xe] }
 0x1b6   :  { %5153 = vmatprep.mubr.bf16.mxu0 %v4545_v61  ;;  %5166 = vmatpush3.bf16.msra.mxu0 %v5729_v53  ;;  %v2466_v4 = vrot.slane %v6499_v36, 5  ;;  %v1425_v34 = vsel %vm6654_vm11, %v4555_v37, %v1424_v46  ;;  %v4556_v29 = vrot.slane %v1372_v38, 9  ;;  %v1428_v19 = vrot.slane %v5788_v49, 5  ;;  %v1374_v18 = vld [vmem:[#allocation2 + $0x18] sm:$0xe] }
 0x1b7   :  { %v2192_v27 = vrot.slane %v2190_v23, 5  ;;  %5268 = vmatpush3.bf16.msra.mxu1 %v5731_v48  ;;  %5167 = vmatprep.subr.bf16.mxu0 %v5732_v52  ;;  %v4699_v48 = vcombine.low %v2455_v41, %v2459_v57  ;;  %v2463_v36 = vsel %vm6654_vm11, %v4669_v6, %v2462_v24  ;;  %v4546_v40 = vcombine.low %v6505_v51, %v6510_v15  ;;  %v5737_v51 = vld [vmem:[%s7452_s4 + $0xb8] sm:$0xff]   ;;  %v1375_v58 = vld [vmem:[#allocation2 + $0x20] sm:$0xe]  ;;  %v1376_v37 = vld [vmem:[#allocation2 + $0x28] sm:$0xe] }
 0x1b8   :  { %5285 = vmatprep.subr.bf16.mxu1 %v6668_v44  ;;  %v4671_v8 = vrot.slane %v2408_v60, 9  ;;  %v2470_v7 = vrot.slane %v6524_v42, 5  ;;  %v1429_v17 = vsel %vm6654_vm11, %v4556_v29, %v1428_v19  ;;  %v2467_v20 = vsel %vm6654_vm11, %v4670_v59, %v2466_v4  ;;  %v2410_v15 = vld [vmem:[#allocation2 + $0x38] sm:$0xe]  ;;  %v5789_v42 = vld [vmem:[#allocation2 + $0x14] sm:$0x1] }
 0x1b9   :  { %v2193_v53 = vsel %vm6111_vm2, %v2188_v2, %v2192_v27  ;;  %v4672_v22 = vrot.slane %v2409_v30, 9  ;;  %v2474_v0 = vrot.slane %v6530_v33, 5  ;;  %v4587_v14 = vcombine.low %v1425_v34, %v1429_v17  ;;  %v5790_v61 = vld [vmem:[#allocation2 + $0x1c] sm:$0x1]  ;;  %v2411_v23 = vld [vmem:[#allocation2 + $0x40] sm:$0xe] }
 0x1ba   :  { %v4658_v26 = vcombine.low %v2179_v54, %v2193_v53  ;;  %5168 = vmatpush3.bf16.msra.mxu0 %v5732_v52  ;;  %v4557_v46 = vrot.slane %v1373_v12, 9  ;;  %v1432_v62 = vrot.slane %v5789_v42, 5  ;;  %v4558_v13 = vrot.slane %v1374_v18, 9  ;;  %v2412_v24 = vld [vmem:[#allocation2 + $0x58] sm:$0xe]  ;;  %v5738_v42 = vld [vmem:[%s7452_s4 + $0x190] sm:$0xff]  }
 0x1bb   :  { %5169 = vmatprep.subr.bf16.mxu0 %v5735_v56  ;;  %v1436_v52 = vrot.slane %v5790_v61, 5  ;;  %v4700_v3 = vcombine.low %v2463_v36, %v2467_v20  ;;  %v2471_v33 = vsel %vm6654_vm11, %v4671_v8, %v2470_v7  ;;  %v4673_v6 = vrot.slane %v2410_v15, 9  ;;  %v2413_v41 = vld [vmem:[#allocation2 + $0x60] sm:$0xe]  ;;  %v5791_v54 = vld [vmem:[#allocation2 + $0x24] sm:$0x1] }
 0x1bc   :  { %5250 = vmatmul.mubr.bf16.gmra.mrb[12].mxu1 %v4658_v26  ;;  %v2475_v38 = vsel %vm6654_vm11, %v4672_v22, %v2474_v0  ;;  %v2478_v2 = vrot.slane %v6538_v47, 5  ;;  %v4559_v57 = vrot.slane %v1375_v58, 9  ;;  %v1440_v27 = vrot.slane %v5791_v54, 5  ;;  %v5792_v30 = vld [vmem:[#allocation2 + $0x2c] sm:$0x1] }
 0x1bd   :  { %5269 = vmatprep.mubr.bf16.mxu1 %v4699_v48  ;;  %5154 = vmatmul.mubr.bf16.gmra.mrb[28].mxu0 %v4546_v40  ;;  %v1433_v59 = vsel %vm6654_vm11, %v4557_v46, %v1432_v62  ;;  %v1437_v4 = vsel %vm6654_vm11, %v4558_v13, %v1436_v52  ;;  %v4560_v60 = vrot.slane %v1376_v37, 9  ;;  %v1444_v34 = vrot.slane %v5792_v30, 5  ;;  %v1377_v29 = vld [vmem:[#allocation2 + $0x30] sm:$0xe]  ;;  %v1378_v53 = vld [vmem:[#allocation2 + $0x38] sm:$0xe] }
 0x1be   :  { %5173 = vmatprep.mubr.bf16.mxu0 %v4587_v14  ;;  %5170 = vmatpush3.bf16.msra.mxu0 %v5735_v56  ;;  %v4674_v49 = vrot.slane %v2411_v23, 9  ;;  %v2482_v56 = vrot.slane %v6544_v1, 5  ;;  %v4675_v19 = vrot.slane %v2412_v24, 9  ;;  %v2486_v47 = vrot.slane %v6552_v31, 5  ;;  %v5736_v48 = vld [vmem:[%s7452_s4 + $0x188] sm:$0xff]  }
 0x1bf   :  { %5171 = vmatprep.subr.bf16.mxu0 %v5737_v51  ;;  %v4676_v36 = vrot.slane %v2413_v41, 9  ;;  %v2490_v40 = vrot.slane %v6563_v9, 5  ;;  %v1441_v12 = vsel %vm6654_vm11, %v4559_v57, %v1440_v27  ;;  %v1445_v18 = vsel %vm6654_vm11, %v4560_v60, %v1444_v34  ;;  %v1379_v8 = vld [vmem:[#allocation2 + $0x50] sm:$0xe]  ;;  %v5793_v7 = vld [vmem:[#allocation2 + $0x34] sm:$0x1] }
 0x1c0   :  { %v4701_v26 = vcombine.low %v2471_v33, %v2475_v38  ;;  %v4588_v1 = vcombine.low %v1433_v59, %v1437_v4  ;;  %v4561_v31 = vrot.slane %v1377_v29, 9  ;;  %v1448_v17 = vrot.slane %v5793_v7, 5  ;;  %v5794_v22 = vld [vmem:[#allocation2 + $0x3c] sm:$0x1]  ;;  %v1380_v14 = vld [vmem:[#allocation2 + $0x58] sm:$0xe] }
 0x1c1   :  { %v4562_v20 = vrot.slane %v1378_v53, 9  ;;  %v1452_v0 = vrot.slane %v5794_v22, 5  ;;  %v2479_v9 = vsel %vm6654_vm11, %v4673_v6, %v2478_v2  ;;  %v2483_v15 = vsel %vm6654_vm11, %v4674_v49, %v2482_v56  ;;  %v2414_v46 = vld [vmem:[#allocation2 + $0x68] sm:$0xe]  ;;  %v2415_v13 = vld [vmem:[#allocation2 + $0x70] sm:$0xe] }
 0x1c2   :  { %5172 = vmatpush3.bf16.msra.mxu0 %v5737_v51  ;;  %v4589_v51 = vcombine.low %v1441_v12, %v1445_v18  ;;  %v2487_v62 = vsel %vm6654_vm11, %v4675_v19, %v2486_v47  ;;  %v4563_v61 = vrot.slane %v1379_v8, 9  ;;  %v5795_v52 = vld [vmem:[#allocation2 + $0x54] sm:$0x1]  ;;  %v2416_v37 = vld [vmem:[#allocation2 + $0x78] sm:$0xe]  ;;  %v4564_v33 = vrot.slane %v1380_v14, 9 }
 0x1c3   :  { %v1456_v58 = vrot.slane %v5795_v52, 5  ;;  %v5796_v23 = vld [vmem:[#allocation2 + $0x5c] sm:$0x1]  ;;  %v4702_v24 = vcombine.low %v2479_v9, %v2483_v15  ;;  %v4677_v38 = vrot.slane %v2414_v46, 9  ;;  %v1449_v2 = vsel %vm6654_vm11, %v4561_v31, %v1448_v17  ;;  %v1381_v57 = vld [vmem:[#allocation2 + $0x60] sm:$0xe] }
 0x1c4   :  { %5270 = vmatmul.mubr.bf16.vlgmr.msra.gmra.mrb[0].mxu1 %v4700_v3  ;;  %v2417_v3 = vld [vmem:[#allocation2 + $0x80] sm:$0xe]  ;;  %v1460_v6 = vrot.slane %v5796_v23, 5  ;;  %v1453_v41 = vsel %vm6654_vm11, %v4562_v20, %v1452_v0  ;;  %v1382_v54 = vld [vmem:[#allocation2 + $0x68] sm:$0xe]  ;;  %v5739_v59 = vld [vmem:[%s7452_s4 + $0x198] sm:$0xff]  }
 0x1c5   :  { %5286 = vmatpush3.bf16.msra.mxu1 %v6668_v44  ;;  %5273 = vmatprep.mubr.bf16.mxu1 %v4701_v26  ;;  %v2491_v44 = vsel %vm6654_vm11, %v4676_v36, %v2490_v40  ;;  %v2494_v4 = vrot.slane %v6568_v32, 5  ;;  %v1457_v60 = vsel %vm6654_vm11, %v4563_v61, %v1456_v58  ;;  %v1383_v34 = vld [vmem:[#allocation2 + $0x70] sm:$0xe]  ;;  %v1384_v29 = vld [vmem:[#allocation2 + $0x78] sm:$0xe]  ;;  %v4678_v49 = vrot.slane %v2415_v13, 9 }
 0x1c6   :  { %5287 = vmatprep.subr.bf16.mxu1 %v5736_v48  ;;  %5174 = vmatmul.mubr.bf16.vlgmr.msra.gmra.mrb[16].mxu0 %v4588_v1  ;;  %v4703_v27 = vcombine.low %v2487_v62, %v2491_v44  ;;  %v1461_v30 = vsel %vm6654_vm11, %v4564_v33, %v1460_v6  ;;  %v2498_v56 = vrot.slane %v6576_v10, 5  ;;  %v4679_v19 = vrot.slane %v2416_v37, 9  ;;  %v1385_v53 = vld [vmem:[#allocation2 + $0x80] sm:$0xe]  ;;  %v1386_v12 = vld [vmem:[#allocation2 + $0x88] sm:$0xe] }
 0x1c7   :  { %5177 = vmatprep.mubr.bf16.mxu0 %v4589_v51  ;;  %v2502_v47 = vrot.slane %v6593_v11, 5  ;;  %v4680_v36 = vrot.slane %v2417_v3, 9  ;;  %v2506_v32 = vrot.slane %v6600_v43, 5  ;;  %v4565_v40 = vrot.slane %v1381_v57, 9  ;;  %v5740_v43 = vld [vmem:[%s7452_s4 + $0x1a0] sm:$0xff]   ;;  %v5741_v62 = vld [vmem:[%s7452_s4 + $0x1a8] sm:$0xff]  }
 0x1c8   :  { %v4591_v18 = vcombine.low %v1457_v60, %v1461_v30  ;;  %v1464_v26 = vrot.slane %v6440_v28, 5  ;;  %v4566_v1 = vrot.slane %v1382_v54, 9  ;;  %v1468_v8 = vrot.slane %v6442_v63, 5  ;;  %v2419_v9 = vld [vmem:[#allocation2 + $0x90] sm:$0xe] }
 0x1c9   :  { %5288 = vmatpush3.bf16.msra.mxu1 %v5736_v48  ;;  %v4590_v48 = vcombine.low %v1449_v2, %v1453_v41  ;;  %v4567_v10 = vrot.slane %v1383_v34, 9  ;;  %v1472_v31 = vrot.slane %v6483_v55, 5  ;;  %v4569_v11 = vrot.slane %v1385_v53, 9  ;;  %v5742_v6 = vld [vmem:[%s7452_s4 + $0x1b0] sm:$0xff]   ;;  %v5745_v41 = vld [vmem:[%s7452_s4 + $0x1c0] sm:$0xff]  }
 0x1ca   :  { %5289 = vmatprep.subr.bf16.mxu1 %v5738_v42  ;;  %v1480_v7 = vrot.slane %v6508_v21, 5  ;;  %v4568_v17 = vrot.slane %v1384_v29, 9  ;;  %v1476_v28 = vrot.slane %v6501_v25, 5  ;;  %v4570_v20 = vrot.slane %v1386_v12, 9  ;;  %v2418_v21 = vld [vmem:[#allocation2 + $0x88] sm:$0xe] }
 0x1cb   :  { %v1484_v63 = vrot.slane %v6518_v16, 5  ;;  %v2495_v22 = vsel %vm6654_vm11, %v4677_v38, %v2494_v4  ;;  %v2499_v55 = vsel %vm6654_vm11, %v4678_v49, %v2498_v56  ;;  %v2503_v14 = vsel %vm6654_vm11, %v4679_v19, %v2502_v47  ;;  %v5744_v38 = vld [vmem:[%s7452_s4 + $0x1b8] sm:$0xff]   ;;  %v2969_v57 = vld [vmem:[#allocation2 + $0x10] sm:$0xf]  ;;  %v5746_v54 = vld [vmem:[#allocation2 + $0x20] ss:$8 sps:$4 sm:$0xff]  }
 0x1cc   :  { %5274 = vmatmul.mubr.bf16.gmra.mrb[4].mxu1 %v4702_v24  ;;  %v1481_v0 = vsel %vm6654_vm11, %v4569_v11, %v1480_v7  ;;  %v2507_v25 = vsel %vm6654_vm11, %v4680_v36, %v2506_v32  ;;  %v1465_v15 = vsel %vm6654_vm11, %v4565_v40, %v1464_v26  ;;  %v1469_v51 = vsel %vm6654_vm11, %v4566_v1, %v1468_v8  ;;  %v5743_v2 = vld [vmem:[#allocation2 + $0x10] ss:$8 sps:$4 sm:$0xff]   ;;  %v2973_v34 = vld [vmem:[#allocation2 + $0x20] sm:$0xf]  ;;  %v2975_v29 = vld [vmem:[#allocation2 + $0x28] sm:$0xf] }
 0x1cd   :  { %5290 = vmatpush3.bf16.msra.mxu1 %v5738_v42  ;;  %5277 = vmatprep.mubr.bf16.mxu1 %v4703_v27  ;;  %v1485_v16 = vsel %vm6654_vm11, %v4570_v20, %v1484_v63  ;;  %v4704_v42 = vcombine.low %v2495_v22, %v2499_v55  ;;  %v4681_v44 = vrot.slane %v2418_v21, 9  ;;  %v1473_v13 = vsel %vm6654_vm11, %v4567_v10, %v1472_v31  ;;  %v5748_v27 = vld [vmem:[%s7452_s4 + $0x1c8] sm:$0xff]   ;;  %v2971_v4 = vld [vmem:[#allocation2 + $0x18] sm:$0xf]  ;;  %v5749_v49 = vld [vmem:[%s7452_s4 + $0x1d0] sm:$0xff]  }
 0x1ce   :  { %5291 = vmatprep.subr.bf16.mxu1 %v5739_v59  ;;  %5178 = vmatmul.mubr.bf16.gmra.mrb[20].mxu0 %v4590_v48  ;;  %v4594_v46 = vcombine.low %v1481_v0, %v1485_v16  ;;  %v1477_v61 = vsel %vm6654_vm11, %v4568_v17, %v1476_v28  ;;  %v4705_v52 = vcombine.low %v2503_v14, %v2507_v25  ;;  %v2510_v58 = vrot.slane %v6632_v50, 5  ;;  %v5750_v12 = vld [vmem:[#allocation2 + $0x40] ss:$8 sps:$4 sm:$0xff]   ;;  %v2977_v26 = vld [vmem:[#allocation2 + $0x30] sm:$0xf] }
 0x1cf   :  { %5181 = vmatprep.mubr.bf16.mxu0 %v4591_v18  ;;  %v4682_v37 = vrot.slane %v2419_v9, 9  ;;  %v2514_v3 = vrot.slane %v6661_v39, 5  ;;  %v4592_v33 = vcombine.low %v1465_v15, %v1469_v51  ;;  %v4593_v23 = vcombine.low %v1473_v13, %v1477_v61  ;;  %v5752_v18 = vld [vmem:[%s7452_s4 + $0x1d8] sm:$0xff]   ;;  %v5751_v1 = vld [vmem:[#allocation2 + $0x60] ss:$8 sps:$4 sm:$0xff]  }
 0x1d0   :  { %v2511_v24 = vsel %vm6654_vm11, %v4681_v44, %v2510_v58  ;;  %v3002_v60 = vshrl.u32 %v2969_v57, 16  ;;  %v3005_v30 = vshll.u32 %v2969_v57, 16  ;;  %v3016_v56 = vshrl.u32 %v2971_v4, 16  ;;  %v6802_v8 = vld [vmem:[#allocation2 + $0x14] sm:$0x1]  ;;  %v5753_v14 = vld [vmem:[%s7452_s4 + $0x1e0] sm:$0xff]  }
 0x1d1   :  { %5292 = vmatpush3.bf16.msra.mxu1 %v5739_v59  ;;  %v2515_v50 = vsel %vm6654_vm11, %v4682_v37, %v2514_v3  ;;  %v5747_v59 = vld [vmem:[#allocation2 + $0x30] ss:$8 sps:$4 sm:$0xff]   ;;  %v3019_v19 = vshll.u32 %v2971_v4, 16  ;;  %v3030_v48 = vshrl.u32 %v2973_v34, 16  ;;  %v3033_v36 = vshll.u32 %v2973_v34, 16  ;;  %v5756_v3 = vld [vmem:[%s7452_s4 + $0x1e8] sm:$0xff]  }
 0x1d2   :  { %5293 = vmatprep.subr.bf16.mxu1 %v5740_v43  ;;  %v4706_v39 = vcombine.low %v2511_v24, %v2515_v50  ;;  %v3004_v47 = vrot.slane %v3002_v60, 4  ;;  %v3007_v53 = vrot.slane %v3005_v30, 5  ;;  %v3044_v32 = vshrl.u32 %v2975_v29, 16  ;;  %v6804_v11 = vld [vmem:[#allocation2 + $0x1c] sm:$0x1] }
 0x1d3   :  { %v3047_v40 = vshll.u32 %v2975_v29, 16  ;;  %v3018_v10 = vrot.slane %v3016_v56, 4  ;;  %v3021_v31 = vrot.slane %v3019_v19, 5  ;;  %v3032_v17 = vrot.slane %v3030_v48, 4  ;;  %v2979_v22 = vld [vmem:[#allocation2 + $0x38] sm:$0xf] }
 0x1d4   :  { %5278 = vmatmul.mubr.bf16.gmra.mrb[8].mxu1 %v4704_v42  ;;  %v3008_v7 = vor.u32 %v3007_v53, %v3004_v47  ;;  %v3035_v28 = vrot.slane %v3033_v36, 5  ;;  %v3046_v20 = vrot.slane %v3044_v32, 4  ;;  %v3058_v55 = vshrl.u32 %v2977_v26, 16  ;;  %v6816_v51 = vld [vmem:[#allocation2 + $0x2c] sm:$0x1]  ;;  %v5757_v53 = vld [vmem:[%s7452_s4 + $0x1f0] sm:$0xff]  }
 0x1d5   :  { %5294 = vmatpush3.bf16.msra.mxu1 %v5740_v43  ;;  %5281 = vmatprep.mubr.bf16.mxu1 %v4705_v52  ;;  %v6806_v43 = vld [vmem:[#allocation2 + $0x24] sm:$0x1]  ;;  %v3049_v63 = vrot.slane %v3047_v40, 5  ;;  %v3061_v21 = vshll.u32 %v2977_v26, 16  ;;  %v3011_v0 = vshll.u32 %v6802_v8, 16  ;;  %v3022_v25 = vor.u32 %v3021_v31, %v3018_v10 }
 0x1d6   :  { %5295 = vmatprep.subr.bf16.mxu1 %v5741_v62  ;;  %5182 = vmatmul.mubr.bf16.gmra.mrb[24].mxu0 %v4592_v33  ;;  %v3025_v9 = vshll.u32 %v6804_v11, 16  ;;  %v3039_v16 = vshll.u32 %v6806_v43, 16  ;;  %v6814_v15 = vrot.slane %v3008_v7, 4  ;;  %v3075_v42 = vshll.u32 %v2979_v22, 16  ;;  %v2981_v58 = vld [vmem:[#allocation2 + $0x40] sm:$0xf] }
 0x1d7   :  { %5185 = vmatprep.mubr.bf16.mxu0 %v4593_v23  ;;  %v3036_v44 = vor.u32 %v3035_v28, %v3032_v17  ;;  %v3050_v13 = vor.u32 %v3049_v63, %v3046_v20  ;;  %v3060_v61 = vrot.slane %v3058_v55, 4  ;;  %v3063_v52 = vrot.slane %v3061_v21, 5  ;;  %v5755_v37 = vld [vmem:[#allocation2 + $0x80] ss:$8 sps:$4 sm:$0xff]   ;;  %v6821_v23 = vld [vmem:[#allocation2 + $0x34] sm:$0x1] }
 0x1d8   :  { %v3013_v33 = vrot.slane %v3011_v0, 5  ;;  %v3023_v24 = vrot.slane %v3022_v25, 4  ;;  %v3027_v50 = vrot.slane %v3025_v9, 5  ;;  %v3077_v57 = vrot.slane %v3075_v42, 5  ;;  %v6827_v29 = vld [vmem:[#allocation2 + $0x3c] sm:$0x1] }
 0x1d9   :  { %5296 = vmatpush3.bf16.msra.mxu1 %v5741_v62  ;;  %v5754_v62 = vld [vmem:[#allocation2 + $0x70] ss:$8 sps:$4 sm:$0xff]   ;;  %v3037_v60 = vrot.slane %v3036_v44, 4  ;;  %v3051_v30 = vrot.slane %v3050_v13, 4  ;;  %v3064_v34 = vor.u32 %v3063_v52, %v3060_v61  ;;  %v3067_v36 = vshll.u32 %v6821_v23, 16 }
 0x1da   :  { %5297 = vmatprep.subr.bf16.mxu1 %v5742_v6  ;;  %v3014_v4 = vsel %vm6111_vm2, %v6814_v15, %v3013_v33  ;;  %v5758_v10 = vld [vmem:[#allocation2 + $0x90] ss:$8 sps:$4 sm:$0xff]   ;;  %v3081_v28 = vshll.u32 %v6827_v29, 16  ;;  %v6840_v20 = vld [vmem:[#allocation2 + $0x44] sm:$0x1] }
 0x1db   :  { %v3065_v17 = vrot.slane %v3064_v34, 4  ;;  %v5759_v0 = vld [vmem:[%s7452_s4 + $0x1f8] sm:$0xff]   ;;  %v6845_v42 = vld [vmem:[#allocation2 + $0x4c] sm:$0x1] }
 0x1dc   :  { %5282 = vmatmul.mubr.bf16.gmra.mrb[12].mxu1 %v4706_v39  ;;  %v3041_v39 = vrot.slane %v3039_v16, 5  ;;  %v2989_v16 = vld [vmem:[#allocation2 + $0x70] sm:$0xf]  ;;  %v2991_v44 = vld [vmem:[#allocation2 + $0x78] sm:$0xf]  ;;  %v3083_v52 = vrot.slane %v3081_v28, 5 }
 0x1dd   :  { %5298 = vmatpush3.bf16.msra.mxu1 %v5742_v6  ;;  %5301 = vmatprep.mubr.bf16.mxu1 %v5743_v2  ;;  %v2983_v6 = vld [vmem:[#allocation2 + $0x48] sm:$0xf]  ;;  %v2985_v2 = vld [vmem:[#allocation2 + $0x60] sm:$0xf] }
 0x1de   :  { %5299 = vmatprep.subr.bf16.mxu1 %v5744_v38  ;;  %5186 = vmatmul.mubr.bf16.gmra.mrb[28].mxu0 %v4594_v46  ;;  %v3072_v46 = vshrl.u32 %v2979_v22, 16  ;;  %v3103_v56 = vshll.u32 %v2983_v6, 16  ;;  %v3114_v19 = vshrl.u32 %v2985_v2, 16  ;;  %v3117_v47 = vshll.u32 %v2985_v2, 16  ;;  %v5760_v2 = vld [vmem:[%s7452_s4 + $0x200] sm:$0xff]  }
 0x1df   :  { %v3042_v31 = vsel %vm6111_vm2, %v3037_v60, %v3041_v39  ;;  %v2993_v39 = vld [vmem:[#allocation2 + $0x80] sm:$0xf] }
 0x1e0   :  { %v3105_v22 = vrot.slane %v3103_v56, 5  ;;  %v3116_v55 = vrot.slane %v3114_v19, 4  ;;  %v3119_v21 = vrot.slane %v3117_v47, 5  ;;  %v3170_v34 = vshrl.u32 %v2993_v39, 16 }
 0x1e1   :  { %5300 = vmatpush3.bf16.msra.mxu1 %v5744_v38  ;;  %v3053_v38 = vshll.u32 %v6816_v51, 16 }
 0x1e2   :  { %5317 = vmatprep.subr.bf16.mxu1 %v5745_v41  ;;  %v3172_v28 = vrot.slane %v3170_v34, 4 }
 0x1e3   :  { %v3055_v48 = vrot.slane %v3053_v38, 5  ;;  %v2995_v38 = vld [vmem:[#allocation2 + $0x88] sm:$0xf] }
 0x1e4   :  { %5302 = vmatmul.mubr.bf16.vlgmr.msra.gmra.mrb[0].mxu1 %v5746_v54  ;;  %v3086_v54 = vshrl.u32 %v2981_v58, 16  ;;  %v3184_v56 = vshrl.u32 %v2995_v38, 16  ;;  %v3187_v19 = vshll.u32 %v2995_v38, 16 }
 0x1e5   :  { %5318 = vmatpush3.bf16.msra.mxu1 %v5745_v41  ;;  %5305 = vmatprep.mubr.bf16.mxu1 %v5747_v59  ;;  %v3074_v41 = vrot.slane %v3072_v46, 4  ;;  %v2987_v59 = vld [vmem:[#allocation2 + $0x68] sm:$0xf]  ;;  %v3056_v7 = vsel %vm6111_vm2, %v3051_v30, %v3055_v48 }
 0x1e6   :  { %5319 = vmatprep.subr.bf16.mxu1 %v5748_v27  ;;  %v3128_v32 = vshrl.u32 %v2987_v59, 16  ;;  %v3131_v40 = vshll.u32 %v2987_v59, 16  ;;  %v3088_v26 = vrot.slane %v3086_v54, 4  ;;  %v4764_v13 = vcombine.low %v3042_v31, %v3056_v7 }
 0x1e7   :  { %v3156_v54 = vshrl.u32 %v2991_v44, 16 }
 0x1e8   :  { %v3130_v25 = vrot.slane %v3128_v32, 4  ;;  %v3133_v9 = vrot.slane %v3131_v40, 5  ;;  %v5761_v32 = vld [vmem:[%s7452_s4 + $0x208] sm:$0xff]  }
 0x1e9   :  { %5320 = vmatpush3.bf16.msra.mxu1 %v5748_v27  ;;  %v3089_v27 = vshll.u32 %v2981_v58, 16  ;;  %v3095_v58 = vshll.u32 %v6840_v20, 16 }
 0x1ea   :  { %5321 = vmatprep.subr.bf16.mxu1 %v5749_v49 }
 0x1ec   :  { %5306 = vmatmul.mubr.bf16.gmra.mrb[4].mxu1 %v5750_v12  ;;  %v3028_v12 = vsel %vm6111_vm2, %v3023_v24, %v3027_v50  ;;  %v3120_v24 = vor.u32 %v3119_v21, %v3116_v55  ;;  %v3142_v50 = vshrl.u32 %v2989_v16, 16  ;;  %v3189_v55 = vrot.slane %v3187_v19, 5  ;;  %v2999_v21 = vld [vmem:[#allocation2 + $0x98] sm:$0xf] }
 0x1ed   :  { %5322 = vmatpush3.bf16.msra.mxu1 %v5749_v49  ;;  %5309 = vmatprep.mubr.bf16.mxu1 %v5751_v1  ;;  %v3100_v49 = vshrl.u32 %v2983_v6, 16  ;;  %v3091_v1 = vrot.slane %v3089_v27, 5  ;;  %v4763_v15 = vcombine.low %v3014_v4, %v3028_v12  ;;  %v3109_v6 = vshll.u32 %v6845_v42, 16 }
 0x1ee   :  { %5323 = vmatprep.subr.bf16.mxu1 %v5752_v18  ;;  %v3159_v27 = vshll.u32 %v2991_v44, 16  ;;  %v3121_v48 = vrot.slane %v3120_v24, 4 }
 0x1ef   :  { %v3102_v63 = vrot.slane %v3100_v49, 4  ;;  %v3173_v49 = vshll.u32 %v2993_v39, 16 }
 0x1f1   :  { %5324 = vmatpush3.bf16.msra.mxu1 %v5752_v18  ;;  %v3078_v18 = vor.u32 %v3077_v57, %v3074_v41  ;;  %v3106_v33 = vor.u32 %v3105_v22, %v3102_v63  ;;  %v3134_v41 = vor.u32 %v3133_v9, %v3130_v25  ;;  %v3145_v57 = vshll.u32 %v2989_v16, 16  ;;  %v6869_v25 = vld [vmem:[#allocation2 + $0x74] sm:$0x1] }
 0x1f2   :  { %5325 = vmatprep.subr.bf16.mxu1 %v5753_v14  ;;  %v3175_v63 = vrot.slane %v3173_v49, 5  ;;  %v3186_v22 = vrot.slane %v3184_v56, 4  ;;  %v5762_v9 = vld [vmem:[%s7452_s4 + $0x210] sm:$0xff]   ;;  %v3151_v24 = vshll.u32 %v6869_v25, 16 }
 0x1f3   :  { %v3079_v46 = vrot.slane %v3078_v18, 4  ;;  %v3107_v47 = vrot.slane %v3106_v33, 4  ;;  %v3135_v40 = vrot.slane %v3134_v41, 4  ;;  %v3147_v12 = vrot.slane %v3145_v57, 5 }
 0x1f4   :  { %5310 = vmatmul.mubr.bf16.gmra.mrb[8].mxu1 %v5754_v62  ;;  %v3092_v62 = vor.u32 %v3091_v1, %v3088_v26  ;;  %v3158_v18 = vrot.slane %v3156_v54, 4  ;;  %v3161_v26 = vrot.slane %v3159_v27, 5  ;;  %v3212_v33 = vshrl.u32 %v2999_v21, 16  ;;  %v5763_v54 = vld [vmem:[%s7452_s4 + $0x218] sm:$0xff]  }
 0x1f5   :  { %5326 = vmatpush3.bf16.msra.mxu1 %v5753_v14  ;;  %5313 = vmatprep.mubr.bf16.mxu1 %v5755_v37  ;;  %v3069_v14 = vrot.slane %v3067_v36, 5  ;;  %v6850_v37 = vld [vmem:[#allocation2 + $0x64] sm:$0x1]  ;;  %v3084_v59 = vsel %vm6111_vm2, %v3079_v46, %v3083_v52  ;;  %v3144_v36 = vrot.slane %v3142_v50, 4  ;;  %v6878_v46 = vld [vmem:[#allocation2 + $0x7c] sm:$0x1]  ;;  %v3176_v50 = vor.u32 %v3175_v63, %v3172_v28 }
 0x1f6   :  { %5327 = vmatprep.subr.bf16.mxu1 %v5756_v3  ;;  %v3093_v4 = vrot.slane %v3092_v62, 4  ;;  %v3123_v60 = vshll.u32 %v6850_v37, 16  ;;  %v3162_v44 = vor.u32 %v3161_v26, %v3158_v18  ;;  %v3190_v39 = vor.u32 %v3189_v55, %v3186_v22  ;;  %v6898_v18 = vld [vmem:[#allocation2 + $0x9c] sm:$0x1]  ;;  %v3435_v63 = vld [vmem:[#allocation2 + $0x10] sm:$0xe] }
 0x1f7   :  { %v3070_v61 = vsel %vm6111_vm2, %v3065_v17, %v3069_v14  ;;  %v2997_v17 = vld [vmem:[#allocation2 + $0x90] sm:$0xf]  ;;  %v3148_v62 = vor.u32 %v3147_v12, %v3144_v36  ;;  %v3214_v34 = vrot.slane %v3212_v33, 4  ;;  %v3153_v56 = vrot.slane %v3151_v24, 5  ;;  %v6896_v12 = vld [vmem:[#allocation2 + $0x94] sm:$0x1] }
 0x1f8   :  { %v4765_v1 = vcombine.low %v3070_v61, %v3084_v59  ;;  %v3125_v31 = vrot.slane %v3123_v60, 5  ;;  %v6882_v61 = vld [vmem:[#allocation2 + $0x8c] sm:$0x1]  ;;  %v3198_v52 = vshrl.u32 %v2997_v17, 16  ;;  %v3163_v59 = vrot.slane %v3162_v44, 4  ;;  %v5766_v33 = vld [vmem:[%s7452_s4 + $0x230] sm:$0xff]  }
 0x1f9   :  { %5328 = vmatpush3.bf16.msra.mxu1 %v5756_v3  ;;  %v6852_v3 = vld [vmem:[#allocation2 + $0x6c] sm:$0x1]  ;;  %v3149_v27 = vrot.slane %v3148_v62, 4  ;;  %v3177_v19 = vrot.slane %v3176_v50, 4  ;;  %v3207_v28 = vshll.u32 %v6896_v12, 16  ;;  %v3485_v62 = vrot.slane %v6802_v8, 5 }
 0x1fa   :  { %5329 = vmatprep.subr.bf16.mxu1 %v5757_v53  ;;  %v3137_v30 = vshll.u32 %v6852_v3, 16  ;;  %v3126_v16 = vsel %vm6111_vm2, %v3121_v48, %v3125_v31  ;;  %v3200_v60 = vrot.slane %v3198_v52, 4  ;;  %v3221_v31 = vshll.u32 %v6898_v18, 16  ;;  %v3436_v22 = vld [vmem:[#allocation2 + $0x18] sm:$0xe] }
 0x1fb   :  { %v3154_v36 = vsel %vm6111_vm2, %v3149_v27, %v3153_v56  ;;  %v4780_v44 = vrot.slane %v3436_v22, 9  ;;  %v3489_v52 = vrot.slane %v6804_v11, 5  ;;  %v3437_v50 = vld [vmem:[#allocation2 + $0x20] sm:$0xe]  ;;  %v3493_v27 = vrot.slane %v6806_v43, 5 }
 0x1fc   :  { %5314 = vmatmul.mubr.bf16.gmra.mrb[12].mxu1 %v5758_v10  ;;  %v3097_v10 = vrot.slane %v3095_v58, 5  ;;  %v3139_v7 = vrot.slane %v3137_v30, 5  ;;  %v3201_v58 = vshll.u32 %v2997_v17, 16  ;;  %v3441_v43 = vld [vmem:[#allocation2 + $0x40] sm:$0xe] }
 0x1fd   :  { %5330 = vmatpush3.bf16.msra.mxu1 %v5757_v53  ;;  %5333 = vmatprep.mubr.bf16.mxu1 %v4763_v15  ;;  %v3111_v53 = vrot.slane %v3109_v6, 5  ;;  %v3215_v6 = vshll.u32 %v2999_v21, 16  ;;  %v5765_v21 = vld [vmem:[%s7452_s4 + $0x228] sm:$0xff]   ;;  %v3490_v11 = vsel %vm6654_vm11, %v4780_v44, %v3489_v52  ;;  %v3445_v22 = vld [vmem:[#allocation2 + $0x70] sm:$0xe] }
 0x1fe   :  { %5331 = vmatprep.subr.bf16.mxu1 %v5759_v0  ;;  %v3140_v15 = vsel %vm6111_vm2, %v3135_v40, %v3139_v7  ;;  %v3203_v30 = vrot.slane %v3201_v58, 5  ;;  %v3209_v58 = vrot.slane %v3207_v28, 5 }
 0x1ff   :  { %v3112_v14 = vsel %vm6111_vm2, %v3107_v47, %v3111_v53  ;;  %v4767_v57 = vcombine.low %v3126_v16, %v3140_v15  ;;  %v3217_v49 = vrot.slane %v3215_v6, 5  ;;  %v3191_v47 = vrot.slane %v3190_v39, 4  ;;  %v5764_v53 = vld [vmem:[%s7452_s4 + $0x220] sm:$0xff]   ;;  %v3438_v39 = vld [vmem:[#allocation2 + $0x28] sm:$0xe] }
 0x200   :  { %v3223_v16 = vrot.slane %v3221_v31, 5  ;;  %v4779_v15 = vrot.slane %v3435_v63, 9  ;;  %v3517_v31 = vrot.slane %v6850_v37, 5  ;;  %v3448_v37 = vld [vmem:[#allocation2 + $0x88] sm:$0xe] }
 0x201   :  { %5332 = vmatpush3.bf16.msra.mxu1 %v5759_v0  ;;  %v3098_v0 = vsel %vm6111_vm2, %v3093_v4, %v3097_v10  ;;  %v3193_v4 = vshll.u32 %v6882_v61, 16  ;;  %v3218_v10 = vor.u32 %v3217_v49, %v3214_v34  ;;  %v3505_v49 = vrot.slane %v6827_v29, 5  ;;  %v3444_v29 = vld [vmem:[#allocation2 + $0x68] sm:$0xe] }
 0x202   :  { %5349 = vmatprep.subr.bf16.mxu1 %v5760_v2  ;;  %v4766_v38 = vcombine.low %v3098_v0, %v3112_v14  ;;  %v3486_v8 = vsel %vm6654_vm11, %v4779_v15, %v3485_v62  ;;  %v3529_v15 = vrot.slane %v6878_v46, 5  ;;  %v4792_v52 = vrot.slane %v3448_v37, 9 }
 0x203   :  { %v3195_v40 = vrot.slane %v3193_v4, 5  ;;  %v4811_v45 = vcombine.low %v3486_v8, %v3490_v11  ;;  %v3497_v4 = vrot.slane %v6816_v51, 5 }
 0x204   :  { %5334 = vmatmul.mubr.bf16.vlgmr.msra.gmra.mrb[0].mxu1 %v4764_v13  ;;  %v6880_v13 = vld [vmem:[#allocation2 + $0x84] sm:$0x1] }
 0x205   :  { %5350 = vmatpush3.bf16.msra.mxu1 %v5760_v2  ;;  %5337 = vmatprep.mubr.bf16.mxu1 %v4765_v1  ;;  %v3165_v2 = vshll.u32 %v6878_v46, 16  ;;  %v3179_v41 = vshll.u32 %v6880_v13, 16  ;;  %v3204_v1 = vor.u32 %v3203_v30, %v3200_v60  ;;  %v3196_v17 = vsel %vm6111_vm2, %v3191_v47, %v3195_v40 }
 0x206   :  { %5351 = vmatprep.subr.bf16.mxu1 %v5761_v32  ;;  %v3501_v30 = vrot.slane %v6821_v23, 5  ;;  %v3442_v23 = vld [vmem:[#allocation2 + $0x48] sm:$0xe]  ;;  %v3509_v40 = vrot.slane %v6840_v20, 5  ;;  %v3533_v44 = vrot.slane %v6880_v13, 5 }
 0x207   :  { %v3167_v48 = vrot.slane %v3165_v2, 5  ;;  %v3205_v14 = vrot.slane %v3204_v1, 4  ;;  %v3440_v2 = vld [vmem:[#allocation2 + $0x38] sm:$0xe]  ;;  %v3513_v1 = vrot.slane %v6845_v42, 5 }
 0x208   :  { %v4784_v34 = vrot.slane %v3440_v2, 9 }
 0x209   :  { %5352 = vmatpush3.bf16.msra.mxu1 %v5761_v32  ;;  %v3181_v32 = vrot.slane %v3179_v41, 5  ;;  %v3168_v26 = vsel %vm6111_vm2, %v3163_v59, %v3167_v48  ;;  %v3210_v6 = vsel %vm6111_vm2, %v3205_v14, %v3209_v58  ;;  %v4782_v59 = vrot.slane %v3438_v39, 9 }
 0x20a   :  { %5353 = vmatprep.subr.bf16.mxu1 %v5762_v9  ;;  %v4768_v55 = vcombine.low %v3154_v36, %v3168_v26  ;;  %v3506_v47 = vsel %vm6654_vm11, %v4784_v34, %v3505_v49  ;;  %v4785_v36 = vrot.slane %v3441_v43, 9  ;;  %v4786_v26 = vrot.slane %v3442_v23, 9  ;;  %v5769_v23 = vld [vmem:[%s7455_s7 + $0x8] sm:$0xff]  }
 0x20b   :  { %v3182_v7 = vsel %vm6111_vm2, %v3177_v19, %v3181_v32  ;;  %v3498_v19 = vsel %vm6654_vm11, %v4782_v59, %v3497_v4  ;;  %v4789_v14 = vrot.slane %v3445_v22, 9  ;;  %v3537_v58 = vrot.slane %v6882_v61, 5 }
 0x20c   :  { %5338 = vmatmul.mubr.bf16.gmra.mrb[4].mxu1 %v4766_v38  ;;  %v4769_v0 = vcombine.low %v3182_v7, %v3196_v17  ;;  %v3439_v38 = vld [vmem:[#allocation2 + $0x30] sm:$0xe]  ;;  %v4788_v7 = vrot.slane %v3444_v29, 9  ;;  %v3521_v17 = vrot.slane %v6852_v3, 5  ;;  %v3510_v28 = vsel %vm6654_vm11, %v4785_v36, %v3509_v40  ;;  %v5771_v29 = vld [vmem:[%s7455_s7 + $0x18] sm:$0xff]   ;;  %v5773_v36 = vld [vmem:[%s7455_s7 + $0x28] sm:$0xff]  }
 0x20d   :  { %5354 = vmatpush3.bf16.msra.mxu1 %v5762_v9  ;;  %5341 = vmatprep.mubr.bf16.mxu1 %v4767_v57  ;;  %v3219_v9 = vrot.slane %v3218_v10, 4  ;;  %v5767_v57 = vld [vmem:[%s7452_s4 + $0x238] sm:$0xff]   ;;  %v4783_v60 = vrot.slane %v3439_v38, 9  ;;  %v3514_v63 = vsel %vm6654_vm11, %v4786_v26, %v3513_v1  ;;  %v3538_v46 = vsel %vm6654_vm11, %v4792_v52, %v3537_v58 }
 0x20e   :  { %5355 = vmatprep.subr.bf16.mxu1 %v5763_v54  ;;  %v3522_v42 = vsel %vm6654_vm11, %v4788_v7, %v3521_v17  ;;  %v3541_v61 = vrot.slane %v6896_v12, 5  ;;  %v3545_v38 = vrot.slane %v6898_v18, 5  ;;  %v5775_v40 = vld [vmem:[%s7455_s7 + $0x38] sm:$0xff]  }
 0x20f   :  { %v3224_v24 = vsel %vm6111_vm2, %v3219_v9, %v3223_v16  ;;  %v3502_v51 = vsel %vm6654_vm11, %v4783_v60, %v3501_v30  ;;  %v3525_v9 = vrot.slane %v6869_v25, 5 }
 0x210   :  { %v4770_v41 = vcombine.low %v3210_v6, %v3224_v24  ;;  %v4813_v32 = vcombine.low %v3502_v51, %v3506_v47  ;;  %v3449_v24 = vld [vmem:[#allocation2 + $0x90] sm:$0xe]  ;;  %v5768_v47 = vld [vmem:[%s7455_s7] sm:$0xff]  }
 0x211   :  { %5356 = vmatpush3.bf16.msra.mxu1 %v5763_v54  ;;  %v4781_v54 = vrot.slane %v3437_v50, 9  ;;  %v3450_v50 = vld [vmem:[#allocation2 + $0x98] sm:$0xe]  ;;  %v4793_v13 = vrot.slane %v3449_v24, 9  ;;  %5381 = vmatprep.subr.bf16.mxu0 %v5768_v47 }
 0x212   :  { %5357 = vmatprep.subr.bf16.mxu1 %v5764_v53  ;;  %v4794_v39 = vrot.slane %v3450_v50, 9  ;;  %5382 = vmatpush3.bf16.msra.mxu0 %v5768_v47 }
 0x213   :  { %v3494_v56 = vsel %vm6654_vm11, %v4781_v54, %v3493_v27  ;;  %v3542_v2 = vsel %vm6654_vm11, %v4793_v13, %v3541_v61  ;;  %5383 = vmatprep.subr.bf16.mxu0 %v5769_v23 }
 0x214   :  { %5342 = vmatmul.mubr.bf16.gmra.mrb[8].mxu1 %v4768_v55  ;;  %v4812_v48 = vcombine.low %v3494_v56, %v3498_v19  ;;  %v3446_v55 = vld [vmem:[#allocation2 + $0x78] sm:$0xe] }
 0x215   :  { %5358 = vmatpush3.bf16.msra.mxu1 %v5764_v53  ;;  %5345 = vmatprep.mubr.bf16.mxu1 %v4769_v0  ;;  %v3443_v53 = vld [vmem:[#allocation2 + $0x60] sm:$0xe]  ;;  %v4814_v0 = vcombine.low %v3510_v28, %v3514_v63  ;;  %v4790_v16 = vrot.slane %v3446_v55, 9 }
 0x216   :  { %5359 = vmatprep.subr.bf16.mxu1 %v5765_v21  ;;  %v4787_v10 = vrot.slane %v3443_v53, 9  ;;  %v5770_v53 = vld [vmem:[%s7455_s7 + $0x10] sm:$0xff]   ;;  %5384 = vmatpush3.bf16.msra.mxu0 %v5769_v23 }
 0x217   :  { %v3530_v6 = vsel %vm6654_vm11, %v4790_v16, %v3529_v15  ;;  %5385 = vmatprep.subr.bf16.mxu0 %v5770_v53 }
 0x218   :  { %v3518_v20 = vsel %vm6654_vm11, %v4787_v10, %v3517_v31 }
 0x219   :  { %5360 = vmatpush3.bf16.msra.mxu1 %v5765_v21  ;;  %v3447_v21 = vld [vmem:[#allocation2 + $0x80] sm:$0xe]  ;;  %v4815_v3 = vcombine.low %v3518_v20, %v3522_v42 }
 0x21a   :  { %5361 = vmatprep.subr.bf16.mxu1 %v5766_v33  ;;  %v4791_v62 = vrot.slane %v3447_v21, 9  ;;  %5386 = vmatpush3.bf16.msra.mxu0 %v5770_v53 }
 0x21b   :  { %5387 = vmatprep.subr.bf16.mxu0 %v5771_v29 }
 0x21c   :  { %5346 = vmatmul.mubr.bf16.gmra.mrb[12].mxu1 %v4770_v41  ;;  %v3534_v25 = vsel %vm6654_vm11, %v4791_v62, %v3533_v44  ;;  %v3546_v41 = vsel %vm6654_vm11, %v4794_v39, %v3545_v38 }
 0x21d   :  { %5362 = vmatpush3.bf16.msra.mxu1 %v5766_v33  ;;  %5365 = vmatprep.mubr.bf16.mxu1 %v4811_v45  ;;  %v3526_v33 = vsel %vm6654_vm11, %v4789_v14, %v3525_v9  ;;  %v4817_v11 = vcombine.low %v3534_v25, %v3538_v46 }
 0x21e   :  { %5363 = vmatprep.subr.bf16.mxu1 %v5767_v57  ;;  %v4816_v8 = vcombine.low %v3526_v33, %v3530_v6  ;;  %5388 = vmatpush3.bf16.msra.mxu0 %v5771_v29 }
 0x221   :  { %5364 = vmatpush3.bf16.msra.mxu1 %v5767_v57  ;;  %v4818_v57 = vcombine.low %v3542_v2, %v3546_v41 }
 0x224   :  { %5366 = vmatmul.mubr.bf16.vlgmr.msra.gmra.mrb[0].mxu1 %v4812_v48  ;;  %v5772_v48 = vld [vmem:[%s7455_s7 + $0x20] sm:$0xff]  }
 0x225   :  { %5369 = vmatprep.mubr.bf16.mxu1 %v4813_v32  ;;  %5389 = vmatprep.subr.bf16.mxu0 %v5772_v48  ;;  %v5774_v32 = vld [vmem:[%s7455_s7 + $0x30] sm:$0xff]  }
 0x226   :  { %5390 = vmatpush3.bf16.msra.mxu0 %v5772_v48 }
 0x227   :  { %5391 = vmatprep.subr.bf16.mxu0 %v5773_v36 }
 0x22a   :  { %5392 = vmatpush3.bf16.msra.mxu0 %v5773_v36 }
 0x22b   :  { %5393 = vmatprep.subr.bf16.mxu0 %v5774_v32 }
 0x22c   :  { %5370 = vmatmul.mubr.bf16.gmra.mrb[4].mxu1 %v4814_v0 }
 0x22d   :  { %5373 = vmatprep.mubr.bf16.mxu1 %v4815_v3 }
 0x22e   :  { %5394 = vmatpush3.bf16.msra.mxu0 %v5774_v32 }
 0x22f   :  { %5395 = vmatprep.subr.bf16.mxu0 %v5775_v40 }
 0x232   :  { %5396 = vmatpush3.bf16.msra.mxu0 %v5775_v40 }
 0x234   :  { %5374 = vmatmul.mubr.bf16.gmra.mrb[8].mxu1 %v4816_v8 }
 0x235   :  { %5377 = vmatprep.mubr.bf16.mxu1 %v4817_v11 }
 0x23c   :  { %5378 = vmatmul.mubr.bf16.gmra.mrb[12].mxu1 %v4818_v57 }
 0x299   :  { %v5175_v54 = vpop.f32.mrb[16].mxu0 }
 0x29a   :  { %v1617_v45 = vpop.f32.mrb[17].mxu0 }
 0x29b   :  { %v5176_v27 = vpop.f32.mrb[18].mxu0 }
 0x29c   :  { %v1620_v59 = vpop.f32.mrb[19].mxu0 }
 0x2a1   :  { %v5179_v4 = vpop.f32.mrb[20].mxu0 }
 0x2a2   :  { %v1633_v60 = vpop.f32.mrb[21].mxu0 }
 0x2a3   :  { %v5180_v12 = vpop.f32.mrb[22].mxu0 }
 0x2a4   :  { %v1636_v30 = vpop.f32.mrb[23].mxu0 }
 0x2a9   :  { %v6969_v34 = vpop.f32.mrb[24].mxu0 }
 0x2aa   :  { %v6971_v18 = vpop.f32.mrb[25].mxu0 }
 0x2ab   :  { %v6973_v49 = vpop.f32.mrb[26].mxu0 }
 0x2ac   :  { %v6975_v56 = vpop.f32.mrb[27].mxu0 }
 0x2b1   :  { %v6977_v5 = vpop.f32.mrb[28].mxu0 }
 0x2b2   :  { %v6979_v19 = vpop.f32.mrb[29].mxu0 }
 0x2b3   :  { %v6981_v43 = vpop.f32.mrb[30].mxu0 }
 0x2b4   :  { %v6983_v51 = vpop.f32.mrb[31].mxu0 }
 0x2f7   :  { %v5367_v26 = vpop.f32.mrb[0].mxu1 }
 0x2f8   :  { %v7009_v1 = vadd.f32 %v5367_v26, %v5175_v54  ;;  %v3678_v10 = vpop.f32.mrb[1].mxu1 }
 0x2f9   :  { %v7011_v31 = vadd.f32 %v3678_v10, %v1617_v45  ;;  %v5368_v7 = vpop.f32.mrb[2].mxu1 }
 0x2fa   :  { %v7013_v17 = vadd.f32 %v5368_v7, %v5176_v27  ;;  %v3681_v28 = vpop.f32.mrb[3].mxu1  ;;  %v3783_v55 = vmul.f32 %v7009_v1, %v7009_v1 }
 0x2fb   :  { %v7015_v63 = vadd.f32 %v3681_v28, %v1620_v59  ;;  %v3781_v22 = vmul.f32 %v7011_v31, %v7011_v31 }
 0x2fc   :  { %v3784_v9 = vmul.f32 %v7013_v17, %v7013_v17 }
 0x2fd   :  { %v3759_v20 = vadd.f32 %v7015_v63, %v7011_v31  ;;  %v3782_v42 = vmul.f32 %v7015_v63, %v7015_v63 }
 0x2ff   :  { %v3760_v21 = vadd.f32 %v7009_v1, %v3759_v20  ;;  %v3797_v37 = vadd.f32 %v3782_v42, %v3781_v22  ;;  %v5371_v0 = vpop.f32.mrb[4].mxu1 }
 0x300   :  { %v7026_v14 = vadd.f32 %v5371_v0, %v5179_v4  ;;  %v3694_v3 = vpop.f32.mrb[5].mxu1 }
 0x301   :  { %v3798_v16 = vadd.f32 %v3797_v37, %v3783_v55  ;;  %v7030_v15 = vadd.f32 %v3694_v3, %v1633_v60  ;;  %v3761_v62 = vadd.f32 %v7013_v17, %v3760_v21  ;;  %v5372_v44 = vpop.f32.mrb[6].mxu1 }
 0x302   :  { %v7033_v52 = vadd.f32 %v5372_v44, %v5180_v12  ;;  %v3697_v58 = vpop.f32.mrb[7].mxu1  ;;  %v3787_v13 = vmul.f32 %v7026_v14, %v7026_v14 }
 0x303   :  { %v3762_v33 = vadd.f32 %v7030_v15, %v3761_v62  ;;  %v3785_v6 = vmul.f32 %v7030_v15, %v7030_v15  ;;  %v3799_v24 = vadd.f32 %v3798_v16, %v3784_v9  ;;  %v7038_v25 = vadd.f32 %v3697_v58, %v1636_v30 }
 0x304   :  { %v3788_v41 = vmul.f32 %v7033_v52, %v7033_v52 }
 0x305   :  { %v3800_v46 = vadd.f32 %v3799_v24, %v3785_v6  ;;  %v3763_v50 = vadd.f32 %v7038_v25, %v3762_v33  ;;  %v3786_v8 = vmul.f32 %v7038_v25, %v7038_v25 }
 0x307   :  { %v3764_v11 = vadd.f32 %v7026_v14, %v3763_v50  ;;  %v3801_v61 = vadd.f32 %v3800_v46, %v3786_v8  ;;  %v5375_v39 = vpop.f32.mrb[8].mxu1 }
 0x308   :  { %v7047_v38 = vadd.f32 %v5375_v39, %v6969_v34  ;;  %v3710_v2 = vpop.f32.mrb[9].mxu1 }
 0x309   :  { %v3802_v57 = vadd.f32 %v3801_v61, %v3787_v13  ;;  %v7052_v54 = vadd.f32 %v3710_v2, %v6971_v18  ;;  %v3765_v45 = vadd.f32 %v7033_v52, %v3764_v11  ;;  %v5376_v27 = vpop.f32.mrb[10].mxu1 }
 0x30a   :  { %v7056_v59 = vadd.f32 %v5376_v27, %v6973_v49  ;;  %v3713_v4 = vpop.f32.mrb[11].mxu1  ;;  %v3791_v49 = vmul.f32 %v7047_v38, %v7047_v38 }
 0x30b   :  { %v3766_v60 = vadd.f32 %v7052_v54, %v3765_v45  ;;  %v3789_v12 = vmul.f32 %v7052_v54, %v7052_v54  ;;  %v3803_v30 = vadd.f32 %v3802_v57, %v3788_v41  ;;  %v7062_v34 = vadd.f32 %v3713_v4, %v6975_v56 }
 0x30c   :  { %v3792_v56 = vmul.f32 %v7056_v59, %v7056_v59 }
 0x30d   :  { %v3804_v47 = vadd.f32 %v3803_v30, %v3789_v12  ;;  %v3767_v18 = vadd.f32 %v7062_v34, %v3766_v60  ;;  %v3790_v23 = vmul.f32 %v7062_v34, %v7062_v34  ;;  %v3757_v60 = vld [vmem:[%s7456_s5] sm:$0x1] }
 0x30f   :  { %v3768_v53 = vadd.f32 %v7047_v38, %v3767_v18  ;;  %v3805_v29 = vadd.f32 %v3804_v47, %v3790_v23  ;;  %v5379_v48 = vpop.f32.mrb[12].mxu1  ;;  %v3758_v47 = vld [vmem:[%s7457_s6] sm:$0x1] }
 0x310   :  { %v7071_v36 = vadd.f32 %v5379_v48, %v6977_v5  ;;  %v3726_v32 = vpop.f32.mrb[13].mxu1 }
 0x311   :  { %v3806_v40 = vadd.f32 %v3805_v29, %v3791_v49  ;;  %v5544_v26 = vadd.f32 %v3726_v32, %v6979_v19  ;;  %v3769_v10 = vadd.f32 %v7056_v59, %v3768_v53  ;;  %v5380_v7 = vpop.f32.mrb[14].mxu1 }
 0x312   :  { %v7078_v28 = vadd.f32 %v5380_v7, %v6981_v43  ;;  %v3729_v22 = vpop.f32.mrb[15].mxu1  ;;  %v3795_v3 = vmul.f32 %v7071_v36, %v7071_v36 }
 0x313   :  { %v3770_v20 = vadd.f32 %v5544_v26, %v3769_v10  ;;  %v3793_v42 = vmul.f32 %v5544_v26, %v5544_v26  ;;  %v3807_v55 = vadd.f32 %v3806_v40, %v3792_v56  ;;  %v5546_v5 = vadd.f32 %v3729_v22, %v6983_v51 }
 0x314   :  { %v3796_v16 = vmul.f32 %v7078_v28, %v7078_v28 }
 0x315   :  { %v3808_v21 = vadd.f32 %v3807_v55, %v3793_v42  ;;  %v3771_v37 = vadd.f32 %v5546_v5, %v3770_v20  ;;  %v3794_v0 = vmul.f32 %v5546_v5, %v5546_v5 }
 0x317   :  { %v3772_v19 = vadd.f32 %v7071_v36, %v3771_v37  ;;  %v3809_v9 = vadd.f32 %v3808_v21, %v3794_v0 }
 0x319   :  { %v3773_v43 = vadd.f32 %v7078_v28, %v3772_v19  ;;  %v3810_v62 = vadd.f32 %v3809_v9, %v3795_v3 }
 0x31b   :  { %v3774_v44 = vrot.slane %v3773_v43, 4  ;;  %v3811_v58 = vadd.f32 %v3810_v62, %v3796_v16 }
 0x31d   :  { %v3775_v33 = vadd.f32 %v3774_v44, %v3773_v43  ;;  %v3812_v6 = vrot.slane %v3811_v58, 4 }
 0x31f   :  { %v3776_v51 = vrot.slane %v3775_v33, 2  ;;  %v3813_v24 = vadd.f32 %v3812_v6, %v3811_v58 }
 0x321   :  { %v3777_v46 = vadd.f32 %v3776_v51, %v3775_v33  ;;  %v3814_v50 = vrot.slane %v3813_v24, 2 }
 0x323   :  { %v3778_v8 = vrot.slane %v3777_v46, 1  ;;  %v3815_v13 = vadd.f32 %v3814_v50, %v3813_v24 }
 0x325   :  { %v3779_v11 = vadd.f32 %v3778_v8, %v3777_v46  ;;  %v3816_v61 = vrot.slane %v3815_v13, 1 }
 0x327   :  { %v3780_v39 = vmul.f32 0.0078125, %v3779_v11  ;;  %v3817_v2 = vadd.f32 %v3816_v61, %v3815_v13 }
 0x329   :  { %v3818_v41 = vmul.f32 0.0078125, %v3817_v2  ;;  %v3819_v57 = vmul.f32 %v3780_v39, %v3780_v39 }
 0x32b   :  { %v3820_v45 = vsub.f32 %v3818_v41, %v3819_v57 }
 0x32d   :  { %v3821_v27 = vmax.f32 %v3820_v45, 0.0 }
 0x32f   :  { %v3822_v4 = vadd.f32 1e-05, %v3821_v27 }
 0x331   :  { %5778 = vrsqrt.f32 %v3822_v4 }
 0x33b   :  { %v5779_v12 = vpop.eup %5778 }
 0x33c   :  { %v3824_v30 = vmul.f32 %v5779_v12, %v3757_v60 }
 0x33e   :  { %v3825_v18 = vmul.f32 %v3824_v30, %v3780_v39  ;;  %v3831_v23 = vrot.slane %v3824_v30, %v6105_v35 }
 0x340   :  { %v3826_v49 = vsub.f32 %v3758_v47, %v3825_v18  ;;  %v3846_v53 = vmul.f32 %v5546_v5, %v3831_v23  ;;  %v3833_v29 = vmul.f32 %v7011_v31, %v3831_v23  ;;  %v3834_v48 = vmul.f32 %v7015_v63, %v3831_v23  ;;  %v4201_v18 = vld [vmem:[%s7458_s10 + $0x10] sm:$0xff] }
 0x341   :  { %v3835_v32 = vmul.f32 %v7009_v1, %v3831_v23  ;;  %v3836_v56 = vmul.f32 %v7013_v17, %v3831_v23  ;;  %v3837_v40 = vmul.f32 %v7030_v15, %v3831_v23  ;;  %v3838_v10 = vmul.f32 %v7038_v25, %v3831_v23 }
 0x342   :  { %v3853_v7 = vrot.slane %v3826_v49, %v6105_v35  ;;  %v3839_v22 = vmul.f32 %v7026_v14, %v3831_v23  ;;  %v3840_v20 = vmul.f32 %v7033_v52, %v3831_v23  ;;  %v3841_v42 = vmul.f32 %v7052_v54, %v3831_v23 }
 0x343   :  { %v3842_v31 = vmul.f32 %v7062_v34, %v3831_v23  ;;  %v3843_v63 = vmul.f32 %v7047_v38, %v3831_v23  ;;  %v3844_v1 = vmul.f32 %v7056_v59, %v3831_v23  ;;  %v3845_v55 = vmul.f32 %v5544_v26, %v3831_v23 }
 0x344   :  { %v3855_v17 = vadd.f32 %v3853_v7, %v3833_v29  ;;  %v3856_v5 = vadd.f32 %v3853_v7, %v3834_v48  ;;  %v3857_v15 = vadd.f32 %v3853_v7, %v3835_v32  ;;  %v3858_v21 = vadd.f32 %v3853_v7, %v3836_v56  ;;  %v4203_v48 = vld [vmem:[%s7458_s10 + $0x20] sm:$0xff]  ;;  %v4204_v32 = vld [vmem:[%s7458_s10 + $0x28] sm:$0xff] }
 0x345   :  { %v3859_v25 = vadd.f32 %v3853_v7, %v3837_v40  ;;  %v3860_v37 = vadd.f32 %v3853_v7, %v3838_v10  ;;  %v3861_v0 = vadd.f32 %v3853_v7, %v3839_v22  ;;  %v3862_v3 = vadd.f32 %v3853_v7, %v3840_v20  ;;  %v4205_v40 = vld [vmem:[%s7458_s10 + $0x30] sm:$0xff]  ;;  %v4206_v10 = vld [vmem:[%s7458_s10 + $0x38] sm:$0xff]  ;;  %v4207_v22 = vld [vmem:[%s7458_s10 + $0x40] sm:$0xff] }
 0x346   :  { %v3871_v14 = vmax.f32 %v3855_v17, 0.0  ;;  %v3872_v19 = vmax.f32 %v3856_v5, 0.0  ;;  %v3873_v52 = vmax.f32 %v3857_v15, 0.0  ;;  %v3874_v9 = vmax.f32 %v3858_v21, 0.0  ;;  %v4208_v20 = vld [vmem:[%s7458_s10 + $0x48] sm:$0xff]  ;;  %v4213_v15 = vld [vmem:[%s7458_s10 + $0x70] sm:$0xff] }
 0x347   :  { %v3875_v54 = vmax.f32 %v3859_v25, 0.0  ;;  %v3876_v16 = vmax.f32 %v3860_v37, 0.0  ;;  %v3877_v34 = vmax.f32 %v3861_v0, 0.0  ;;  %v3878_v43 = vmax.f32 %v3862_v3, 0.0  ;;  %v4212_v17 = vld [vmem:[%s7458_s10 + $0x68] sm:$0xff]  ;;  %v4214_v21 = vld [vmem:[%s7458_s10 + $0x78] sm:$0xff] }
 0x348   :  { %v3887_v38 = vpack.c.bf16 %v3872_v19, %v3871_v14  ;;  %v3888_v62 = vpack.c.bf16 %v3874_v9, %v3873_v52  ;;  %v3863_v59 = vadd.f32 %v3853_v7, %v3841_v42  ;;  %v3864_v26 = vadd.f32 %v3853_v7, %v3842_v31  ;;  %v4209_v31 = vld [vmem:[%s7458_s10 + $0x50] sm:$0xff] }
 0x349   :  { %v3889_v44 = vpack.c.bf16 %v3876_v16, %v3875_v54  ;;  %v3890_v58 = vpack.c.bf16 %v3878_v43, %v3877_v34  ;;  %v3865_v33 = vadd.f32 %v3853_v7, %v3843_v63  ;;  %v3866_v6 = vadd.f32 %v3853_v7, %v3844_v1  ;;  %v4210_v63 = vld [vmem:[%s7458_s10 + $0x58] sm:$0xff] }
 0x34a   :  { %5397 = vmatprep.mubr.bf16.mxu0 %v3887_v38  ;;  %v3879_v51 = vmax.f32 %v3863_v59, 0.0  ;;  %v3880_v24 = vmax.f32 %v3864_v26, 0.0  ;;  %v3867_v46 = vadd.f32 %v3853_v7, %v3845_v55  ;;  %v3868_v50 = vadd.f32 %v3853_v7, %v3846_v53  ;;  %v4202_v53 = vld [vmem:[%s7458_s10 + $0x18] sm:$0xff]  ;;  %v4211_v55 = vld [vmem:[%s7458_s10 + $0x60] sm:$0xff] }
 0x34b   :  { %5398 = vmatmul.mubr.bf16.vlgmr.msra.gmra.mrb[32].mxu0 %v3888_v62  ;;  %v3881_v8 = vmax.f32 %v3865_v33, 0.0  ;;  %v3882_v13 = vmax.f32 %v3866_v6, 0.0  ;;  %v3847_v11 = vmul.f32 %v7071_v36, %v3831_v23  ;;  %v3848_v61 = vmul.f32 %v7078_v28, %v3831_v23  ;;  %v4199_v36 = vld [vmem:[%s7458_s10] sm:$0xff]  ;;  %v4200_v28 = vld [vmem:[%s7458_s10 + $0x8] sm:$0xff] }
 0x34c   :  { %5401 = vmatprep.mubr.bf16.mxu0 %v3889_v44  ;;  %v3891_v39 = vpack.c.bf16 %v3880_v24, %v3879_v51  ;;  %v3883_v2 = vmax.f32 %v3867_v46, 0.0  ;;  %v3884_v41 = vmax.f32 %v3868_v50, 0.0  ;;  %v5814_v47 = vmov 0.0|0.0  }
 0x34d   :  { %v3892_v57 = vpack.c.bf16 %v3882_v13, %v3881_v8  ;;  %v3869_v45 = vadd.f32 %v3853_v7, %v3847_v11  ;;  %v3870_v27 = vadd.f32 %v3853_v7, %v3848_v61  ;;  %5483 = vmatprep.subr.bf16.mxu0 %v5814_v47  ;;  %v5816_v23 = vmov 0.0  }
 0x34e   :  { %v3893_v4 = vpack.c.bf16 %v3884_v41, %v3883_v2  ;;  %v5484_v49 = vpack.c.bf16 %v4200_v28, %v4199_v36  ;;  %v5487_v29 = vpack.c.bf16 %v4202_v53, %v4201_v18  ;;  %v5490_v56 = vpack.c.bf16 %v4204_v32, %v4203_v48 }
 0x34f   :  { %v3885_v60 = vmax.f32 %v3869_v45, 0.0  ;;  %v3886_v12 = vmax.f32 %v3870_v27, 0.0  ;;  %v5493_v7 = vpack.c.bf16 %v4206_v10, %v4205_v40  ;;  %v5496_v42 = vpack.c.bf16 %v4208_v20, %v4207_v22 }
 0x350   :  { %5485 = vmatpush3.bf16.msra.mxu0 %v5484_v49  ;;  %v5499_v1 = vpack.c.bf16 %v4210_v63, %v4209_v31  ;;  %v5502_v5 = vpack.c.bf16 %v4212_v17, %v4211_v55  ;;  %v5505_v25 = vpack.c.bf16 %v4214_v21, %v4213_v15 }
 0x351   :  { %v3894_v30 = vpack.c.bf16 %v3886_v12, %v3885_v60  ;;  %5486 = vmatprep.subr.bf16.mxu0 %v5814_v47 }
 0x353   :  { %5402 = vmatmul.mubr.bf16.gmra.mrb[36].mxu0 %v3890_v58 }
 0x354   :  { %5405 = vmatprep.mubr.bf16.mxu0 %v3891_v39  ;;  %5488 = vmatpush3.bf16.msra.mxu0 %v5487_v29 }
 0x355   :  { %5489 = vmatprep.subr.bf16.mxu0 %v5814_v47 }
 0x358   :  { %5491 = vmatpush3.bf16.msra.mxu0 %v5490_v56 }
 0x359   :  { %5492 = vmatprep.subr.bf16.mxu0 %v5814_v47 }
 0x35b   :  { %5406 = vmatmul.mubr.bf16.gmra.mrb[40].mxu0 %v3892_v57 }
 0x35c   :  { %5409 = vmatprep.mubr.bf16.mxu0 %v3893_v4  ;;  %5494 = vmatpush3.bf16.msra.mxu0 %v5493_v7 }
 0x35d   :  { %5495 = vmatprep.subr.bf16.mxu0 %v5814_v47 }
 0x360   :  { %5497 = vmatpush3.bf16.msra.mxu0 %v5496_v42 }
 0x361   :  { %5498 = vmatprep.subr.bf16.mxu0 %v5814_v47 }
 0x363   :  { %5410 = vmatmul.mubr.bf16.gmra.mrb[44].mxu0 %v3894_v30 }
 0x364   :  { %5445 = vmatprep.mubr.msk.f32.mxu0 %vm5815_vm12, %v5816_v23  ;;  %5500 = vmatpush3.bf16.msra.mxu0 %v5499_v1 }
 0x365   :  { %5501 = vmatprep.subr.bf16.mxu0 %v5814_v47 }
 0x368   :  { %5503 = vmatpush3.bf16.msra.mxu0 %v5502_v5 }
 0x369   :  { %5504 = vmatprep.subr.bf16.mxu0 %v5814_v47 }
 0x36c   :  { %5506 = vmatpush3.bf16.msra.mxu0 %v5505_v25 }
 0x36d   :  { %5507 = vmatprep.subr.bf16.mxu0 %v5814_v47 }
 0x41e   :  { %v7168_v37 = vpop.f32.mrb[32].mxu0 }
 0x41f   :  { %v7170_v0 = vpop.f32.mrb[33].mxu0  ;;  %v4082_v54 = vmul.f32 %v7168_v37, %v7168_v37 }
 0x420   :  { %v7172_v3 = vpop.f32.mrb[34].mxu0  ;;  %v4080_v19 = vmul.f32 %v7170_v0, %v7170_v0 }
 0x421   :  { %v7174_v14 = vpop.f32.mrb[35].mxu0  ;;  %v4083_v43 = vmul.f32 %v7172_v3, %v7172_v3 }
 0x422   :  { %v4058_v52 = vadd.f32 %v7174_v14, %v7170_v0  ;;  %v4081_v9 = vmul.f32 %v7174_v14, %v7174_v14 }
 0x424   :  { %v4059_v16 = vadd.f32 %v7168_v37, %v4058_v52  ;;  %v4096_v34 = vadd.f32 %v4081_v9, %v4080_v19 }
 0x426   :  { %v4097_v38 = vadd.f32 %v4096_v34, %v4082_v54  ;;  %v7187_v62 = vpop.f32.mrb[36].mxu0  ;;  %v4060_v59 = vadd.f32 %v7172_v3, %v4059_v16 }
 0x427   :  { %v7190_v26 = vpop.f32.mrb[37].mxu0  ;;  %v4086_v8 = vmul.f32 %v7187_v62, %v7187_v62 }
 0x428   :  { %v4061_v44 = vadd.f32 %v4060_v59, %v7190_v26  ;;  %v4084_v58 = vmul.f32 %v7190_v26, %v7190_v26  ;;  %v4098_v33 = vadd.f32 %v4097_v38, %v4083_v43  ;;  %v7195_v6 = vpop.f32.mrb[38].mxu0 }
 0x429   :  { %v7197_v51 = vpop.f32.mrb[39].mxu0  ;;  %v4087_v61 = vmul.f32 %v7195_v6, %v7195_v6 }
 0x42a   :  { %v4099_v24 = vadd.f32 %v4098_v33, %v4084_v58  ;;  %v4062_v46 = vadd.f32 %v4061_v44, %v7197_v51  ;;  %v4085_v50 = vmul.f32 %v7197_v51, %v7197_v51 }
 0x42c   :  { %v4063_v13 = vadd.f32 %v7187_v62, %v4062_v46  ;;  %v4100_v11 = vadd.f32 %v4099_v24, %v4085_v50 }
 0x42e   :  { %v4101_v39 = vadd.f32 %v4100_v11, %v4086_v8  ;;  %v7207_v2 = vpop.f32.mrb[40].mxu0  ;;  %v4064_v41 = vadd.f32 %v7195_v6, %v4063_v13 }
 0x42f   :  { %v4025_v57 = vpop.f32.mrb[41].mxu0  ;;  %v4090_v18 = vmul.f32 %v7207_v2, %v7207_v2 }
 0x430   :  { %v4065_v45 = vadd.f32 %v4064_v41, %v4025_v57  ;;  %v4088_v27 = vmul.f32 %v4025_v57, %v4025_v57  ;;  %v4102_v4 = vadd.f32 %v4101_v39, %v4087_v61  ;;  %v5408_v60 = vpop.f32.mrb[42].mxu0  ;;  %v4056_v39 = vld [vmem:[%s7459_s8] sm:$0x1] }
 0x431   :  { %v4028_v12 = vpop.f32.mrb[43].mxu0  ;;  %v4091_v29 = vmul.f32 %v5408_v60, %v5408_v60 }
 0x432   :  { %v4103_v30 = vadd.f32 %v4102_v4, %v4088_v27  ;;  %v4066_v36 = vadd.f32 %v4065_v45, %v4028_v12  ;;  %v4089_v28 = vmul.f32 %v4028_v12, %v4028_v12  ;;  %v4057_v27 = vld [vmem:[%s7460_s9] sm:$0x1] }
 0x434   :  { %v4067_v49 = vadd.f32 %v7207_v2, %v4066_v36  ;;  %v4104_v53 = vadd.f32 %v4103_v30, %v4089_v28 }
 0x436   :  { %v4105_v48 = vadd.f32 %v4104_v53, %v4090_v18  ;;  %v5411_v32 = vpop.f32.mrb[44].mxu0  ;;  %v4068_v56 = vadd.f32 %v5408_v60, %v4067_v49 }
 0x437   :  { %v4041_v40 = vpop.f32.mrb[45].mxu0  ;;  %v4094_v55 = vmul.f32 %v5411_v32, %v5411_v32 }
 0x438   :  { %v4069_v10 = vadd.f32 %v4068_v56, %v4041_v40  ;;  %v4092_v7 = vmul.f32 %v4041_v40, %v4041_v40  ;;  %v4106_v22 = vadd.f32 %v4105_v48, %v4091_v29  ;;  %v5412_v20 = vpop.f32.mrb[46].mxu0 }
 0x439   :  { %v4044_v42 = vpop.f32.mrb[47].mxu0  ;;  %v4095_v15 = vmul.f32 %v5412_v20, %v5412_v20 }
 0x43a   :  { %v4107_v31 = vadd.f32 %v4106_v22, %v4092_v7  ;;  %v4070_v63 = vadd.f32 %v4069_v10, %v4044_v42  ;;  %v4093_v1 = vmul.f32 %v4044_v42, %v4044_v42 }
 0x43c   :  { %v4071_v17 = vadd.f32 %v5411_v32, %v4070_v63  ;;  %v4108_v5 = vadd.f32 %v4107_v31, %v4093_v1 }
 0x43e   :  { %v4072_v21 = vadd.f32 %v5412_v20, %v4071_v17  ;;  %v4109_v25 = vadd.f32 %v4108_v5, %v4094_v55 }
 0x440   :  { %v4073_v19 = vrot.slane %v4072_v21, 4  ;;  %v4110_v52 = vadd.f32 %v4109_v25, %v4095_v15 }
 0x442   :  { %v4074_v9 = vadd.f32 %v4073_v19, %v4072_v21  ;;  %v4111_v54 = vrot.slane %v4110_v52, 4 }
 0x444   :  { %v4075_v16 = vrot.slane %v4074_v9, 2  ;;  %v4112_v34 = vadd.f32 %v4111_v54, %v4110_v52 }
 0x446   :  { %v4076_v43 = vadd.f32 %v4075_v16, %v4074_v9  ;;  %v4113_v38 = vrot.slane %v4112_v34, 2 }
 0x448   :  { %v4077_v59 = vrot.slane %v4076_v43, 1  ;;  %v4114_v44 = vadd.f32 %v4113_v38, %v4112_v34 }
 0x44a   :  { %v4078_v58 = vadd.f32 %v4077_v59, %v4076_v43  ;;  %v4115_v33 = vrot.slane %v4114_v44, 1 }
 0x44c   :  { %v4079_v24 = vmul.f32 0.0078125, %v4078_v58  ;;  %v4116_v46 = vadd.f32 %v4115_v33, %v4114_v44 }
 0x44e   :  { %v4117_v50 = vmul.f32 0.0078125, %v4116_v46  ;;  %v4118_v8 = vmul.f32 %v4079_v24, %v4079_v24 }
 0x450   :  { %v4119_v13 = vsub.f32 %v4117_v50, %v4118_v8 }
 0x452   :  { %v4120_v11 = vmax.f32 %v4119_v13, 0.0 }
 0x454   :  { %v4121_v61 = vadd.f32 1e-05, %v4120_v11 }
 0x456   :  { %5780 = vrsqrt.f32 %v4121_v61 }
 0x460   :  { %v5781_v41 = vpop.eup %5780 }
 0x461   :  { %v4123_v45 = vmul.f32 %v5781_v41, %v4056_v39 }
 0x463   :  { %v4124_v4 = vmul.f32 %v4123_v45, %v4079_v24  ;;  %v4130_v30 = vrot.slane %v4123_v45, %v6105_v35 }
 0x465   :  { %v4125_v36 = vsub.f32 %v4057_v27, %v4124_v4  ;;  %v4140_v28 = vmul.f32 %v4130_v30, %v4025_v57  ;;  %v4141_v18 = vmul.f32 %v4130_v30, %v4028_v12  ;;  %v4142_v49 = vmul.f32 %v7207_v2, %v4130_v30  ;;  %v4291_v4 = vld [vmem:[%s7461_s11] sm:$0xff] }
 0x466   :  { %v4143_v53 = vmul.f32 %v5408_v60, %v4130_v30  ;;  %v4144_v29 = vmul.f32 %v4130_v30, %v4041_v40  ;;  %v4145_v48 = vmul.f32 %v4130_v30, %v4044_v42  ;;  %v4146_v56 = vmul.f32 %v5411_v32, %v4130_v30 }
 0x467   :  { %v4147_v10 = vmul.f32 %v5412_v20, %v4130_v30  ;;  %v4152_v7 = vrot.slane %v4125_v36, %v6105_v35  ;;  %v4132_v22 = vmul.f32 %v4130_v30, %v7170_v0  ;;  %v4133_v31 = vmul.f32 %v4130_v30, %v7174_v14 }
 0x468   :  { %v4134_v63 = vmul.f32 %v7168_v37, %v4130_v30  ;;  %v4135_v1 = vmul.f32 %v7172_v3, %v4130_v30  ;;  %v4136_v57 = vmul.f32 %v4130_v30, %v7190_v26  ;;  %v4137_v12 = vmul.f32 %v4130_v30, %v7197_v51 }
 0x469   :  { %v7228_v2 = vadd.f32 %v4152_v7, %v4140_v28  ;;  %v7230_v60 = vadd.f32 %v4152_v7, %v4141_v18  ;;  %v7232_v32 = vadd.f32 %v4152_v7, %v4142_v49  ;;  %v7234_v40 = vadd.f32 %v4152_v7, %v4143_v53  ;;  %v4293_v53 = vld [vmem:[%s7461_s11 + $0x10] sm:$0xff] }
 0x46a   :  { %v7236_v20 = vadd.f32 %v4152_v7, %v4144_v29  ;;  %v7238_v0 = vadd.f32 %v4152_v7, %v4145_v48  ;;  %v7240_v14 = vadd.f32 %v4152_v7, %v4146_v56  ;;  %v7242_v37 = vadd.f32 %v4152_v7, %v4147_v10  ;;  %v4294_v29 = vld [vmem:[%s7461_s11 + $0x18] sm:$0xff]  ;;  %v4295_v10 = vld [vmem:[%s7461_s11 + $0x20] sm:$0xff] }
 0x46b   :  { %v4183_v3 = vadd.f32 %v7230_v60, %v7228_v2  ;;  %v4138_v26 = vmul.f32 %v7187_v62, %v4130_v30  ;;  %v4139_v51 = vmul.f32 %v7195_v6, %v4130_v30  ;;  %v7248_v42 = vadd.f32 %v4152_v7, %v4132_v22  ;;  %v4292_v30 = vld [vmem:[%s7461_s11 + $0x8] sm:$0xff] }
 0x46c   :  { %v7250_v55 = vadd.f32 %v4152_v7, %v4133_v31  ;;  %v7252_v17 = vadd.f32 %v4152_v7, %v4134_v63  ;;  %v7254_v5 = vadd.f32 %v4152_v7, %v4135_v1  ;;  %v7256_v15 = vadd.f32 %v4152_v7, %v4136_v57  ;;  %v4297_v31 = vld [vmem:[%s7461_s11 + $0x30] sm:$0xff]  ;;  %v4299_v1 = vld [vmem:[%s7461_s11 + $0x40] sm:$0xff]  ;;  %v4300_v57 = vld [vmem:[%s7461_s11 + $0x48] sm:$0xff] }
 0x46d   :  { %v4184_v21 = vadd.f32 %v4183_v3, %v7232_v32  ;;  %v7259_v25 = vadd.f32 %v4152_v7, %v4137_v12  ;;  %v7261_v19 = vadd.f32 %v4152_v7, %v4138_v26  ;;  %v7263_v52 = vadd.f32 %v4152_v7, %v4139_v51  ;;  %v4296_v7 = vld [vmem:[%s7461_s11 + $0x28] sm:$0xff]  ;;  %v4301_v3 = vld [vmem:[%s7461_s11 + $0x50] sm:$0xff]  ;;  %v4302_v26 = vld [vmem:[%s7461_s11 + $0x58] sm:$0xff] }
 0x46e   :  { %v4170_v62 = vadd.f32 %v7250_v55, %v7248_v42  ;;  %v5508_v49 = vpack.c.bf16 %v4292_v30, %v4291_v4  ;;  %v5511_v56 = vpack.c.bf16 %v4294_v29, %v4293_v53  ;;  %v5514_v22 = vpack.c.bf16 %v4296_v7, %v4295_v10  ;;  %v5802_v7 = vld [vmem:[%s7451_s0 + $0x28] sm:$0xff] }
 0x46f   :  { %v4185_v6 = vadd.f32 %v4184_v21, %v7234_v40  ;;  %v5520_v12 = vpack.c.bf16 %v4300_v57, %v4299_v1  ;;  %v5523_v51 = vpack.c.bf16 %v4302_v26, %v4301_v3  ;;  %v4303_v21 = vld [vmem:[%s7461_s11 + $0x60] sm:$0xff]  ;;  %v5806_v3 = vld [vmem:[%s7451_s0 + $0x48] sm:$0xff] }
 0x470   :  { %v4171_v9 = vadd.f32 %v4170_v62, %v7252_v17  ;;  %v4304_v62 = vld [vmem:[%s7461_s11 + $0x68] sm:$0xff]  ;;  %v5805_v57 = vld [vmem:[%s7451_s0 + $0x40] sm:$0xff] }
 0x471   :  { %v4186_v54 = vadd.f32 %v4185_v6, %v7236_v20  ;;  %v5526_v6 = vpack.c.bf16 %v4304_v62, %v4303_v21  ;;  %v5808_v62 = vld [vmem:[%s7451_s0 + $0x58] sm:$0xff] }
 0x472   :  { %v4172_v16 = vadd.f32 %v4171_v9, %v7254_v5  ;;  %v4305_v9 = vld [vmem:[%s7461_s11 + $0x70] sm:$0xff] }
 0x473   :  { %v4187_v34 = vadd.f32 %v4186_v54, %v7238_v0  ;;  %v4306_v54 = vld [vmem:[%s7461_s11 + $0x78] sm:$0xff] }
 0x474   :  { %v4173_v43 = vadd.f32 %v4172_v16, %v7256_v15  ;;  %v5529_v16 = vpack.c.bf16 %v4306_v54, %v4305_v9  ;;  %v5809_v9 = vld [vmem:[%s7451_s0 + $0x60] sm:$0xff] }
 0x475   :  { %v4188_v38 = vadd.f32 %v4187_v34, %v7240_v14 }
 0x476   :  { %v4174_v59 = vadd.f32 %v4173_v43, %v7259_v25 }
 0x477   :  { %v4189_v44 = vadd.f32 %v4188_v38, %v7242_v37 }
 0x478   :  { %v4175_v58 = vadd.f32 %v4174_v59, %v7261_v19 }
 0x479   :  { %v4190_v33 = vrot.slane %v4189_v44, 4 }
 0x47a   :  { %v4176_v24 = vadd.f32 %v4175_v58, %v7263_v52 }
 0x47b   :  { %v4191_v46 = vadd.f32 %v4190_v33, %v4189_v44 }
 0x47c   :  { %v4177_v50 = vrot.slane %v4176_v24, 4 }
 0x47d   :  { %v4192_v8 = vrot.slane %v4191_v46, 2 }
 0x47e   :  { %v4178_v13 = vadd.f32 %v4177_v50, %v4176_v24 }
 0x47f   :  { %v4193_v11 = vadd.f32 %v4192_v8, %v4191_v46  ;;  %v5817_v46 = vmov 1966171168  }
 0x480   :  { %v4179_v61 = vrot.slane %v4178_v13, 2  ;;  %v4384_v50 = vunpack.c.l.s4 %v5817_v46 }
 0x481   :  { %v4194_v39 = vrot.slane %v4193_v11, 1 }
 0x482   :  { %v4180_v41 = vadd.f32 %v4179_v61, %v4178_v13  ;;  %v4385_v8 = vunpack.c.0.s8 %v4384_v50  ;;  %v7477_v13 = vld [vmem:[#allocation3_spill] sm:$0xff] }
 0x483   :  { %v4195_v45 = vadd.f32 %v4194_v39, %v4193_v11 }
 0x484   :  { %v4181_v27 = vrot.slane %v4180_v41, 1  ;;  %v4388_v11 = vsub.s32 %v4385_v8, %v7477_v13 }
 0x485   :  { %v4198_v28 = vmul.f32 0.015625, %v4195_v45 }
 0x486   :  { %v4182_v36 = vadd.f32 %v4181_v27, %v4180_v41 }
 0x488   :  { %v4197_v18 = vmul.f32 0.015625, %v4182_v36 }
 0x48a   :  { %v4218_v48 = vsel %vm4217_vm13, %v4198_v28, %v4197_v18 }
 0x48b   :  { %5446 = vmatmul.mubr.f32.vlgmr.msra.gmra.mrb[48].mxu0 %v4218_v48 }
 0x48c   :  { %5509 = vmatpush3.bf16.msra.mxu0 %v5508_v49  ;;  %5480 = vmatprep.mubr.msk.f32.mxu0 %vm5815_vm12, %v5816_v23  ;;  %v4298_v23 = vld [vmem:[%s7461_s11 + $0x38] sm:$0xff] }
 0x48d   :  { %5510 = vmatprep.subr.bf16.mxu0 %v5814_v47  ;;  %v5517_v63 = vpack.c.bf16 %v4298_v23, %v4297_v31  ;;  %v5803_v31 = vld [vmem:[%s7451_s0 + $0x30] sm:$0xff] }
 0x490   :  { %5512 = vmatpush3.bf16.msra.mxu0 %v5511_v56 }
 0x491   :  { %5513 = vmatprep.subr.bf16.mxu0 %v5814_v47 }
 0x494   :  { %5515 = vmatpush3.bf16.msra.mxu0 %v5514_v22 }
 0x495   :  { %5516 = vmatprep.subr.bf16.mxu0 %v5814_v47 }
 0x498   :  { %5518 = vmatpush3.bf16.msra.mxu0 %v5517_v63  ;;  %v5804_v63 = vld [vmem:[%s7451_s0 + $0x38] sm:$0xff] }
 0x499   :  { %5519 = vmatprep.subr.bf16.mxu0 %v5814_v47 }
 0x49c   :  { %5521 = vmatpush3.bf16.msra.mxu0 %v5520_v12 }
 0x49d   :  { %5522 = vmatprep.subr.bf16.mxu0 %v5814_v47 }
 0x4a0   :  { %5524 = vmatpush3.bf16.msra.mxu0 %v5523_v51  ;;  %v5807_v51 = vld [vmem:[%s7451_s0 + $0x50] sm:$0xff] }
 0x4a1   :  { %5525 = vmatprep.subr.bf16.mxu0 %v5814_v47 }
 0x4a4   :  { %5527 = vmatpush3.bf16.msra.mxu0 %v5526_v6 }
 0x4a5   :  { %5528 = vmatprep.subr.bf16.mxu0 %v5814_v47 }
 0x4a8   :  { %5530 = vmatpush3.bf16.msra.mxu0 %v5529_v16  ;;  %v5810_v16 = vld [vmem:[%s7451_s0 + $0x68] sm:$0xff] }
 0x55e   :  { %v4286_v34 = vpop.f32.mrb[48].mxu0 }
 0x55f   :  { %v4290_v43 = vmax.f32 %v4286_v34, 0.0  ;;  %v5447_v38 = vpop.f32.mrb[49].mxu0 }
 0x561   :  { %5481 = vmatmul.mubr.f32.vlgmr.msra.gmra.mrb[50].mxu0 %v4290_v43  ;;  %v5811_v43 = vld [vmem:[%s7451_s0 + $0x70] sm:$0xff] }
 0x634   :  { %v4373_v59 = vpop.f32.mrb[50].mxu0 }
 0x635   :  { %v4377_v44 = vsub.f32 0.0, %v4373_v59  ;;  %v5482_v58 = vpop.f32.mrb[51].mxu0  ;;  %v5812_v59 = vld [vmem:[%s7451_s0 + $0x78] sm:$0xff] }
 0x637   :  { %v4378_v33 = vmul.f32 1.442695, %v4377_v44 }
 0x639   :  { %5782 = vpow2.f32 %v4378_v33 }
 0x643   :  { %v5783_v47 = vpop.eup %5782 }
 0x644   :  { %v4380_v24 = vadd.f32 1.0, %v5783_v47 }
 0x646   :  { %5784 = vrcp.f32 %v4380_v24 }
 0x650   :  { %v5785_v61 = vpop.eup %5784 }
 0x651   :  { %v4389_v39 = vrot.slane %v5785_v61, %v4388_v11 }
 0x653   :  { %v4390_v41 = vcombine.high %v4389_v39, %v4389_v39  ;;  %v4397_v45 = vrot.slane %v4389_v39, %v4388_v11 }
 0x655   :  { %v4404_v27 = vrot.slane %v4390_v41, %v4388_v11  ;;  %v4408_v4 = vrot.slane %v4397_v45, %v6105_v35 }
 0x657   :  { %v4412_v30 = vrot.slane %v4404_v27, %v6105_v35  ;;  %v4415_v36 = vmul.f32 %v4408_v4, %v7248_v42  ;;  %v4416_v28 = vmul.f32 %v4408_v4, %v7250_v55  ;;  %v4417_v18 = vmul.f32 %v4408_v4, %v7252_v17 }
 0x658   :  { %v4418_v49 = vmul.f32 %v4408_v4, %v7254_v5  ;;  %v4419_v53 = vmul.f32 %v4408_v4, %v7256_v15  ;;  %v4420_v29 = vmul.f32 %v4408_v4, %v7259_v25  ;;  %v4421_v48 = vmul.f32 %v4408_v4, %v7261_v19  ;;  %v5797_v19 = vld [vmem:[%s7451_s0] sm:$0xff] }
 0x659   :  { %v4422_v56 = vmul.f32 %v4408_v4, %v7263_v52  ;;  %v4423_v10 = vmul.f32 %v4412_v30, %v7228_v2  ;;  %v4424_v35 = vmul.f32 %v4412_v30, %v7230_v60  ;;  %v4425_v42 = vmul.f32 %v4412_v30, %v7232_v32  ;;  %v5798_v2 = vld [vmem:[%s7451_s0 + $0x8] sm:$0xff]  ;;  %v5799_v32 = vld [vmem:[%s7451_s0 + $0x10] sm:$0xff] }
 0x65a   :  { %v4426_v55 = vmul.f32 %v4412_v30, %v7234_v40  ;;  %v4427_v17 = vmul.f32 %v4412_v30, %v7236_v20  ;;  %v4428_v5 = vmul.f32 %v4412_v30, %v7238_v0  ;;  %v4429_v15 = vmul.f32 %v4412_v30, %v7240_v14  ;;  %v5800_v20 = vld [vmem:[%s7451_s0 + $0x18] sm:$0xff]  ;;  %v5801_v14 = vld [vmem:[%s7451_s0 + $0x20] sm:$0xff] }
 0x65b   :  { %v4430_v25 = vmul.f32 %v4412_v30, %v7242_v37  ;;  %v4431_v52 = vadd.f32 %v5797_v19, %v4415_v36  ;;  %v4432_v60 = vadd.f32 %v5798_v2, %v4416_v28  ;;  %v4433_v40 = vadd.f32 %v5799_v32, %v4417_v18 }
 0x65c   :  { %v4434_v0 = vadd.f32 %v5800_v20, %v4418_v49  ;;  %v4435_v37 = vadd.f32 %v5801_v14, %v4419_v53  ;;  %v4436_v22 = vadd.f32 %v5802_v7, %v4420_v29  ;;  %v4437_v23 = vadd.f32 %v5803_v31, %v4421_v48 }
 0x65d   :  { %v4438_v1 = vadd.f32 %v5804_v63, %v4422_v56  ;;  %v4439_v12 = vadd.f32 %v5805_v57, %v4423_v10  ;;  %v4440_v26 = vadd.f32 %v5806_v3, %v4424_v35  ;;  %v4441_v21 = vadd.f32 %v5807_v51, %v4425_v42 }
 0x65e   :  { %v4442_v6 = vadd.f32 %v5808_v62, %v4426_v55  ;;  %v4443_v54 = vadd.f32 %v5809_v9, %v4427_v17  ;;  %v4444_v34 = vadd.f32 %v5810_v16, %v4428_v5  ;;  %v4445_v38 = vadd.f32 %v5811_v43, %v4429_v15 }
 0x65f   :  { %v4446_v44 = vadd.f32 %v5812_v59, %v4430_v25  ;;  %v4447_v58 = vmax.f32 %v4431_v52, 0.0  ;;  %v4448_v33 = vmax.f32 %v4432_v60, 0.0  ;;  %v4449_v47 = vmax.f32 %v4433_v40, 0.0 }
 0x660   :  { %v4450_v24 = vmax.f32 %v4434_v0, 0.0  ;;  %v4451_v46 = vmax.f32 %v4435_v37, 0.0  ;;  %v4452_v50 = vmax.f32 %v4436_v22, 0.0  ;;  %v4453_v8 = vmax.f32 %v4437_v23, 0.0 }
 0x661   :  { %v4454_v13 = vmax.f32 %v4438_v1, 0.0  ;;  %v4455_v11 = vmax.f32 %v4439_v12, 0.0  ;;  %v4456_v61 = vmax.f32 %v4440_v26, 0.0  ;;  %v4457_v39 = vmax.f32 %v4441_v21, 0.0  ;;  %4463 = vst [vmem:[%s7462_s12] sm:$0xff] %v4447_v58  ;;  %4464 = vst [vmem:[%s7462_s12 + $0x8] sm:$0xff] %v4448_v33 }
 0x662   :  { %4465 = vst [vmem:[%s7462_s12 + $0x10] sm:$0xff] %v4449_v47  ;;  %v4458_v41 = vmax.f32 %v4442_v6, 0.0  ;;  %v4459_v45 = vmax.f32 %v4443_v54, 0.0  ;;  %v4460_v27 = vmax.f32 %v4444_v34, 0.0  ;;  %v4461_v4 = vmax.f32 %v4445_v38, 0.0  ;;  %4466 = vst [vmem:[%s7462_s12 + $0x18] sm:$0xff] %v4450_v24 }
 0x663   :  { %4467 = vst [vmem:[%s7462_s12 + $0x20] sm:$0xff] %v4451_v46  ;;  %4468 = vst [vmem:[%s7462_s12 + $0x28] sm:$0xff] %v4452_v50  ;;  %v4462_v30 = vmax.f32 %v4446_v44, 0.0 }
 0x664   :  { %4469 = vst [vmem:[%s7462_s12 + $0x30] sm:$0xff] %v4453_v8  ;;  %4470 = vst [vmem:[%s7462_s12 + $0x38] sm:$0xff] %v4454_v13 }
 0x665   :  { %4471 = vst [vmem:[%s7462_s12 + $0x40] sm:$0xff] %v4455_v11  ;;  %4472 = vst [vmem:[%s7462_s12 + $0x48] sm:$0xff] %v4456_v61 }
 0x666   :  { %4473 = vst [vmem:[%s7462_s12 + $0x50] sm:$0xff] %v4457_v39  ;;  %4474 = vst [vmem:[%s7462_s12 + $0x58] sm:$0xff] %v4458_v41 }
 0x667   :  { %4475 = vst [vmem:[%s7462_s12 + $0x60] sm:$0xff] %v4459_v45  ;;  %4476 = vst [vmem:[%s7462_s12 + $0x68] sm:$0xff] %v4460_v27 }
 0x668   :  { %4477 = vst [vmem:[%s7462_s12 + $0x70] sm:$0xff] %v4461_v4  ;;  %4478 = vst [vmem:[%s7462_s12 + $0x78] sm:$0xff] %v4462_v30 }

</bundles_post_ra>
